<compile_context>
chip_gen: v5e
topology: v5e:2x2
jax: 0.10.0
libtpu: 0.0.40
codegen_flags: <defaults>
</compile_context>

<pallas_src>
import jax
import jax.numpy as jnp
from jax import lax
from jax.experimental import pallas as pl
from jax.experimental.pallas import tpu as pltpu


# -------------------------- Pallas kernel --------------------------------- #
def _make_gru_fc_kernel(num_layers: int, T: int, B: int, H: int):
    """Builds kernel(x_flat, *per_layer_params, wfc, bfc, out, *scratch).

    Per-layer params (10 refs): Wih_r, Wih_z, Wih_n  (D_l, H)
                                Whh_r, Whh_z, Whh_n  (H, H)
                                b_r, b_z, b_n, b_hn  (1, H)
    where b_r = b_ih_r + b_hh_r, b_z = b_ih_z + b_hh_z, b_n = b_ih_n and
    b_hn = b_hh_n (must stay inside r * (...)).
    """
    P = 10  # params per layer

    def kernel(*refs):
        x_ref = refs[0]                                       # (T*B, D_in)
        layer_refs = [refs[1 + l * P: 1 + (l + 1) * P] for l in range(num_layers)]
        base = 1 + num_layers * P
        wfc_ref = refs[base]                                  # (H, O)
        bfc_ref = refs[base + 1]                              # (1, O)
        out_ref = refs[base + 2]                              # (B, O)
        gi_r_ref = refs[base + 3]                             # (T*B, H) scratch
        gi_z_ref = refs[base + 4]
        gi_n_ref = refs[base + 5]
        seq_ref = refs[base + 6] if num_layers > 1 else None  # (T*B, H) scratch

        h_last = None
        for l in range(num_layers):
            (wr_ref, wz_ref, wn_ref, ur_ref, uz_ref, un_ref,
             br_ref, bz_ref, bn_ref, bhn_ref) = layer_refs[l]

            # Layer input: flat (T*B, D_l); previous layer's outputs were fully
            # written before this read (same-ref program order).
            xin = x_ref[...] if l == 0 else seq_ref[...]

            # Batched input-to-hidden matmuls, hoisted out of the recurrence.
            # Biases folded (b_ih + r/z part of b_hh).
            gi_r_ref[...] = (jnp.dot(xin, wr_ref[...],
                                     preferred_element_type=jnp.float32)
                             + br_ref[...])
            gi_z_ref[...] = (jnp.dot(xin, wz_ref[...],
                                     preferred_element_type=jnp.float32)
                             + bz_ref[...])
            gi_n_ref[...] = (jnp.dot(xin, wn_ref[...],
                                     preferred_element_type=jnp.float32)
                             + bn_ref[...])

            # Hoist recurrent weights / bias broadcast out of the unrolled loop
            # (JAX does not CSE broadcast_in_dim across iterations).
            ur = ur_ref[...]
            uz = uz_ref[...]
            un = un_ref[...]
            bhn = jnp.broadcast_to(bhn_ref[...], (B, H))

            is_last = (l == num_layers - 1)
            h = jnp.zeros((B, H), jnp.float32)

            # Fully unrolled recurrence: only h-dependent work on the chain.
            for t in range(T):
                lo = t * B
                gi_r = gi_r_ref[lo:lo + B, :]
                gi_z = gi_z_ref[lo:lo + B, :]
                gi_n = gi_n_ref[lo:lo + B, :]
                gh_r = jnp.dot(h, ur, preferred_element_type=jnp.float32)
                gh_z = jnp.dot(h, uz, preferred_element_type=jnp.float32)
                gh_n = jnp.dot(h, un, preferred_element_type=jnp.float32) + bhn
                r = jax.nn.sigmoid(gi_r + gh_r)
                z = jax.nn.sigmoid(gi_z + gh_z)
                n = jnp.tanh(gi_n + r * gh_n)
                h = (1.0 - z) * n + z * h
                if not is_last:
                    seq_ref[lo:lo + B, :] = h   # layer output for next layer
            h_last = h

        # Final Linear: out = h_last @ W_fc^T + b_fc
        out_ref[...] = (
            jnp.dot(h_last, wfc_ref[...], preferred_element_type=jnp.float32)
            + bfc_ref[...]
        ).astype(out_ref.dtype)

    return kernel


# -------------------------- Wrapper ---------------------------------------- #
def gru_network_forward(x, gru_params, fc_w, fc_b):
    """x: (B, T, D_in) float32.  gru_params: list of (W_ih, W_hh, b_ih, b_hh)
    in PyTorch layout (W_ih: (3H, D_in_l), W_hh: (3H, H), biases: (3H,)).
    fc_w: (O, H), fc_b: (O,).  Returns (B, O)."""
    B, T, D_in = x.shape
    H = gru_params[0][1].shape[1]
    O = fc_w.shape[0]
    num_layers = len(gru_params)

    # Time-major, flattened: row t*B + b == x[b, t].
    x_flat = jnp.transpose(x, (1, 0, 2)).reshape(T * B, D_in).astype(jnp.float32)

    in_arrays = [x_flat]
    for (wih, whh, bih, bhh) in gru_params:
        wih = wih.astype(jnp.float32)
        whh = whh.astype(jnp.float32)
        bih = bih.astype(jnp.float32)
        bhh = bhh.astype(jnp.float32)
        # Per-gate weight matrices, pre-transposed to (D, H)/(H, H).
        wr = jnp.transpose(wih[0:H, :])
        wz = jnp.transpose(wih[H:2 * H, :])
        wn = jnp.transpose(wih[2 * H:3 * H, :])
        ur = jnp.transpose(whh[0:H, :])
        uz = jnp.transpose(whh[H:2 * H, :])
        un = jnp.transpose(whh[2 * H:3 * H, :])
        # Fold biases: r/z parts of b_hh fold into the precomputed gi; only
        # b_hh_n must stay inside r * (...) per PyTorch GRU semantics.
        br = (bih[0:H] + bhh[0:H]).reshape(1, H)
        bz = (bih[H:2 * H] + bhh[H:2 * H]).reshape(1, H)
        bn = bih[2 * H:3 * H].reshape(1, H)
        bhn = bhh[2 * H:3 * H].reshape(1, H)
        in_arrays += [wr, wz, wn, ur, uz, un, br, bz, bn, bhn]

    in_arrays += [
        jnp.transpose(fc_w).astype(jnp.float32),   # (H, O)
        fc_b.reshape(1, O).astype(jnp.float32),    # (1, O)
    ]

    scratch_shapes = [pltpu.VMEM((T * B, H), jnp.float32)] * 3   # gi_r, gi_z, gi_n
    if num_layers > 1:
        scratch_shapes.append(pltpu.VMEM((T * B, H), jnp.float32))  # layer-output seq

    kernel = _make_gru_fc_kernel(num_layers, T, B, H)

    fn = pl.pallas_call(
        kernel,
        out_shape=jax.ShapeDtypeStruct((B, O), jnp.float32),
        in_specs=[pl.BlockSpec(memory_space=pltpu.MemorySpace.VMEM)] * len(in_arrays),
        out_specs=pl.BlockSpec(memory_space=pltpu.MemorySpace.VMEM),
        scratch_shapes=scratch_shapes,
    )
    return fn(*in_arrays)


# -------------------------- Pure-JAX reference ----------------------------- #
def gru_network_reference(x, gru_params, fc_w, fc_b):
    H = gru_params[0][1].shape[1]
    seq = x
    for (wih, whh, bih, bhh) in gru_params:
        B = seq.shape[0]

        def step(h, x_t):
            gi = x_t @ wih.T + bih
            gh = h @ whh.T + bhh
            r = jax.nn.sigmoid(gi[:, :H] + gh[:, :H])
            z = jax.nn.sigmoid(gi[:, H:2 * H] + gh[:, H:2 * H])
            n = jnp.tanh(gi[:, 2 * H:] + r * gh[:, 2 * H:])
            h_new = (1.0 - z) * n + z * h
            return h_new, h_new

        h0 = jnp.zeros((B, H), jnp.float32)
        _, outs = lax.scan(step, h0, jnp.swapaxes(seq, 0, 1))
        seq = jnp.swapaxes(outs, 0, 1)
    last = seq[:, -1, :]
    return last @ fc_w.T + fc_b


# -------------------------- Main ------------------------------------------- #
if __name__ == "__main__":
    # Small shapes consistent with the module's forward.
    B, T, D_in = 2, 8, 4          # batch, seq_len, input_dim
    H, L, O = 32, 2, 1            # hidden_dim, num_layers, output_dim

    key = jax.random.PRNGKey(0)
    key, kx = jax.random.split(key)
    x = jax.random.normal(kx, (B, T, D_in), dtype=jnp.float32)

    # Deterministic parameter init mimicking PyTorch defaults: U(-1/sqrt(H), 1/sqrt(H)).
    k_gru = 1.0 / jnp.sqrt(jnp.float32(H))
    gru_params = []
    for l in range(L):
        d_in_l = D_in if l == 0 else H
        key, k1, k2, k3, k4 = jax.random.split(key, 5)
        wih = jax.random.uniform(k1, (3 * H, d_in_l), minval=-k_gru, maxval=k_gru)
        whh = jax.random.uniform(k2, (3 * H, H), minval=-k_gru, maxval=k_gru)
        bih = jax.random.uniform(k3, (3 * H,), minval=-k_gru, maxval=k_gru)
        bhh = jax.random.uniform(k4, (3 * H,), minval=-k_gru, maxval=k_gru)
        gru_params.append((wih, whh, bih, bhh))

    k_fc = 1.0 / jnp.sqrt(jnp.float32(H))
    key, k5, k6 = jax.random.split(key, 3)
    fc_w = jax.random.uniform(k5, (O, H), minval=-k_fc, maxval=k_fc)
    fc_b = jax.random.uniform(k6, (O,), minval=-k_fc, maxval=k_fc)

    out = gru_network_forward(x, gru_params, fc_w, fc_b)
    out = jax.block_until_ready(out)

    ref = gru_network_reference(x, gru_params, fc_w, fc_b)
    assert out.shape == (B, O), out.shape
    assert jnp.allclose(out, ref, atol=1e-4, rtol=1e-4), (out, ref)

    print("KERNEL_OK")
</pallas_src>

<mosaic_0001>
module attributes {stable_mosaic.version = 11 : i64} {
  func.func @kernel(%arg0: memref<16x4xf32, #tpu.memory_space<vmem>>, %arg1: memref<4x32xf32, #tpu.memory_space<vmem>>, %arg2: memref<4x32xf32, #tpu.memory_space<vmem>>, %arg3: memref<4x32xf32, #tpu.memory_space<vmem>>, %arg4: memref<32x32xf32, #tpu.memory_space<vmem>>, %arg5: memref<32x32xf32, #tpu.memory_space<vmem>>, %arg6: memref<32x32xf32, #tpu.memory_space<vmem>>, %arg7: memref<1x32xf32, #tpu.memory_space<vmem>>, %arg8: memref<1x32xf32, #tpu.memory_space<vmem>>, %arg9: memref<1x32xf32, #tpu.memory_space<vmem>>, %arg10: memref<1x32xf32, #tpu.memory_space<vmem>>, %arg11: memref<32x32xf32, #tpu.memory_space<vmem>>, %arg12: memref<32x32xf32, #tpu.memory_space<vmem>>, %arg13: memref<32x32xf32, #tpu.memory_space<vmem>>, %arg14: memref<32x32xf32, #tpu.memory_space<vmem>>, %arg15: memref<32x32xf32, #tpu.memory_space<vmem>>, %arg16: memref<32x32xf32, #tpu.memory_space<vmem>>, %arg17: memref<1x32xf32, #tpu.memory_space<vmem>>, %arg18: memref<1x32xf32, #tpu.memory_space<vmem>>, %arg19: memref<1x32xf32, #tpu.memory_space<vmem>>, %arg20: memref<1x32xf32, #tpu.memory_space<vmem>>, %arg21: memref<32x1xf32, #tpu.memory_space<vmem>>, %arg22: memref<1x1xf32, #tpu.memory_space<vmem>>, %arg23: memref<2x1xf32, #tpu.memory_space<vmem>>, %arg24: memref<16x32xf32, #tpu.memory_space<vmem>>, %arg25: memref<16x32xf32, #tpu.memory_space<vmem>>, %arg26: memref<16x32xf32, #tpu.memory_space<vmem>>, %arg27: memref<16x32xf32, #tpu.memory_space<vmem>>) attributes {dimension_semantics = [], scalar_prefetch = 0 : i64, scratch_operands = 4 : i64, tpu.core_type = #tpu.core_type<tc>} {
    %c0 = arith.constant 0 : index
    %c0_0 = arith.constant 0 : index
    %0 = vector.load %arg0[%c0, %c0_0] : memref<16x4xf32, #tpu.memory_space<vmem>>, vector<16x4xf32>
    %c0_1 = arith.constant 0 : index
    %c0_2 = arith.constant 0 : index
    %1 = vector.load %arg1[%c0_1, %c0_2] : memref<4x32xf32, #tpu.memory_space<vmem>>, vector<4x32xf32>
    %cst = arith.constant dense<0.000000e+00> : vector<16x32xf32>
    %2 = tpu.matmul %0, %1, %cst {dimension_numbers = #tpu.dot_dimension_numbers<[1], [0], [0], [1], [0, 0, 1, 1], [], []>} : vector<16x4xf32>, vector<4x32xf32>, vector<16x32xf32> -> vector<16x32xf32>
    %c0_3 = arith.constant 0 : index
    %c0_4 = arith.constant 0 : index
    %3 = vector.load %arg7[%c0_3, %c0_4] : memref<1x32xf32, #tpu.memory_space<vmem>>, vector<1x32xf32>
    %4 = vector.broadcast %3 : vector<1x32xf32> to vector<16x32xf32>
    %5 = arith.addf %2, %4 : vector<16x32xf32>
    %c0_5 = arith.constant 0 : index
    %c0_6 = arith.constant 0 : index
    %6 = vector.load %arg24[%c0_5, %c0_6] : memref<16x32xf32, #tpu.memory_space<vmem>>, vector<16x32xf32>
    tpu.vector_store %arg24[%c0_5, %c0_6], %5 {strides = array<i32>} : memref<16x32xf32, #tpu.memory_space<vmem>>, vector<16x32xf32>,
    %c0_7 = arith.constant 0 : index
    %c0_8 = arith.constant 0 : index
    %7 = vector.load %arg2[%c0_7, %c0_8] : memref<4x32xf32, #tpu.memory_space<vmem>>, vector<4x32xf32>
    %cst_9 = arith.constant dense<0.000000e+00> : vector<16x32xf32>
    %8 = tpu.matmul %0, %7, %cst_9 {dimension_numbers = #tpu.dot_dimension_numbers<[1], [0], [0], [1], [0, 0, 1, 1], [], []>} : vector<16x4xf32>, vector<4x32xf32>, vector<16x32xf32> -> vector<16x32xf32>
    %c0_10 = arith.constant 0 : index
    %c0_11 = arith.constant 0 : index
    %9 = vector.load %arg8[%c0_10, %c0_11] : memref<1x32xf32, #tpu.memory_space<vmem>>, vector<1x32xf32>
    %10 = vector.broadcast %9 : vector<1x32xf32> to vector<16x32xf32>
    %11 = arith.addf %8, %10 : vector<16x32xf32>
    %c0_12 = arith.constant 0 : index
    %c0_13 = arith.constant 0 : index
    %12 = vector.load %arg25[%c0_12, %c0_13] : memref<16x32xf32, #tpu.memory_space<vmem>>, vector<16x32xf32>
    tpu.vector_store %arg25[%c0_12, %c0_13], %11 {strides = array<i32>} : memref<16x32xf32, #tpu.memory_space<vmem>>, vector<16x32xf32>,
    %c0_14 = arith.constant 0 : index
    %c0_15 = arith.constant 0 : index
    %13 = vector.load %arg3[%c0_14, %c0_15] : memref<4x32xf32, #tpu.memory_space<vmem>>, vector<4x32xf32>
    %cst_16 = arith.constant dense<0.000000e+00> : vector<16x32xf32>
    %14 = tpu.matmul %0, %13, %cst_16 {dimension_numbers = #tpu.dot_dimension_numbers<[1], [0], [0], [1], [0, 0, 1, 1], [], []>} : vector<16x4xf32>, vector<4x32xf32>, vector<16x32xf32> -> vector<16x32xf32>
    %c0_17 = arith.constant 0 : index
    %c0_18 = arith.constant 0 : index
    %15 = vector.load %arg9[%c0_17, %c0_18] : memref<1x32xf32, #tpu.memory_space<vmem>>, vector<1x32xf32>
    %16 = vector.broadcast %15 : vector<1x32xf32> to vector<16x32xf32>
    %17 = arith.addf %14, %16 : vector<16x32xf32>
    %c0_19 = arith.constant 0 : index
    %c0_20 = arith.constant 0 : index
    %18 = vector.load %arg26[%c0_19, %c0_20] : memref<16x32xf32, #tpu.memory_space<vmem>>, vector<16x32xf32>
    tpu.vector_store %arg26[%c0_19, %c0_20], %17 {strides = array<i32>} : memref<16x32xf32, #tpu.memory_space<vmem>>, vector<16x32xf32>,
    %c0_21 = arith.constant 0 : index
    %c0_22 = arith.constant 0 : index
    %19 = vector.load %arg4[%c0_21, %c0_22] : memref<32x32xf32, #tpu.memory_space<vmem>>, vector<32x32xf32>
    %c0_23 = arith.constant 0 : index
    %c0_24 = arith.constant 0 : index
    %20 = vector.load %arg5[%c0_23, %c0_24] : memref<32x32xf32, #tpu.memory_space<vmem>>, vector<32x32xf32>
    %c0_25 = arith.constant 0 : index
    %c0_26 = arith.constant 0 : index
    %21 = vector.load %arg6[%c0_25, %c0_26] : memref<32x32xf32, #tpu.memory_space<vmem>>, vector<32x32xf32>
    %c0_27 = arith.constant 0 : index
    %c0_28 = arith.constant 0 : index
    %22 = vector.load %arg10[%c0_27, %c0_28] : memref<1x32xf32, #tpu.memory_space<vmem>>, vector<1x32xf32>
    %23 = vector.shape_cast %22 : vector<1x32xf32> to vector<1x32xf32>
    %24 = vector.broadcast %23 : vector<1x32xf32> to vector<2x32xf32>
    %cst_29 = arith.constant 0.000000e+00 : f32
    %25 = vector.broadcast %cst_29 : f32 to vector<2x32xf32>
    %c0_30 = arith.constant 0 : index
    %c0_31 = arith.constant 0 : index
    %26 = vector.load %arg24[%c0_30, %c0_31] : memref<16x32xf32, #tpu.memory_space<vmem>>, vector<2x32xf32>
    %c0_32 = arith.constant 0 : index
    %c0_33 = arith.constant 0 : index
    %27 = vector.load %arg25[%c0_32, %c0_33] : memref<16x32xf32, #tpu.memory_space<vmem>>, vector<2x32xf32>
    %c0_34 = arith.constant 0 : index
    %c0_35 = arith.constant 0 : index
    %28 = vector.load %arg26[%c0_34, %c0_35] : memref<16x32xf32, #tpu.memory_space<vmem>>, vector<2x32xf32>
    %cst_36 = arith.constant dense<0.000000e+00> : vector<2x32xf32>
    %29 = tpu.matmul %25, %19, %cst_36 {dimension_numbers = #tpu.dot_dimension_numbers<[1], [0], [0], [1], [0, 0, 1, 1], [], []>} : vector<2x32xf32>, vector<32x32xf32>, vector<2x32xf32> -> vector<2x32xf32>
    %cst_37 = arith.constant dense<0.000000e+00> : vector<2x32xf32>
    %30 = tpu.matmul %25, %20, %cst_37 {dimension_numbers = #tpu.dot_dimension_numbers<[1], [0], [0], [1], [0, 0, 1, 1], [], []>} : vector<2x32xf32>, vector<32x32xf32>, vector<2x32xf32> -> vector<2x32xf32>
    %cst_38 = arith.constant dense<0.000000e+00> : vector<2x32xf32>
    %31 = tpu.matmul %25, %21, %cst_38 {dimension_numbers = #tpu.dot_dimension_numbers<[1], [0], [0], [1], [0, 0, 1, 1], [], []>} : vector<2x32xf32>, vector<32x32xf32>, vector<2x32xf32> -> vector<2x32xf32>
    %32 = arith.addf %31, %24 : vector<2x32xf32>
    %33 = arith.addf %26, %29 : vector<2x32xf32>
    %34 = arith.negf %33 : vector<2x32xf32>
    %35 = math.exp %34 : vector<2x32xf32>
    %cst_39 = arith.constant 1.000000e+00 : f32
    %36 = vector.broadcast %cst_39 : f32 to vector<2x32xf32>
    %37 = arith.addf %36, %35 : vector<2x32xf32>
    %38 = arith.divf %36, %37 : vector<2x32xf32>
    %39 = arith.addf %27, %30 : vector<2x32xf32>
    %40 = arith.negf %39 : vector<2x32xf32>
    %41 = math.exp %40 : vector<2x32xf32>
    %cst_40 = arith.constant 1.000000e+00 : f32
    %42 = vector.broadcast %cst_40 : f32 to vector<2x32xf32>
    %43 = arith.addf %42, %41 : vector<2x32xf32>
    %44 = arith.divf %42, %43 : vector<2x32xf32>
    %45 = arith.mulf %38, %32 : vector<2x32xf32>
    %46 = arith.addf %28, %45 : vector<2x32xf32>
    %47 = math.tanh %46 : vector<2x32xf32>
    %cst_41 = arith.constant 1.000000e+00 : f32
    %48 = vector.broadcast %cst_41 : f32 to vector<2x32xf32>
    %49 = arith.subf %48, %44 : vector<2x32xf32>
    %50 = arith.mulf %49, %47 : vector<2x32xf32>
    %51 = arith.mulf %44, %25 : vector<2x32xf32>
    %52 = arith.addf %50, %51 : vector<2x32xf32>
    %c0_42 = arith.constant 0 : index
    %c0_43 = arith.constant 0 : index
    %53 = vector.load %arg27[%c0_42, %c0_43] : memref<16x32xf32, #tpu.memory_space<vmem>>, vector<2x32xf32>
    tpu.vector_store %arg27[%c0_42, %c0_43], %52 {strides = array<i32>} : memref<16x32xf32, #tpu.memory_space<vmem>>, vector<2x32xf32>,
    %c2 = arith.constant 2 : index
    %c0_44 = arith.constant 0 : index
    %54 = vector.load %arg24[%c2, %c0_44] : memref<16x32xf32, #tpu.memory_space<vmem>>, vector<2x32xf32>
    %c2_45 = arith.constant 2 : index
    %c0_46 = arith.constant 0 : index
    %55 = vector.load %arg25[%c2_45, %c0_46] : memref<16x32xf32, #tpu.memory_space<vmem>>, vector<2x32xf32>
    %c2_47 = arith.constant 2 : index
    %c0_48 = arith.constant 0 : index
    %56 = vector.load %arg26[%c2_47, %c0_48] : memref<16x32xf32, #tpu.memory_space<vmem>>, vector<2x32xf32>
    %cst_49 = arith.constant dense<0.000000e+00> : vector<2x32xf32>
    %57 = tpu.matmul %52, %19, %cst_49 {dimension_numbers = #tpu.dot_dimension_numbers<[1], [0], [0], [1], [0, 0, 1, 1], [], []>} : vector<2x32xf32>, vector<32x32xf32>, vector<2x32xf32> -> vector<2x32xf32>
    %cst_50 = arith.constant dense<0.000000e+00> : vector<2x32xf32>
    %58 = tpu.matmul %52, %20, %cst_50 {dimension_numbers = #tpu.dot_dimension_numbers<[1], [0], [0], [1], [0, 0, 1, 1], [], []>} : vector<2x32xf32>, vector<32x32xf32>, vector<2x32xf32> -> vector<2x32xf32>
    %cst_51 = arith.constant dense<0.000000e+00> : vector<2x32xf32>
    %59 = tpu.matmul %52, %21, %cst_51 {dimension_numbers = #tpu.dot_dimension_numbers<[1], [0], [0], [1], [0, 0, 1, 1], [], []>} : vector<2x32xf32>, vector<32x32xf32>, vector<2x32xf32> -> vector<2x32xf32>
    %60 = arith.addf %59, %24 : vector<2x32xf32>
    %61 = arith.addf %54, %57 : vector<2x32xf32>
    %62 = arith.negf %61 : vector<2x32xf32>
    %63 = math.exp %62 : vector<2x32xf32>
    %cst_52 = arith.constant 1.000000e+00 : f32
    %64 = vector.broadcast %cst_52 : f32 to vector<2x32xf32>
    %65 = arith.addf %64, %63 : vector<2x32xf32>
    %66 = arith.divf %64, %65 : vector<2x32xf32>
    %67 = arith.addf %55, %58 : vector<2x32xf32>
    %68 = arith.negf %67 : vector<2x32xf32>
    %69 = math.exp %68 : vector<2x32xf32>
    %cst_53 = arith.constant 1.000000e+00 : f32
    %70 = vector.broadcast %cst_53 : f32 to vector<2x32xf32>
    %71 = arith.addf %70, %69 : vector<2x32xf32>
    %72 = arith.divf %70, %71 : vector<2x32xf32>
    %73 = arith.mulf %66, %60 : vector<2x32xf32>
    %74 = arith.addf %56, %73 : vector<2x32xf32>
    %75 = math.tanh %74 : vector<2x32xf32>
    %cst_54 = arith.constant 1.000000e+00 : f32
    %76 = vector.broadcast %cst_54 : f32 to vector<2x32xf32>
    %77 = arith.subf %76, %72 : vector<2x32xf32>
    %78 = arith.mulf %77, %75 : vector<2x32xf32>
    %79 = arith.mulf %72, %52 : vector<2x32xf32>
    %80 = arith.addf %78, %79 : vector<2x32xf32>
    %c2_55 = arith.constant 2 : index
    %c0_56 = arith.constant 0 : index
    %81 = vector.load %arg27[%c2_55, %c0_56] : memref<16x32xf32, #tpu.memory_space<vmem>>, vector<2x32xf32>
    tpu.vector_store %arg27[%c2_55, %c0_56], %80 {strides = array<i32>} : memref<16x32xf32, #tpu.memory_space<vmem>>, vector<2x32xf32>,
    %c4 = arith.constant 4 : index
    %c0_57 = arith.constant 0 : index
    %82 = vector.load %arg24[%c4, %c0_57] : memref<16x32xf32, #tpu.memory_space<vmem>>, vector<2x32xf32>
    %c4_58 = arith.constant 4 : index
    %c0_59 = arith.constant 0 : index
    %83 = vector.load %arg25[%c4_58, %c0_59] : memref<16x32xf32, #tpu.memory_space<vmem>>, vector<2x32xf32>
    %c4_60 = arith.constant 4 : index
    %c0_61 = arith.constant 0 : index
    %84 = vector.load %arg26[%c4_60, %c0_61] : memref<16x32xf32, #tpu.memory_space<vmem>>, vector<2x32xf32>
    %cst_62 = arith.constant dense<0.000000e+00> : vector<2x32xf32>
    %85 = tpu.matmul %80, %19, %cst_62 {dimension_numbers = #tpu.dot_dimension_numbers<[1], [0], [0], [1], [0, 0, 1, 1], [], []>} : vector<2x32xf32>, vector<32x32xf32>, vector<2x32xf32> -> vector<2x32xf32>
    %cst_63 = arith.constant dense<0.000000e+00> : vector<2x32xf32>
    %86 = tpu.matmul %80, %20, %cst_63 {dimension_numbers = #tpu.dot_dimension_numbers<[1], [0], [0], [1], [0, 0, 1, 1], [], []>} : vector<2x32xf32>, vector<32x32xf32>, vector<2x32xf32> -> vector<2x32xf32>
    %cst_64 = arith.constant dense<0.000000e+00> : vector<2x32xf32>
    %87 = tpu.matmul %80, %21, %cst_64 {dimension_numbers = #tpu.dot_dimension_numbers<[1], [0], [0], [1], [0, 0, 1, 1], [], []>} : vector<2x32xf32>, vector<32x32xf32>, vector<2x32xf32> -> vector<2x32xf32>
    %88 = arith.addf %87, %24 : vector<2x32xf32>
    %89 = arith.addf %82, %85 : vector<2x32xf32>
    %90 = arith.negf %89 : vector<2x32xf32>
    %91 = math.exp %90 : vector<2x32xf32>
    %cst_65 = arith.constant 1.000000e+00 : f32
    %92 = vector.broadcast %cst_65 : f32 to vector<2x32xf32>
    %93 = arith.addf %92, %91 : vector<2x32xf32>
    %94 = arith.divf %92, %93 : vector<2x32xf32>
    %95 = arith.addf %83, %86 : vector<2x32xf32>
    %96 = arith.negf %95 : vector<2x32xf32>
    %97 = math.exp %96 : vector<2x32xf32>
    %cst_66 = arith.constant 1.000000e+00 : f32
    %98 = vector.broadcast %cst_66 : f32 to vector<2x32xf32>
    %99 = arith.addf %98, %97 : vector<2x32xf32>
    %100 = arith.divf %98, %99 : vector<2x32xf32>
    %101 = arith.mulf %94, %88 : vector<2x32xf32>
    %102 = arith.addf %84, %101 : vector<2x32xf32>
    %103 = math.tanh %102 : vector<2x32xf32>
    %cst_67 = arith.constant 1.000000e+00 : f32
    %104 = vector.broadcast %cst_67 : f32 to vector<2x32xf32>
    %105 = arith.subf %104, %100 : vector<2x32xf32>
    %106 = arith.mulf %105, %103 : vector<2x32xf32>
    %107 = arith.mulf %100, %80 : vector<2x32xf32>
    %108 = arith.addf %106, %107 : vector<2x32xf32>
    %c4_68 = arith.constant 4 : index
    %c0_69 = arith.constant 0 : index
    %109 = vector.load %arg27[%c4_68, %c0_69] : memref<16x32xf32, #tpu.memory_space<vmem>>, vector<2x32xf32>
    tpu.vector_store %arg27[%c4_68, %c0_69], %108 {strides = array<i32>} : memref<16x32xf32, #tpu.memory_space<vmem>>, vector<2x32xf32>,
    %c6 = arith.constant 6 : index
    %c0_70 = arith.constant 0 : index
    %110 = vector.load %arg24[%c6, %c0_70] : memref<16x32xf32, #tpu.memory_space<vmem>>, vector<2x32xf32>
    %c6_71 = arith.constant 6 : index
    %c0_72 = arith.constant 0 : index
    %111 = vector.load %arg25[%c6_71, %c0_72] : memref<16x32xf32, #tpu.memory_space<vmem>>, vector<2x32xf32>
    %c6_73 = arith.constant 6 : index
    %c0_74 = arith.constant 0 : index
    %112 = vector.load %arg26[%c6_73, %c0_74] : memref<16x32xf32, #tpu.memory_space<vmem>>, vector<2x32xf32>
    %cst_75 = arith.constant dense<0.000000e+00> : vector<2x32xf32>
    %113 = tpu.matmul %108, %19, %cst_75 {dimension_numbers = #tpu.dot_dimension_numbers<[1], [0], [0], [1], [0, 0, 1, 1], [], []>} : vector<2x32xf32>, vector<32x32xf32>, vector<2x32xf32> -> vector<2x32xf32>
    %cst_76 = arith.constant dense<0.000000e+00> : vector<2x32xf32>
    %114 = tpu.matmul %108, %20, %cst_76 {dimension_numbers = #tpu.dot_dimension_numbers<[1], [0], [0], [1], [0, 0, 1, 1], [], []>} : vector<2x32xf32>, vector<32x32xf32>, vector<2x32xf32> -> vector<2x32xf32>
    %cst_77 = arith.constant dense<0.000000e+00> : vector<2x32xf32>
    %115 = tpu.matmul %108, %21, %cst_77 {dimension_numbers = #tpu.dot_dimension_numbers<[1], [0], [0], [1], [0, 0, 1, 1], [], []>} : vector<2x32xf32>, vector<32x32xf32>, vector<2x32xf32> -> vector<2x32xf32>
    %116 = arith.addf %115, %24 : vector<2x32xf32>
    %117 = arith.addf %110, %113 : vector<2x32xf32>
    %118 = arith.negf %117 : vector<2x32xf32>
    %119 = math.exp %118 : vector<2x32xf32>
    %cst_78 = arith.constant 1.000000e+00 : f32
    %120 = vector.broadcast %cst_78 : f32 to vector<2x32xf32>
    %121 = arith.addf %120, %119 : vector<2x32xf32>
    %122 = arith.divf %120, %121 : vector<2x32xf32>
    %123 = arith.addf %111, %114 : vector<2x32xf32>
    %124 = arith.negf %123 : vector<2x32xf32>
    %125 = math.exp %124 : vector<2x32xf32>
    %cst_79 = arith.constant 1.000000e+00 : f32
    %126 = vector.broadcast %cst_79 : f32 to vector<2x32xf32>
    %127 = arith.addf %126, %125 : vector<2x32xf32>
    %128 = arith.divf %126, %127 : vector<2x32xf32>
    %129 = arith.mulf %122, %116 : vector<2x32xf32>
    %130 = arith.addf %112, %129 : vector<2x32xf32>
    %131 = math.tanh %130 : vector<2x32xf32>
    %cst_80 = arith.constant 1.000000e+00 : f32
    %132 = vector.broadcast %cst_80 : f32 to vector<2x32xf32>
    %133 = arith.subf %132, %128 : vector<2x32xf32>
    %134 = arith.mulf %133, %131 : vector<2x32xf32>
    %135 = arith.mulf %128, %108 : vector<2x32xf32>
    %136 = arith.addf %134, %135 : vector<2x32xf32>
    %c6_81 = arith.constant 6 : index
    %c0_82 = arith.constant 0 : index
    %137 = vector.load %arg27[%c6_81, %c0_82] : memref<16x32xf32, #tpu.memory_space<vmem>>, vector<2x32xf32>
    tpu.vector_store %arg27[%c6_81, %c0_82], %136 {strides = array<i32>} : memref<16x32xf32, #tpu.memory_space<vmem>>, vector<2x32xf32>,
    %c8 = arith.constant 8 : index
    %c0_83 = arith.constant 0 : index
    %138 = vector.load %arg24[%c8, %c0_83] : memref<16x32xf32, #tpu.memory_space<vmem>>, vector<2x32xf32>
    %c8_84 = arith.constant 8 : index
    %c0_85 = arith.constant 0 : index
    %139 = vector.load %arg25[%c8_84, %c0_85] : memref<16x32xf32, #tpu.memory_space<vmem>>, vector<2x32xf32>
    %c8_86 = arith.constant 8 : index
    %c0_87 = arith.constant 0 : index
    %140 = vector.load %arg26[%c8_86, %c0_87] : memref<16x32xf32, #tpu.memory_space<vmem>>, vector<2x32xf32>
    %cst_88 = arith.constant dense<0.000000e+00> : vector<2x32xf32>
    %141 = tpu.matmul %136, %19, %cst_88 {dimension_numbers = #tpu.dot_dimension_numbers<[1], [0], [0], [1], [0, 0, 1, 1], [], []>} : vector<2x32xf32>, vector<32x32xf32>, vector<2x32xf32> -> vector<2x32xf32>
    %cst_89 = arith.constant dense<0.000000e+00> : vector<2x32xf32>
    %142 = tpu.matmul %136, %20, %cst_89 {dimension_numbers = #tpu.dot_dimension_numbers<[1], [0], [0], [1], [0, 0, 1, 1], [], []>} : vector<2x32xf32>, vector<32x32xf32>, vector<2x32xf32> -> vector<2x32xf32>
    %cst_90 = arith.constant dense<0.000000e+00> : vector<2x32xf32>
    %143 = tpu.matmul %136, %21, %cst_90 {dimension_numbers = #tpu.dot_dimension_numbers<[1], [0], [0], [1], [0, 0, 1, 1], [], []>} : vector<2x32xf32>, vector<32x32xf32>, vector<2x32xf32> -> vector<2x32xf32>
    %144 = arith.addf %143, %24 : vector<2x32xf32>
    %145 = arith.addf %138, %141 : vector<2x32xf32>
    %146 = arith.negf %145 : vector<2x32xf32>
    %147 = math.exp %146 : vector<2x32xf32>
    %cst_91 = arith.constant 1.000000e+00 : f32
    %148 = vector.broadcast %cst_91 : f32 to vector<2x32xf32>
    %149 = arith.addf %148, %147 : vector<2x32xf32>
    %150 = arith.divf %148, %149 : vector<2x32xf32>
    %151 = arith.addf %139, %142 : vector<2x32xf32>
    %152 = arith.negf %151 : vector<2x32xf32>
    %153 = math.exp %152 : vector<2x32xf32>
    %cst_92 = arith.constant 1.000000e+00 : f32
    %154 = vector.broadcast %cst_92 : f32 to vector<2x32xf32>
    %155 = arith.addf %154, %153 : vector<2x32xf32>
    %156 = arith.divf %154, %155 : vector<2x32xf32>
    %157 = arith.mulf %150, %144 : vector<2x32xf32>
    %158 = arith.addf %140, %157 : vector<2x32xf32>
    %159 = math.tanh %158 : vector<2x32xf32>
    %cst_93 = arith.constant 1.000000e+00 : f32
    %160 = vector.broadcast %cst_93 : f32 to vector<2x32xf32>
    %161 = arith.subf %160, %156 : vector<2x32xf32>
    %162 = arith.mulf %161, %159 : vector<2x32xf32>
    %163 = arith.mulf %156, %136 : vector<2x32xf32>
    %164 = arith.addf %162, %163 : vector<2x32xf32>
    %c8_94 = arith.constant 8 : index
    %c0_95 = arith.constant 0 : index
    %165 = vector.load %arg27[%c8_94, %c0_95] : memref<16x32xf32, #tpu.memory_space<vmem>>, vector<2x32xf32>
    tpu.vector_store %arg27[%c8_94, %c0_95], %164 {strides = array<i32>} : memref<16x32xf32, #tpu.memory_space<vmem>>, vector<2x32xf32>,
    %c10 = arith.constant 10 : index
    %c0_96 = arith.constant 0 : index
    %166 = vector.load %arg24[%c10, %c0_96] : memref<16x32xf32, #tpu.memory_space<vmem>>, vector<2x32xf32>
    %c10_97 = arith.constant 10 : index
    %c0_98 = arith.constant 0 : index
    %167 = vector.load %arg25[%c10_97, %c0_98] : memref<16x32xf32, #tpu.memory_space<vmem>>, vector<2x32xf32>
    %c10_99 = arith.constant 10 : index
    %c0_100 = arith.constant 0 : index
    %168 = vector.load %arg26[%c10_99, %c0_100] : memref<16x32xf32, #tpu.memory_space<vmem>>, vector<2x32xf32>
    %cst_101 = arith.constant dense<0.000000e+00> : vector<2x32xf32>
    %169 = tpu.matmul %164, %19, %cst_101 {dimension_numbers = #tpu.dot_dimension_numbers<[1], [0], [0], [1], [0, 0, 1, 1], [], []>} : vector<2x32xf32>, vector<32x32xf32>, vector<2x32xf32> -> vector<2x32xf32>
    %cst_102 = arith.constant dense<0.000000e+00> : vector<2x32xf32>
    %170 = tpu.matmul %164, %20, %cst_102 {dimension_numbers = #tpu.dot_dimension_numbers<[1], [0], [0], [1], [0, 0, 1, 1], [], []>} : vector<2x32xf32>, vector<32x32xf32>, vector<2x32xf32> -> vector<2x32xf32>
    %cst_103 = arith.constant dense<0.000000e+00> : vector<2x32xf32>
    %171 = tpu.matmul %164, %21, %cst_103 {dimension_numbers = #tpu.dot_dimension_numbers<[1], [0], [0], [1], [0, 0, 1, 1], [], []>} : vector<2x32xf32>, vector<32x32xf32>, vector<2x32xf32> -> vector<2x32xf32>
    %172 = arith.addf %171, %24 : vector<2x32xf32>
    %173 = arith.addf %166, %169 : vector<2x32xf32>
    %174 = arith.negf %173 : vector<2x32xf32>
    %175 = math.exp %174 : vector<2x32xf32>
    %cst_104 = arith.constant 1.000000e+00 : f32
    %176 = vector.broadcast %cst_104 : f32 to vector<2x32xf32>
    %177 = arith.addf %176, %175 : vector<2x32xf32>
    %178 = arith.divf %176, %177 : vector<2x32xf32>
    %179 = arith.addf %167, %170 : vector<2x32xf32>
    %180 = arith.negf %179 : vector<2x32xf32>
    %181 = math.exp %180 : vector<2x32xf32>
    %cst_105 = arith.constant 1.000000e+00 : f32
    %182 = vector.broadcast %cst_105 : f32 to vector<2x32xf32>
    %183 = arith.addf %182, %181 : vector<2x32xf32>
    %184 = arith.divf %182, %183 : vector<2x32xf32>
    %185 = arith.mulf %178, %172 : vector<2x32xf32>
    %186 = arith.addf %168, %185 : vector<2x32xf32>
    %187 = math.tanh %186 : vector<2x32xf32>
    %cst_106 = arith.constant 1.000000e+00 : f32
    %188 = vector.broadcast %cst_106 : f32 to vector<2x32xf32>
    %189 = arith.subf %188, %184 : vector<2x32xf32>
    %190 = arith.mulf %189, %187 : vector<2x32xf32>
    %191 = arith.mulf %184, %164 : vector<2x32xf32>
    %192 = arith.addf %190, %191 : vector<2x32xf32>
    %c10_107 = arith.constant 10 : index
    %c0_108 = arith.constant 0 : index
    %193 = vector.load %arg27[%c10_107, %c0_108] : memref<16x32xf32, #tpu.memory_space<vmem>>, vector<2x32xf32>
    tpu.vector_store %arg27[%c10_107, %c0_108], %192 {strides = array<i32>} : memref<16x32xf32, #tpu.memory_space<vmem>>, vector<2x32xf32>,
    %c12 = arith.constant 12 : index
    %c0_109 = arith.constant 0 : index
    %194 = vector.load %arg24[%c12, %c0_109] : memref<16x32xf32, #tpu.memory_space<vmem>>, vector<2x32xf32>
    %c12_110 = arith.constant 12 : index
    %c0_111 = arith.constant 0 : index
    %195 = vector.load %arg25[%c12_110, %c0_111] : memref<16x32xf32, #tpu.memory_space<vmem>>, vector<2x32xf32>
    %c12_112 = arith.constant 12 : index
    %c0_113 = arith.constant 0 : index
    %196 = vector.load %arg26[%c12_112, %c0_113] : memref<16x32xf32, #tpu.memory_space<vmem>>, vector<2x32xf32>
    %cst_114 = arith.constant dense<0.000000e+00> : vector<2x32xf32>
    %197 = tpu.matmul %192, %19, %cst_114 {dimension_numbers = #tpu.dot_dimension_numbers<[1], [0], [0], [1], [0, 0, 1, 1], [], []>} : vector<2x32xf32>, vector<32x32xf32>, vector<2x32xf32> -> vector<2x32xf32>
    %cst_115 = arith.constant dense<0.000000e+00> : vector<2x32xf32>
    %198 = tpu.matmul %192, %20, %cst_115 {dimension_numbers = #tpu.dot_dimension_numbers<[1], [0], [0], [1], [0, 0, 1, 1], [], []>} : vector<2x32xf32>, vector<32x32xf32>, vector<2x32xf32> -> vector<2x32xf32>
    %cst_116 = arith.constant dense<0.000000e+00> : vector<2x32xf32>
    %199 = tpu.matmul %192, %21, %cst_116 {dimension_numbers = #tpu.dot_dimension_numbers<[1], [0], [0], [1], [0, 0, 1, 1], [], []>} : vector<2x32xf32>, vector<32x32xf32>, vector<2x32xf32> -> vector<2x32xf32>
    %200 = arith.addf %199, %24 : vector<2x32xf32>
    %201 = arith.addf %194, %197 : vector<2x32xf32>
    %202 = arith.negf %201 : vector<2x32xf32>
    %203 = math.exp %202 : vector<2x32xf32>
    %cst_117 = arith.constant 1.000000e+00 : f32
    %204 = vector.broadcast %cst_117 : f32 to vector<2x32xf32>
    %205 = arith.addf %204, %203 : vector<2x32xf32>
    %206 = arith.divf %204, %205 : vector<2x32xf32>
    %207 = arith.addf %195, %198 : vector<2x32xf32>
    %208 = arith.negf %207 : vector<2x32xf32>
    %209 = math.exp %208 : vector<2x32xf32>
    %cst_118 = arith.constant 1.000000e+00 : f32
    %210 = vector.broadcast %cst_118 : f32 to vector<2x32xf32>
    %211 = arith.addf %210, %209 : vector<2x32xf32>
    %212 = arith.divf %210, %211 : vector<2x32xf32>
    %213 = arith.mulf %206, %200 : vector<2x32xf32>
    %214 = arith.addf %196, %213 : vector<2x32xf32>
    %215 = math.tanh %214 : vector<2x32xf32>
    %cst_119 = arith.constant 1.000000e+00 : f32
    %216 = vector.broadcast %cst_119 : f32 to vector<2x32xf32>
    %217 = arith.subf %216, %212 : vector<2x32xf32>
    %218 = arith.mulf %217, %215 : vector<2x32xf32>
    %219 = arith.mulf %212, %192 : vector<2x32xf32>
    %220 = arith.addf %218, %219 : vector<2x32xf32>
    %c12_120 = arith.constant 12 : index
    %c0_121 = arith.constant 0 : index
    %221 = vector.load %arg27[%c12_120, %c0_121] : memref<16x32xf32, #tpu.memory_space<vmem>>, vector<2x32xf32>
    tpu.vector_store %arg27[%c12_120, %c0_121], %220 {strides = array<i32>} : memref<16x32xf32, #tpu.memory_space<vmem>>, vector<2x32xf32>,
    %c14 = arith.constant 14 : index
    %c0_122 = arith.constant 0 : index
    %222 = vector.load %arg24[%c14, %c0_122] : memref<16x32xf32, #tpu.memory_space<vmem>>, vector<2x32xf32>
    %c14_123 = arith.constant 14 : index
    %c0_124 = arith.constant 0 : index
    %223 = vector.load %arg25[%c14_123, %c0_124] : memref<16x32xf32, #tpu.memory_space<vmem>>, vector<2x32xf32>
    %c14_125 = arith.constant 14 : index
    %c0_126 = arith.constant 0 : index
    %224 = vector.load %arg26[%c14_125, %c0_126] : memref<16x32xf32, #tpu.memory_space<vmem>>, vector<2x32xf32>
    %cst_127 = arith.constant dense<0.000000e+00> : vector<2x32xf32>
    %225 = tpu.matmul %220, %19, %cst_127 {dimension_numbers = #tpu.dot_dimension_numbers<[1], [0], [0], [1], [0, 0, 1, 1], [], []>} : vector<2x32xf32>, vector<32x32xf32>, vector<2x32xf32> -> vector<2x32xf32>
    %cst_128 = arith.constant dense<0.000000e+00> : vector<2x32xf32>
    %226 = tpu.matmul %220, %20, %cst_128 {dimension_numbers = #tpu.dot_dimension_numbers<[1], [0], [0], [1], [0, 0, 1, 1], [], []>} : vector<2x32xf32>, vector<32x32xf32>, vector<2x32xf32> -> vector<2x32xf32>
    %cst_129 = arith.constant dense<0.000000e+00> : vector<2x32xf32>
    %227 = tpu.matmul %220, %21, %cst_129 {dimension_numbers = #tpu.dot_dimension_numbers<[1], [0], [0], [1], [0, 0, 1, 1], [], []>} : vector<2x32xf32>, vector<32x32xf32>, vector<2x32xf32> -> vector<2x32xf32>
    %228 = arith.addf %227, %24 : vector<2x32xf32>
    %229 = arith.addf %222, %225 : vector<2x32xf32>
    %230 = arith.negf %229 : vector<2x32xf32>
    %231 = math.exp %230 : vector<2x32xf32>
    %cst_130 = arith.constant 1.000000e+00 : f32
    %232 = vector.broadcast %cst_130 : f32 to vector<2x32xf32>
    %233 = arith.addf %232, %231 : vector<2x32xf32>
    %234 = arith.divf %232, %233 : vector<2x32xf32>
    %235 = arith.addf %223, %226 : vector<2x32xf32>
    %236 = arith.negf %235 : vector<2x32xf32>
    %237 = math.exp %236 : vector<2x32xf32>
    %cst_131 = arith.constant 1.000000e+00 : f32
    %238 = vector.broadcast %cst_131 : f32 to vector<2x32xf32>
    %239 = arith.addf %238, %237 : vector<2x32xf32>
    %240 = arith.divf %238, %239 : vector<2x32xf32>
    %241 = arith.mulf %234, %228 : vector<2x32xf32>
    %242 = arith.addf %224, %241 : vector<2x32xf32>
    %243 = math.tanh %242 : vector<2x32xf32>
    %cst_132 = arith.constant 1.000000e+00 : f32
    %244 = vector.broadcast %cst_132 : f32 to vector<2x32xf32>
    %245 = arith.subf %244, %240 : vector<2x32xf32>
    %246 = arith.mulf %245, %243 : vector<2x32xf32>
    %247 = arith.mulf %240, %220 : vector<2x32xf32>
    %248 = arith.addf %246, %247 : vector<2x32xf32>
    %c14_133 = arith.constant 14 : index
    %c0_134 = arith.constant 0 : index
    %249 = vector.load %arg27[%c14_133, %c0_134] : memref<16x32xf32, #tpu.memory_space<vmem>>, vector<2x32xf32>
    tpu.vector_store %arg27[%c14_133, %c0_134], %248 {strides = array<i32>} : memref<16x32xf32, #tpu.memory_space<vmem>>, vector<2x32xf32>,
    %c0_135 = arith.constant 0 : index
    %c0_136 = arith.constant 0 : index
    %250 = vector.load %arg27[%c0_135, %c0_136] : memref<16x32xf32, #tpu.memory_space<vmem>>, vector<16x32xf32>
    %c0_137 = arith.constant 0 : index
    %c0_138 = arith.constant 0 : index
    %251 = vector.load %arg11[%c0_137, %c0_138] : memref<32x32xf32, #tpu.memory_space<vmem>>, vector<32x32xf32>
    %cst_139 = arith.constant dense<0.000000e+00> : vector<16x32xf32>
    %252 = tpu.matmul %250, %251, %cst_139 {dimension_numbers = #tpu.dot_dimension_numbers<[1], [0], [0], [1], [0, 0, 1, 1], [], []>} : vector<16x32xf32>, vector<32x32xf32>, vector<16x32xf32> -> vector<16x32xf32>
    %c0_140 = arith.constant 0 : index
    %c0_141 = arith.constant 0 : index
    %253 = vector.load %arg17[%c0_140, %c0_141] : memref<1x32xf32, #tpu.memory_space<vmem>>, vector<1x32xf32>
    %254 = vector.broadcast %253 : vector<1x32xf32> to vector<16x32xf32>
    %255 = arith.addf %252, %254 : vector<16x32xf32>
    %c0_142 = arith.constant 0 : index
    %c0_143 = arith.constant 0 : index
    %256 = vector.load %arg24[%c0_142, %c0_143] : memref<16x32xf32, #tpu.memory_space<vmem>>, vector<16x32xf32>
    tpu.vector_store %arg24[%c0_142, %c0_143], %255 {strides = array<i32>} : memref<16x32xf32, #tpu.memory_space<vmem>>, vector<16x32xf32>,
    %c0_144 = arith.constant 0 : index
    %c0_145 = arith.constant 0 : index
    %257 = vector.load %arg12[%c0_144, %c0_145] : memref<32x32xf32, #tpu.memory_space<vmem>>, vector<32x32xf32>
    %cst_146 = arith.constant dense<0.000000e+00> : vector<16x32xf32>
    %258 = tpu.matmul %250, %257, %cst_146 {dimension_numbers = #tpu.dot_dimension_numbers<[1], [0], [0], [1], [0, 0, 1, 1], [], []>} : vector<16x32xf32>, vector<32x32xf32>, vector<16x32xf32> -> vector<16x32xf32>
    %c0_147 = arith.constant 0 : index
    %c0_148 = arith.constant 0 : index
    %259 = vector.load %arg18[%c0_147, %c0_148] : memref<1x32xf32, #tpu.memory_space<vmem>>, vector<1x32xf32>
    %260 = vector.broadcast %259 : vector<1x32xf32> to vector<16x32xf32>
    %261 = arith.addf %258, %260 : vector<16x32xf32>
    %c0_149 = arith.constant 0 : index
    %c0_150 = arith.constant 0 : index
    %262 = vector.load %arg25[%c0_149, %c0_150] : memref<16x32xf32, #tpu.memory_space<vmem>>, vector<16x32xf32>
    tpu.vector_store %arg25[%c0_149, %c0_150], %261 {strides = array<i32>} : memref<16x32xf32, #tpu.memory_space<vmem>>, vector<16x32xf32>,
    %c0_151 = arith.constant 0 : index
    %c0_152 = arith.constant 0 : index
    %263 = vector.load %arg13[%c0_151, %c0_152] : memref<32x32xf32, #tpu.memory_space<vmem>>, vector<32x32xf32>
    %cst_153 = arith.constant dense<0.000000e+00> : vector<16x32xf32>
    %264 = tpu.matmul %250, %263, %cst_153 {dimension_numbers = #tpu.dot_dimension_numbers<[1], [0], [0], [1], [0, 0, 1, 1], [], []>} : vector<16x32xf32>, vector<32x32xf32>, vector<16x32xf32> -> vector<16x32xf32>
    %c0_154 = arith.constant 0 : index
    %c0_155 = arith.constant 0 : index
    %265 = vector.load %arg19[%c0_154, %c0_155] : memref<1x32xf32, #tpu.memory_space<vmem>>, vector<1x32xf32>
    %266 = vector.broadcast %265 : vector<1x32xf32> to vector<16x32xf32>
    %267 = arith.addf %264, %266 : vector<16x32xf32>
    %c0_156 = arith.constant 0 : index
    %c0_157 = arith.constant 0 : index
    %268 = vector.load %arg26[%c0_156, %c0_157] : memref<16x32xf32, #tpu.memory_space<vmem>>, vector<16x32xf32>
    tpu.vector_store %arg26[%c0_156, %c0_157], %267 {strides = array<i32>} : memref<16x32xf32, #tpu.memory_space<vmem>>, vector<16x32xf32>,
    %c0_158 = arith.constant 0 : index
    %c0_159 = arith.constant 0 : index
    %269 = vector.load %arg14[%c0_158, %c0_159] : memref<32x32xf32, #tpu.memory_space<vmem>>, vector<32x32xf32>
    %c0_160 = arith.constant 0 : index
    %c0_161 = arith.constant 0 : index
    %270 = vector.load %arg15[%c0_160, %c0_161] : memref<32x32xf32, #tpu.memory_space<vmem>>, vector<32x32xf32>
    %c0_162 = arith.constant 0 : index
    %c0_163 = arith.constant 0 : index
    %271 = vector.load %arg16[%c0_162, %c0_163] : memref<32x32xf32, #tpu.memory_space<vmem>>, vector<32x32xf32>
    %c0_164 = arith.constant 0 : index
    %c0_165 = arith.constant 0 : index
    %272 = vector.load %arg20[%c0_164, %c0_165] : memref<1x32xf32, #tpu.memory_space<vmem>>, vector<1x32xf32>
    %273 = vector.shape_cast %272 : vector<1x32xf32> to vector<1x32xf32>
    %274 = vector.broadcast %273 : vector<1x32xf32> to vector<2x32xf32>
    %cst_166 = arith.constant 0.000000e+00 : f32
    %275 = vector.broadcast %cst_166 : f32 to vector<2x32xf32>
    %c0_167 = arith.constant 0 : index
    %c0_168 = arith.constant 0 : index
    %276 = vector.load %arg24[%c0_167, %c0_168] : memref<16x32xf32, #tpu.memory_space<vmem>>, vector<2x32xf32>
    %c0_169 = arith.constant 0 : index
    %c0_170 = arith.constant 0 : index
    %277 = vector.load %arg25[%c0_169, %c0_170] : memref<16x32xf32, #tpu.memory_space<vmem>>, vector<2x32xf32>
    %c0_171 = arith.constant 0 : index
    %c0_172 = arith.constant 0 : index
    %278 = vector.load %arg26[%c0_171, %c0_172] : memref<16x32xf32, #tpu.memory_space<vmem>>, vector<2x32xf32>
    %cst_173 = arith.constant dense<0.000000e+00> : vector<2x32xf32>
    %279 = tpu.matmul %275, %269, %cst_173 {dimension_numbers = #tpu.dot_dimension_numbers<[1], [0], [0], [1], [0, 0, 1, 1], [], []>} : vector<2x32xf32>, vector<32x32xf32>, vector<2x32xf32> -> vector<2x32xf32>
    %cst_174 = arith.constant dense<0.000000e+00> : vector<2x32xf32>
    %280 = tpu.matmul %275, %270, %cst_174 {dimension_numbers = #tpu.dot_dimension_numbers<[1], [0], [0], [1], [0, 0, 1, 1], [], []>} : vector<2x32xf32>, vector<32x32xf32>, vector<2x32xf32> -> vector<2x32xf32>
    %cst_175 = arith.constant dense<0.000000e+00> : vector<2x32xf32>
    %281 = tpu.matmul %275, %271, %cst_175 {dimension_numbers = #tpu.dot_dimension_numbers<[1], [0], [0], [1], [0, 0, 1, 1], [], []>} : vector<2x32xf32>, vector<32x32xf32>, vector<2x32xf32> -> vector<2x32xf32>
    %282 = arith.addf %281, %274 : vector<2x32xf32>
    %283 = arith.addf %276, %279 : vector<2x32xf32>
    %284 = arith.negf %283 : vector<2x32xf32>
    %285 = math.exp %284 : vector<2x32xf32>
    %cst_176 = arith.constant 1.000000e+00 : f32
    %286 = vector.broadcast %cst_176 : f32 to vector<2x32xf32>
    %287 = arith.addf %286, %285 : vector<2x32xf32>
    %288 = arith.divf %286, %287 : vector<2x32xf32>
    %289 = arith.addf %277, %280 : vector<2x32xf32>
    %290 = arith.negf %289 : vector<2x32xf32>
    %291 = math.exp %290 : vector<2x32xf32>
    %cst_177 = arith.constant 1.000000e+00 : f32
    %292 = vector.broadcast %cst_177 : f32 to vector<2x32xf32>
    %293 = arith.addf %292, %291 : vector<2x32xf32>
    %294 = arith.divf %292, %293 : vector<2x32xf32>
    %295 = arith.mulf %288, %282 : vector<2x32xf32>
    %296 = arith.addf %278, %295 : vector<2x32xf32>
    %297 = math.tanh %296 : vector<2x32xf32>
    %cst_178 = arith.constant 1.000000e+00 : f32
    %298 = vector.broadcast %cst_178 : f32 to vector<2x32xf32>
    %299 = arith.subf %298, %294 : vector<2x32xf32>
    %300 = arith.mulf %299, %297 : vector<2x32xf32>
    %301 = arith.mulf %294, %275 : vector<2x32xf32>
    %302 = arith.addf %300, %301 : vector<2x32xf32>
    %c2_179 = arith.constant 2 : index
    %c0_180 = arith.constant 0 : index
    %303 = vector.load %arg24[%c2_179, %c0_180] : memref<16x32xf32, #tpu.memory_space<vmem>>, vector<2x32xf32>
    %c2_181 = arith.constant 2 : index
    %c0_182 = arith.constant 0 : index
    %304 = vector.load %arg25[%c2_181, %c0_182] : memref<16x32xf32, #tpu.memory_space<vmem>>, vector<2x32xf32>
    %c2_183 = arith.constant 2 : index
    %c0_184 = arith.constant 0 : index
    %305 = vector.load %arg26[%c2_183, %c0_184] : memref<16x32xf32, #tpu.memory_space<vmem>>, vector<2x32xf32>
    %cst_185 = arith.constant dense<0.000000e+00> : vector<2x32xf32>
    %306 = tpu.matmul %302, %269, %cst_185 {dimension_numbers = #tpu.dot_dimension_numbers<[1], [0], [0], [1], [0, 0, 1, 1], [], []>} : vector<2x32xf32>, vector<32x32xf32>, vector<2x32xf32> -> vector<2x32xf32>
    %cst_186 = arith.constant dense<0.000000e+00> : vector<2x32xf32>
    %307 = tpu.matmul %302, %270, %cst_186 {dimension_numbers = #tpu.dot_dimension_numbers<[1], [0], [0], [1], [0, 0, 1, 1], [], []>} : vector<2x32xf32>, vector<32x32xf32>, vector<2x32xf32> -> vector<2x32xf32>
    %cst_187 = arith.constant dense<0.000000e+00> : vector<2x32xf32>
    %308 = tpu.matmul %302, %271, %cst_187 {dimension_numbers = #tpu.dot_dimension_numbers<[1], [0], [0], [1], [0, 0, 1, 1], [], []>} : vector<2x32xf32>, vector<32x32xf32>, vector<2x32xf32> -> vector<2x32xf32>
    %309 = arith.addf %308, %274 : vector<2x32xf32>
    %310 = arith.addf %303, %306 : vector<2x32xf32>
    %311 = arith.negf %310 : vector<2x32xf32>
    %312 = math.exp %311 : vector<2x32xf32>
    %cst_188 = arith.constant 1.000000e+00 : f32
    %313 = vector.broadcast %cst_188 : f32 to vector<2x32xf32>
    %314 = arith.addf %313, %312 : vector<2x32xf32>
    %315 = arith.divf %313, %314 : vector<2x32xf32>
    %316 = arith.addf %304, %307 : vector<2x32xf32>
    %317 = arith.negf %316 : vector<2x32xf32>
    %318 = math.exp %317 : vector<2x32xf32>
    %cst_189 = arith.constant 1.000000e+00 : f32
    %319 = vector.broadcast %cst_189 : f32 to vector<2x32xf32>
    %320 = arith.addf %319, %318 : vector<2x32xf32>
    %321 = arith.divf %319, %320 : vector<2x32xf32>
    %322 = arith.mulf %315, %309 : vector<2x32xf32>
    %323 = arith.addf %305, %322 : vector<2x32xf32>
    %324 = math.tanh %323 : vector<2x32xf32>
    %cst_190 = arith.constant 1.000000e+00 : f32
    %325 = vector.broadcast %cst_190 : f32 to vector<2x32xf32>
    %326 = arith.subf %325, %321 : vector<2x32xf32>
    %327 = arith.mulf %326, %324 : vector<2x32xf32>
    %328 = arith.mulf %321, %302 : vector<2x32xf32>
    %329 = arith.addf %327, %328 : vector<2x32xf32>
    %c4_191 = arith.constant 4 : index
    %c0_192 = arith.constant 0 : index
    %330 = vector.load %arg24[%c4_191, %c0_192] : memref<16x32xf32, #tpu.memory_space<vmem>>, vector<2x32xf32>
    %c4_193 = arith.constant 4 : index
    %c0_194 = arith.constant 0 : index
    %331 = vector.load %arg25[%c4_193, %c0_194] : memref<16x32xf32, #tpu.memory_space<vmem>>, vector<2x32xf32>
    %c4_195 = arith.constant 4 : index
    %c0_196 = arith.constant 0 : index
    %332 = vector.load %arg26[%c4_195, %c0_196] : memref<16x32xf32, #tpu.memory_space<vmem>>, vector<2x32xf32>
    %cst_197 = arith.constant dense<0.000000e+00> : vector<2x32xf32>
    %333 = tpu.matmul %329, %269, %cst_197 {dimension_numbers = #tpu.dot_dimension_numbers<[1], [0], [0], [1], [0, 0, 1, 1], [], []>} : vector<2x32xf32>, vector<32x32xf32>, vector<2x32xf32> -> vector<2x32xf32>
    %cst_198 = arith.constant dense<0.000000e+00> : vector<2x32xf32>
    %334 = tpu.matmul %329, %270, %cst_198 {dimension_numbers = #tpu.dot_dimension_numbers<[1], [0], [0], [1], [0, 0, 1, 1], [], []>} : vector<2x32xf32>, vector<32x32xf32>, vector<2x32xf32> -> vector<2x32xf32>
    %cst_199 = arith.constant dense<0.000000e+00> : vector<2x32xf32>
    %335 = tpu.matmul %329, %271, %cst_199 {dimension_numbers = #tpu.dot_dimension_numbers<[1], [0], [0], [1], [0, 0, 1, 1], [], []>} : vector<2x32xf32>, vector<32x32xf32>, vector<2x32xf32> -> vector<2x32xf32>
    %336 = arith.addf %335, %274 : vector<2x32xf32>
    %337 = arith.addf %330, %333 : vector<2x32xf32>
    %338 = arith.negf %337 : vector<2x32xf32>
    %339 = math.exp %338 : vector<2x32xf32>
    %cst_200 = arith.constant 1.000000e+00 : f32
    %340 = vector.broadcast %cst_200 : f32 to vector<2x32xf32>
    %341 = arith.addf %340, %339 : vector<2x32xf32>
    %342 = arith.divf %340, %341 : vector<2x32xf32>
    %343 = arith.addf %331, %334 : vector<2x32xf32>
    %344 = arith.negf %343 : vector<2x32xf32>
    %345 = math.exp %344 : vector<2x32xf32>
    %cst_201 = arith.constant 1.000000e+00 : f32
    %346 = vector.broadcast %cst_201 : f32 to vector<2x32xf32>
    %347 = arith.addf %346, %345 : vector<2x32xf32>
    %348 = arith.divf %346, %347 : vector<2x32xf32>
    %349 = arith.mulf %342, %336 : vector<2x32xf32>
    %350 = arith.addf %332, %349 : vector<2x32xf32>
    %351 = math.tanh %350 : vector<2x32xf32>
    %cst_202 = arith.constant 1.000000e+00 : f32
    %352 = vector.broadcast %cst_202 : f32 to vector<2x32xf32>
    %353 = arith.subf %352, %348 : vector<2x32xf32>
    %354 = arith.mulf %353, %351 : vector<2x32xf32>
    %355 = arith.mulf %348, %329 : vector<2x32xf32>
    %356 = arith.addf %354, %355 : vector<2x32xf32>
    %c6_203 = arith.constant 6 : index
    %c0_204 = arith.constant 0 : index
    %357 = vector.load %arg24[%c6_203, %c0_204] : memref<16x32xf32, #tpu.memory_space<vmem>>, vector<2x32xf32>
    %c6_205 = arith.constant 6 : index
    %c0_206 = arith.constant 0 : index
    %358 = vector.load %arg25[%c6_205, %c0_206] : memref<16x32xf32, #tpu.memory_space<vmem>>, vector<2x32xf32>
    %c6_207 = arith.constant 6 : index
    %c0_208 = arith.constant 0 : index
    %359 = vector.load %arg26[%c6_207, %c0_208] : memref<16x32xf32, #tpu.memory_space<vmem>>, vector<2x32xf32>
    %cst_209 = arith.constant dense<0.000000e+00> : vector<2x32xf32>
    %360 = tpu.matmul %356, %269, %cst_209 {dimension_numbers = #tpu.dot_dimension_numbers<[1], [0], [0], [1], [0, 0, 1, 1], [], []>} : vector<2x32xf32>, vector<32x32xf32>, vector<2x32xf32> -> vector<2x32xf32>
    %cst_210 = arith.constant dense<0.000000e+00> : vector<2x32xf32>
    %361 = tpu.matmul %356, %270, %cst_210 {dimension_numbers = #tpu.dot_dimension_numbers<[1], [0], [0], [1], [0, 0, 1, 1], [], []>} : vector<2x32xf32>, vector<32x32xf32>, vector<2x32xf32> -> vector<2x32xf32>
    %cst_211 = arith.constant dense<0.000000e+00> : vector<2x32xf32>
    %362 = tpu.matmul %356, %271, %cst_211 {dimension_numbers = #tpu.dot_dimension_numbers<[1], [0], [0], [1], [0, 0, 1, 1], [], []>} : vector<2x32xf32>, vector<32x32xf32>, vector<2x32xf32> -> vector<2x32xf32>
    %363 = arith.addf %362, %274 : vector<2x32xf32>
    %364 = arith.addf %357, %360 : vector<2x32xf32>
    %365 = arith.negf %364 : vector<2x32xf32>
    %366 = math.exp %365 : vector<2x32xf32>
    %cst_212 = arith.constant 1.000000e+00 : f32
    %367 = vector.broadcast %cst_212 : f32 to vector<2x32xf32>
    %368 = arith.addf %367, %366 : vector<2x32xf32>
    %369 = arith.divf %367, %368 : vector<2x32xf32>
    %370 = arith.addf %358, %361 : vector<2x32xf32>
    %371 = arith.negf %370 : vector<2x32xf32>
    %372 = math.exp %371 : vector<2x32xf32>
    %cst_213 = arith.constant 1.000000e+00 : f32
    %373 = vector.broadcast %cst_213 : f32 to vector<2x32xf32>
    %374 = arith.addf %373, %372 : vector<2x32xf32>
    %375 = arith.divf %373, %374 : vector<2x32xf32>
    %376 = arith.mulf %369, %363 : vector<2x32xf32>
    %377 = arith.addf %359, %376 : vector<2x32xf32>
    %378 = math.tanh %377 : vector<2x32xf32>
    %cst_214 = arith.constant 1.000000e+00 : f32
    %379 = vector.broadcast %cst_214 : f32 to vector<2x32xf32>
    %380 = arith.subf %379, %375 : vector<2x32xf32>
    %381 = arith.mulf %380, %378 : vector<2x32xf32>
    %382 = arith.mulf %375, %356 : vector<2x32xf32>
    %383 = arith.addf %381, %382 : vector<2x32xf32>
    %c8_215 = arith.constant 8 : index
    %c0_216 = arith.constant 0 : index
    %384 = vector.load %arg24[%c8_215, %c0_216] : memref<16x32xf32, #tpu.memory_space<vmem>>, vector<2x32xf32>
    %c8_217 = arith.constant 8 : index
    %c0_218 = arith.constant 0 : index
    %385 = vector.load %arg25[%c8_217, %c0_218] : memref<16x32xf32, #tpu.memory_space<vmem>>, vector<2x32xf32>
    %c8_219 = arith.constant 8 : index
    %c0_220 = arith.constant 0 : index
    %386 = vector.load %arg26[%c8_219, %c0_220] : memref<16x32xf32, #tpu.memory_space<vmem>>, vector<2x32xf32>
    %cst_221 = arith.constant dense<0.000000e+00> : vector<2x32xf32>
    %387 = tpu.matmul %383, %269, %cst_221 {dimension_numbers = #tpu.dot_dimension_numbers<[1], [0], [0], [1], [0, 0, 1, 1], [], []>} : vector<2x32xf32>, vector<32x32xf32>, vector<2x32xf32> -> vector<2x32xf32>
    %cst_222 = arith.constant dense<0.000000e+00> : vector<2x32xf32>
    %388 = tpu.matmul %383, %270, %cst_222 {dimension_numbers = #tpu.dot_dimension_numbers<[1], [0], [0], [1], [0, 0, 1, 1], [], []>} : vector<2x32xf32>, vector<32x32xf32>, vector<2x32xf32> -> vector<2x32xf32>
    %cst_223 = arith.constant dense<0.000000e+00> : vector<2x32xf32>
    %389 = tpu.matmul %383, %271, %cst_223 {dimension_numbers = #tpu.dot_dimension_numbers<[1], [0], [0], [1], [0, 0, 1, 1], [], []>} : vector<2x32xf32>, vector<32x32xf32>, vector<2x32xf32> -> vector<2x32xf32>
    %390 = arith.addf %389, %274 : vector<2x32xf32>
    %391 = arith.addf %384, %387 : vector<2x32xf32>
    %392 = arith.negf %391 : vector<2x32xf32>
    %393 = math.exp %392 : vector<2x32xf32>
    %cst_224 = arith.constant 1.000000e+00 : f32
    %394 = vector.broadcast %cst_224 : f32 to vector<2x32xf32>
    %395 = arith.addf %394, %393 : vector<2x32xf32>
    %396 = arith.divf %394, %395 : vector<2x32xf32>
    %397 = arith.addf %385, %388 : vector<2x32xf32>
    %398 = arith.negf %397 : vector<2x32xf32>
    %399 = math.exp %398 : vector<2x32xf32>
    %cst_225 = arith.constant 1.000000e+00 : f32
    %400 = vector.broadcast %cst_225 : f32 to vector<2x32xf32>
    %401 = arith.addf %400, %399 : vector<2x32xf32>
    %402 = arith.divf %400, %401 : vector<2x32xf32>
    %403 = arith.mulf %396, %390 : vector<2x32xf32>
    %404 = arith.addf %386, %403 : vector<2x32xf32>
    %405 = math.tanh %404 : vector<2x32xf32>
    %cst_226 = arith.constant 1.000000e+00 : f32
    %406 = vector.broadcast %cst_226 : f32 to vector<2x32xf32>
    %407 = arith.subf %406, %402 : vector<2x32xf32>
    %408 = arith.mulf %407, %405 : vector<2x32xf32>
    %409 = arith.mulf %402, %383 : vector<2x32xf32>
    %410 = arith.addf %408, %409 : vector<2x32xf32>
    %c10_227 = arith.constant 10 : index
    %c0_228 = arith.constant 0 : index
    %411 = vector.load %arg24[%c10_227, %c0_228] : memref<16x32xf32, #tpu.memory_space<vmem>>, vector<2x32xf32>
    %c10_229 = arith.constant 10 : index
    %c0_230 = arith.constant 0 : index
    %412 = vector.load %arg25[%c10_229, %c0_230] : memref<16x32xf32, #tpu.memory_space<vmem>>, vector<2x32xf32>
    %c10_231 = arith.constant 10 : index
    %c0_232 = arith.constant 0 : index
    %413 = vector.load %arg26[%c10_231, %c0_232] : memref<16x32xf32, #tpu.memory_space<vmem>>, vector<2x32xf32>
    %cst_233 = arith.constant dense<0.000000e+00> : vector<2x32xf32>
    %414 = tpu.matmul %410, %269, %cst_233 {dimension_numbers = #tpu.dot_dimension_numbers<[1], [0], [0], [1], [0, 0, 1, 1], [], []>} : vector<2x32xf32>, vector<32x32xf32>, vector<2x32xf32> -> vector<2x32xf32>
    %cst_234 = arith.constant dense<0.000000e+00> : vector<2x32xf32>
    %415 = tpu.matmul %410, %270, %cst_234 {dimension_numbers = #tpu.dot_dimension_numbers<[1], [0], [0], [1], [0, 0, 1, 1], [], []>} : vector<2x32xf32>, vector<32x32xf32>, vector<2x32xf32> -> vector<2x32xf32>
    %cst_235 = arith.constant dense<0.000000e+00> : vector<2x32xf32>
    %416 = tpu.matmul %410, %271, %cst_235 {dimension_numbers = #tpu.dot_dimension_numbers<[1], [0], [0], [1], [0, 0, 1, 1], [], []>} : vector<2x32xf32>, vector<32x32xf32>, vector<2x32xf32> -> vector<2x32xf32>
    %417 = arith.addf %416, %274 : vector<2x32xf32>
    %418 = arith.addf %411, %414 : vector<2x32xf32>
    %419 = arith.negf %418 : vector<2x32xf32>
    %420 = math.exp %419 : vector<2x32xf32>
    %cst_236 = arith.constant 1.000000e+00 : f32
    %421 = vector.broadcast %cst_236 : f32 to vector<2x32xf32>
    %422 = arith.addf %421, %420 : vector<2x32xf32>
    %423 = arith.divf %421, %422 : vector<2x32xf32>
    %424 = arith.addf %412, %415 : vector<2x32xf32>
    %425 = arith.negf %424 : vector<2x32xf32>
    %426 = math.exp %425 : vector<2x32xf32>
    %cst_237 = arith.constant 1.000000e+00 : f32
    %427 = vector.broadcast %cst_237 : f32 to vector<2x32xf32>
    %428 = arith.addf %427, %426 : vector<2x32xf32>
    %429 = arith.divf %427, %428 : vector<2x32xf32>
    %430 = arith.mulf %423, %417 : vector<2x32xf32>
    %431 = arith.addf %413, %430 : vector<2x32xf32>
    %432 = math.tanh %431 : vector<2x32xf32>
    %cst_238 = arith.constant 1.000000e+00 : f32
    %433 = vector.broadcast %cst_238 : f32 to vector<2x32xf32>
    %434 = arith.subf %433, %429 : vector<2x32xf32>
    %435 = arith.mulf %434, %432 : vector<2x32xf32>
    %436 = arith.mulf %429, %410 : vector<2x32xf32>
    %437 = arith.addf %435, %436 : vector<2x32xf32>
    %c12_239 = arith.constant 12 : index
    %c0_240 = arith.constant 0 : index
    %438 = vector.load %arg24[%c12_239, %c0_240] : memref<16x32xf32, #tpu.memory_space<vmem>>, vector<2x32xf32>
    %c12_241 = arith.constant 12 : index
    %c0_242 = arith.constant 0 : index
    %439 = vector.load %arg25[%c12_241, %c0_242] : memref<16x32xf32, #tpu.memory_space<vmem>>, vector<2x32xf32>
    %c12_243 = arith.constant 12 : index
    %c0_244 = arith.constant 0 : index
    %440 = vector.load %arg26[%c12_243, %c0_244] : memref<16x32xf32, #tpu.memory_space<vmem>>, vector<2x32xf32>
    %cst_245 = arith.constant dense<0.000000e+00> : vector<2x32xf32>
    %441 = tpu.matmul %437, %269, %cst_245 {dimension_numbers = #tpu.dot_dimension_numbers<[1], [0], [0], [1], [0, 0, 1, 1], [], []>} : vector<2x32xf32>, vector<32x32xf32>, vector<2x32xf32> -> vector<2x32xf32>
    %cst_246 = arith.constant dense<0.000000e+00> : vector<2x32xf32>
    %442 = tpu.matmul %437, %270, %cst_246 {dimension_numbers = #tpu.dot_dimension_numbers<[1], [0], [0], [1], [0, 0, 1, 1], [], []>} : vector<2x32xf32>, vector<32x32xf32>, vector<2x32xf32> -> vector<2x32xf32>
    %cst_247 = arith.constant dense<0.000000e+00> : vector<2x32xf32>
    %443 = tpu.matmul %437, %271, %cst_247 {dimension_numbers = #tpu.dot_dimension_numbers<[1], [0], [0], [1], [0, 0, 1, 1], [], []>} : vector<2x32xf32>, vector<32x32xf32>, vector<2x32xf32> -> vector<2x32xf32>
    %444 = arith.addf %443, %274 : vector<2x32xf32>
    %445 = arith.addf %438, %441 : vector<2x32xf32>
    %446 = arith.negf %445 : vector<2x32xf32>
    %447 = math.exp %446 : vector<2x32xf32>
    %cst_248 = arith.constant 1.000000e+00 : f32
    %448 = vector.broadcast %cst_248 : f32 to vector<2x32xf32>
    %449 = arith.addf %448, %447 : vector<2x32xf32>
    %450 = arith.divf %448, %449 : vector<2x32xf32>
    %451 = arith.addf %439, %442 : vector<2x32xf32>
    %452 = arith.negf %451 : vector<2x32xf32>
    %453 = math.exp %452 : vector<2x32xf32>
    %cst_249 = arith.constant 1.000000e+00 : f32
    %454 = vector.broadcast %cst_249 : f32 to vector<2x32xf32>
    %455 = arith.addf %454, %453 : vector<2x32xf32>
    %456 = arith.divf %454, %455 : vector<2x32xf32>
    %457 = arith.mulf %450, %444 : vector<2x32xf32>
    %458 = arith.addf %440, %457 : vector<2x32xf32>
    %459 = math.tanh %458 : vector<2x32xf32>
    %cst_250 = arith.constant 1.000000e+00 : f32
    %460 = vector.broadcast %cst_250 : f32 to vector<2x32xf32>
    %461 = arith.subf %460, %456 : vector<2x32xf32>
    %462 = arith.mulf %461, %459 : vector<2x32xf32>
    %463 = arith.mulf %456, %437 : vector<2x32xf32>
    %464 = arith.addf %462, %463 : vector<2x32xf32>
    %c14_251 = arith.constant 14 : index
    %c0_252 = arith.constant 0 : index
    %465 = vector.load %arg24[%c14_251, %c0_252] : memref<16x32xf32, #tpu.memory_space<vmem>>, vector<2x32xf32>
    %c14_253 = arith.constant 14 : index
    %c0_254 = arith.constant 0 : index
    %466 = vector.load %arg25[%c14_253, %c0_254] : memref<16x32xf32, #tpu.memory_space<vmem>>, vector<2x32xf32>
    %c14_255 = arith.constant 14 : index
    %c0_256 = arith.constant 0 : index
    %467 = vector.load %arg26[%c14_255, %c0_256] : memref<16x32xf32, #tpu.memory_space<vmem>>, vector<2x32xf32>
    %cst_257 = arith.constant dense<0.000000e+00> : vector<2x32xf32>
    %468 = tpu.matmul %464, %269, %cst_257 {dimension_numbers = #tpu.dot_dimension_numbers<[1], [0], [0], [1], [0, 0, 1, 1], [], []>} : vector<2x32xf32>, vector<32x32xf32>, vector<2x32xf32> -> vector<2x32xf32>
    %cst_258 = arith.constant dense<0.000000e+00> : vector<2x32xf32>
    %469 = tpu.matmul %464, %270, %cst_258 {dimension_numbers = #tpu.dot_dimension_numbers<[1], [0], [0], [1], [0, 0, 1, 1], [], []>} : vector<2x32xf32>, vector<32x32xf32>, vector<2x32xf32> -> vector<2x32xf32>
    %cst_259 = arith.constant dense<0.000000e+00> : vector<2x32xf32>
    %470 = tpu.matmul %464, %271, %cst_259 {dimension_numbers = #tpu.dot_dimension_numbers<[1], [0], [0], [1], [0, 0, 1, 1], [], []>} : vector<2x32xf32>, vector<32x32xf32>, vector<2x32xf32> -> vector<2x32xf32>
    %471 = arith.addf %470, %274 : vector<2x32xf32>
    %472 = arith.addf %465, %468 : vector<2x32xf32>
    %473 = arith.negf %472 : vector<2x32xf32>
    %474 = math.exp %473 : vector<2x32xf32>
    %cst_260 = arith.constant 1.000000e+00 : f32
    %475 = vector.broadcast %cst_260 : f32 to vector<2x32xf32>
    %476 = arith.addf %475, %474 : vector<2x32xf32>
    %477 = arith.divf %475, %476 : vector<2x32xf32>
    %478 = arith.addf %466, %469 : vector<2x32xf32>
    %479 = arith.negf %478 : vector<2x32xf32>
    %480 = math.exp %479 : vector<2x32xf32>
    %cst_261 = arith.constant 1.000000e+00 : f32
    %481 = vector.broadcast %cst_261 : f32 to vector<2x32xf32>
    %482 = arith.addf %481, %480 : vector<2x32xf32>
    %483 = arith.divf %481, %482 : vector<2x32xf32>
    %484 = arith.mulf %477, %471 : vector<2x32xf32>
    %485 = arith.addf %467, %484 : vector<2x32xf32>
    %486 = math.tanh %485 : vector<2x32xf32>
    %cst_262 = arith.constant 1.000000e+00 : f32
    %487 = vector.broadcast %cst_262 : f32 to vector<2x32xf32>
    %488 = arith.subf %487, %483 : vector<2x32xf32>
    %489 = arith.mulf %488, %486 : vector<2x32xf32>
    %490 = arith.mulf %483, %464 : vector<2x32xf32>
    %491 = arith.addf %489, %490 : vector<2x32xf32>
    %c0_263 = arith.constant 0 : index
    %c0_264 = arith.constant 0 : index
    %492 = vector.load %arg21[%c0_263, %c0_264] : memref<32x1xf32, #tpu.memory_space<vmem>>, vector<32x1xf32>
    %cst_265 = arith.constant dense<0.000000e+00> : vector<2x1xf32>
    %493 = tpu.matmul %491, %492, %cst_265 {dimension_numbers = #tpu.dot_dimension_numbers<[1], [0], [0], [1], [0, 0, 1, 1], [], []>} : vector<2x32xf32>, vector<32x1xf32>, vector<2x1xf32> -> vector<2x1xf32>
    %c0_266 = arith.constant 0 : index
    %c0_267 = arith.constant 0 : index
    %494 = vector.load %arg22[%c0_266, %c0_267] : memref<1x1xf32, #tpu.memory_space<vmem>>, vector<1x1xf32>
    %495 = vector.broadcast %494 : vector<1x1xf32> to vector<2x1xf32>
    %496 = arith.addf %493, %495 : vector<2x1xf32>
    %c0_268 = arith.constant 0 : index
    %c0_269 = arith.constant 0 : index
    %497 = vector.load %arg23[%c0_268, %c0_269] : memref<2x1xf32, #tpu.memory_space<vmem>>, vector<2x1xf32>
    tpu.vector_store %arg23[%c0_268, %c0_269], %496 {strides = array<i32>} : memref<2x1xf32, #tpu.memory_space<vmem>>, vector<2x1xf32>,
    return
  }
}

</mosaic_0001>

<bundles_post_ra>
// kernel: tpu_custom_call.1
= control target key start
LH: loop header
LB: loop body
LE: loop exit
PB: predicated region body
PF: predicated region fallthrough
CT: control target
= control target key end

     0   :  { %s3680_s0 = inlined_call_operand.vmem [shape: f32[16,4], index: 0, kind: input, shape index: {}]   ;;  %s3681_s1 = inlined_call_operand.hbm [shape: f32[4,32], index: 1, kind: input, shape index: {}]   ;;  %s3682_s2 = inlined_call_operand.hbm [shape: f32[4,32], index: 2, kind: input, shape index: {}]   ;;  %s3683_s3 = inlined_call_operand.hbm [shape: f32[4,32], index: 3, kind: input, shape index: {}]   ;;  %s3684_s4 = inlined_call_operand.vmem [shape: f32[32,32], index: 4, kind: input, shape index: {}]   ;;  %s3685_s5 = inlined_call_operand.hbm [shape: f32[32,32], index: 5, kind: input, shape index: {}]   ;;  %s3686_s6 = inlined_call_operand.hbm [shape: f32[32,32], index: 6, kind: input, shape index: {}]   ;;  %s3687_s7 = inlined_call_operand.vmem [shape: f32[1,32], index: 7, kind: input, shape index: {}]   ;;  %s3688_s8 = inlined_call_operand.hbm [shape: f32[1,32], index: 8, kind: input, shape index: {}]   ;;  %s3689_s9 = inlined_call_operand.hbm [shape: f32[1,32], index: 9, kind: input, shape index: {}]   ;;  %s3690_s10 = inlined_call_operand.hbm [shape: f32[1,32], index: 10, kind: input, shape index: {}]   ;;  %s3691_s11 = inlined_call_operand.hbm [shape: f32[32,32], index: 11, kind: input, shape index: {}]   ;;  %s3692_s12 = inlined_call_operand.vmem [shape: f32[32,32], index: 12, kind: input, shape index: {}]   ;;  %s3693_s13 = inlined_call_operand.hbm [shape: f32[32,32], index: 13, kind: input, shape index: {}]   ;;  %s3694_s14 = inlined_call_operand.hbm [shape: f32[32,32], index: 14, kind: input, shape index: {}]   ;;  %s3695_s15 = inlined_call_operand.hbm [shape: f32[32,32], index: 15, kind: input, shape index: {}]   ;;  %s3696_s16 = inlined_call_operand.hbm [shape: f32[32,32], index: 16, kind: input, shape index: {}]   ;;  %s3697_s17 = inlined_call_operand.vmem [shape: f32[1,32], index: 17, kind: input, shape index: {}]   ;;  %s3698_s18 = inlined_call_operand.vmem [shape: f32[1,32], index: 18, kind: input, shape index: {}]   ;;  %s3699_s19 = inlined_call_operand.vmem [shape: f32[1,32], index: 19, kind: input, shape index: {}]   ;;  %s3700_s20 = inlined_call_operand.vmem [shape: f32[1,32], index: 20, kind: input, shape index: {}]   ;;  %s3701_s21 = inlined_call_operand.vmem [shape: f32[32,1], index: 21, kind: input, shape index: {}]   ;;  %s3702_s22 = inlined_call_operand.<no memory space> [shape: f32[1,1], index: 22, kind: input, shape index: {}]   ;;  %s3703_s23 = inlined_call_operand.vmem [shape: f32[2,1], index: 23, kind: output, shape index: {}]  }
   0x1   :  { %3706 = sst [smem:[#allocation34_spill]] %s3680_s0  ;;  %v28_v0 = vstv %s3702_s22 }
   0x2   :  { %3707 = sst [smem:[#allocation35_spill]] %s3681_s1  ;;  %29 = vst [vmem:[#allocation6] sm:$0x1] %v28_v0 }
   0x3   :  { %3708 = sst [smem:[#allocation36_spill]] %s3682_s2 }
   0x4   :  { %3709 = sst [smem:[#allocation37_spill]] %s3683_s3 }
   0x5   :  { %3710 = sst [smem:[#allocation38_spill]] %s3684_s4 }
   0x6   :  { %3711 = sst [smem:[#allocation39_spill]] %s3685_s5 }
   0x7   :  { %3712 = sst [smem:[#allocation40_spill]] %s3686_s6 }
   0x8   :  { %3713 = sst [smem:[#allocation41_spill]] %s3687_s7 }
   0x9   :  { %30 = vsyncpa [#allocation8], 0 }
   0xa   :  { %31 = vsyncpa [#allocation10], 0 }
   0xb   :  { %32 = vsyncpa [#allocation13], 0 }
   0xc   :  { %33 = vsyncpa [#allocation16], 0 }
   0xd   :  { %34 = vsyncpa [#allocation19], 0 }
   0xe   :  { %35 = vsyncpa [#allocation22], 0  ;;  %s3714_s5 = sld [smem:[#allocation36_spill]] }
  0x14   :  { %s55_s1 = sshll.u32 %s3714_s5, 4  ;;  %s56_s1 = int_to_ptr.hbm [resolvable:$true] %s55_s1 }
  0x15   :  { %36 = vsyncpa [#allocation25], 0  ;;  %s2975_s26 = smov [#allocation9]   ;;  %s3715_s7 = sld [smem:[#allocation39_spill]] }
  0x16   :  { %s57_s2 = sshll.u32 %s2975_s26, 4  ;;  %s2976_s28 = smov [#allocation12]   ;;  %s58_s2 = int_to_ptr.vmem [resolvable:$true] %s57_s2 }
  0x17   :  { %60 = dma.hbm_to_vmem [thread:$0]  %s56_s1, 64, %s58_s2, [#allocation10]  }
  0x18   :  { %s80_s29 = sshll.u32 %s2976_s28, 4  ;;  %s2977_s3 = smov 128   ;;  %s81_s29 = int_to_ptr.vmem [resolvable:$true] %s80_s29 }
  0x19   :  { %s2978_s0 = smov 8   ;;  %s107_s24 = sshll.u32 %s3688_s8, 4  ;;  %s108_s24 = int_to_ptr.hbm [resolvable:$true] %s107_s24 }
  0x1a   :  { %s2979_s25 = smov [#allocation15]   ;;  %s129_s2 = sshll.u32 %s3690_s10, 4  ;;  %s130_s2 = int_to_ptr.hbm [resolvable:$true] %s129_s2 }
  0x1b   :  { %s78_s22 = sshll.u32 %s3715_s7, 4  ;;  %s109_s5 = sshll.u32 %s2979_s25, 4  ;;  %s79_s22 = int_to_ptr.hbm [resolvable:$true] %s78_s22  ;;  %s110_s5 = int_to_ptr.vmem [resolvable:$true] %s109_s5 }
  0x1c   :  { %86 = dma.hbm_to_vmem [thread:$0]  %s79_s22, 512, %s81_s29, [#allocation13], %s2977_s3, %s2977_s3, %s2978_s0  }
  0x1d   :  { %112 = dma.hbm_to_vmem [thread:$0]  %s108_s24, 16, %s110_s5, [#allocation16]  }
  0x1e   :  { %s2980_s6 = smov [#allocation18]   ;;  %s154_s22 = sshll.u32 %s3693_s13, 4  ;;  %s155_s22 = int_to_ptr.hbm [resolvable:$true] %s154_s22 }
  0x1f   :  { %s131_s27 = sshll.u32 %s2980_s6, 4  ;;  %s180_s4 = sshll.u32 %s3695_s15, 4  ;;  %s132_s27 = int_to_ptr.vmem [resolvable:$true] %s131_s27  ;;  %s181_s4 = int_to_ptr.hbm [resolvable:$true] %s180_s4 }
  0x20   :  { %134 = dma.hbm_to_vmem [thread:$0]  %s130_s2, 16, %s132_s27, [#allocation19]  }
  0x21   :  { %s2981_s30 = smov [#allocation21]   ;;  %s2982_s10 = smov [#allocation24]  }
  0x22   :  { %s156_s25 = sshll.u32 %s2981_s30, 4  ;;  %s182_s24 = sshll.u32 %s2982_s10, 4  ;;  %s157_s25 = int_to_ptr.vmem [resolvable:$true] %s156_s25  ;;  %s183_s24 = int_to_ptr.vmem [resolvable:$true] %s182_s24 }
  0x23   :  { %162 = dma.hbm_to_vmem [thread:$0]  %s155_s22, 512, %s157_s25, [#allocation22], %s2977_s3, %s2977_s3, %s2978_s0  }
  0x24   :  { %s3716_s13 = sld [smem:[#allocation35_spill]]  ;;  %s2983_s7 = smov [#allocation7]  }
  0x25   :  { %188 = dma.hbm_to_vmem [thread:$0]  %s181_s4, 512, %s183_s24, [#allocation25], %s2977_s3, %s2977_s3, %s2978_s0  }
  0x26   :  { %s3717_s6 = sld [smem:[#allocation37_spill]]  ;;  %s46_s28 = sshll.u32 %s2983_s7, 4  ;;  %s47_s28 = int_to_ptr.vmem [resolvable:$true] %s46_s28 }
  0x27   :  { %s2984_s22 = smov [#allocation11]   ;;  %s3718_s25 = sld [smem:[#allocation40_spill]] }
  0x28   :  { %s68_s8 = sshll.u32 %s2984_s22, 4  ;;  %s118_s24 = sshll.u32 %s3689_s9, 4  ;;  %s69_s8 = int_to_ptr.vmem [resolvable:$true] %s68_s8  ;;  %s119_s24 = int_to_ptr.hbm [resolvable:$true] %s118_s24 }
  0x29   :  { %s2985_s26 = smov [#allocation14]   ;;  %s139_s7 = sshll.u32 %s3691_s11, 4  ;;  %s140_s7 = int_to_ptr.hbm [resolvable:$true] %s139_s7 }
  0x2a   :  { %s44_s1 = sshll.u32 %s3716_s13, 4  ;;  %s93_s13 = sshll.u32 %s2985_s26, 4  ;;  %s45_s1 = int_to_ptr.hbm [resolvable:$true] %s44_s1  ;;  %s94_s13 = int_to_ptr.vmem [resolvable:$true] %s93_s13 }
  0x2b   :  { %49 = dma.hbm_to_vmem [thread:$0]  %s45_s1, 64, %s47_s28, [#allocation8]  }
  0x2c   :  { %s66_s27 = sshll.u32 %s3717_s6, 4  ;;  %s2986_s1 = smov [#allocation17]   ;;  %s67_s27 = int_to_ptr.hbm [resolvable:$true] %s66_s27 }
  0x2d   :  { %s91_s10 = sshll.u32 %s3718_s25, 4  ;;  %s120_s15 = sshll.u32 %s2986_s1, 4  ;;  %s92_s10 = int_to_ptr.hbm [resolvable:$true] %s91_s10  ;;  %s121_s15 = int_to_ptr.vmem [resolvable:$true] %s120_s15 }
  0x2e   :  { %71 = dma.hbm_to_vmem [thread:$0]  %s67_s27, 64, %s69_s8, [#allocation10]  }
  0x2f   :  { %99 = dma.hbm_to_vmem [thread:$0]  %s92_s10, 512, %s94_s13, [#allocation13], %s2977_s3, %s2977_s3, %s2978_s0  }
  0x30   :  { %123 = dma.hbm_to_vmem [thread:$0]  %s119_s24, 16, %s121_s15, [#allocation16]  }
  0x31   :  { %s167_s9 = sshll.u32 %s3694_s14, 4  ;;  %s2987_s22 = smov [#allocation20]   ;;  %s168_s9 = int_to_ptr.hbm [resolvable:$true] %s167_s9 }
  0x32   :  { %s141_s8 = sshll.u32 %s2987_s22, 4  ;;  %s2988_s29 = smov [#allocation23]   ;;  %s142_s8 = int_to_ptr.vmem [resolvable:$true] %s141_s8 }
  0x33   :  { %147 = dma.hbm_to_vmem [thread:$0]  %s140_s7, 512, %s142_s8, [#allocation19], %s2977_s3, %s2977_s3, %s2978_s0  }
  0x34   :  { %s169_s30 = sshll.u32 %s2988_s29, 4  ;;  %s193_s11 = sshll.u32 %s3696_s16, 4  ;;  %s170_s30 = int_to_ptr.vmem [resolvable:$true] %s169_s30  ;;  %s194_s11 = int_to_ptr.hbm [resolvable:$true] %s193_s11 }
  0x35   :  { %175 = dma.hbm_to_vmem [thread:$0]  %s168_s9, 512, %s170_s30, [#allocation22], %s2977_s3, %s2977_s3, %s2978_s0  }
  0x36   :  { %s2989_s14 = smov [#allocation26]  }
  0x37   :  { %s195_s5 = sshll.u32 %s2989_s14, 4  ;;  %s196_s5 = int_to_ptr.vmem [resolvable:$true] %s195_s5 }
  0x38   :  { %201 = dma.hbm_to_vmem [thread:$0]  %s194_s11, 512, %s196_s5, [#allocation25], %s2977_s3, %s2977_s3, %s2978_s0  }
  0x39   :  { %2961 = dma.done.wait [#allocation8], 64  }
  0x3a   :  { %2962 = vsyncadd [#allocation8], 4294967232 }
  0x3b   :  { %2963 = dma.done.wait [#allocation10], 128  }
  0x3c   :  { %2964 = vsyncadd [#allocation10], 4294967168 }
  0x3d   :  { %2965 = dma.done.wait [#allocation13], 1024  }
  0x3e   :  { %2966 = vsyncadd [#allocation13], 4294966272 }
  0x3f   :  { %2967 = dma.done.wait [#allocation16], 32  }
  0x40   :  { %2968 = vsyncadd [#allocation16], 4294967264 }
  0x41   :  { %2969 = dma.done.wait [#allocation19], 528  }
  0x42   :  { %2970 = vsyncadd [#allocation19], 4294966768 }
  0x43   :  { %2971 = dma.done.wait [#allocation22], 1024  }
  0x44   :  { %2972 = vsyncadd [#allocation22], 4294966272 }
  0x45   :  { %2973 = dma.done.wait [#allocation25], 1024  }
  0x46   :  { %2974 = vsyncadd [#allocation25], 4294966272  ;;  %vm280_vm0 = vcmask 1043456   ;;  %vm273_vm1 = vcmask 31744   ;;  %s3719_s24 = sld [smem:[#allocation38_spill]]  ;;  %v3202_v8 = vld [vmem:[#allocation14 + $0x18] sm:$0xff] }
  0x47   :  { %v268_v2 = vld [vmem:[#allocation7] sm:$0xf]  ;;  %s3720_s1 = sld [smem:[#allocation34_spill]]  ;;  %v310_v6 = vld [vmem:[#allocation9] sm:$0xf]  ;;  %v3215_v13 = vld [vmem:[#allocation14 + $0x8] sm:$0xff] }
  0x48   :  { %2373 = vmatpush.msk.msra.mxu0 %vm280_vm0, %v268_v2  ;;  %2376 = vmatpush.msk.msra.mxu1 %vm280_vm0, %v310_v6  ;;  %v3204_v9 = vld [vmem:[#allocation12 + $0x18] sm:$0xff]  ;;  %v3208_v11 = vld [vmem:[#allocation14 + $0x10] sm:$0xff]  ;;  %v3221_v15 = vld [vmem:[#allocation14] sm:$0xff]  ;;  %v2990_v16 = vmov 0.0   ;;  %s3721_s8 = sld [smem:[#allocation41_spill]]  ;;  %vm307_vm2 = vcmask 261120  }
  0x49   :  { %v343_v10 = vld [vmem:[#allocation11] sm:$0xf]  ;;  %v3217_v14 = vld [vmem:[#allocation12 + $0x10] sm:$0xff]  ;;  %v3229_v17 = vld [vmem:[#allocation12 + $0x8] sm:$0xff]  ;;  %vm505_vm11 = vcmask 254976  }
  0x4a   :  { %450 = vmatpush.msrb.mxu0 %v3202_v8  ;;  %2379 = vmatpush.msk.msra.mxu2 %vm280_vm0, %v343_v10  ;;  %v3235_v18 = vld [vmem:[#allocation12] sm:$0xff] }
  0x4b   :  { %v2480_v20 = vld [vmem:[#allocation15] ss:$0 sm:$0xff]  ;;  %v2481_v25 = vld [vmem:[#allocation17] ss:$0 sm:$0xff]  ;;  %v3281_v48 = vld [vmem:[#allocation18] ss:$0 sm:$0xff] }
  0x4c   :  { %v3177_v1 = vld [vmem:[%s3719_s24 + $0x18] sm:$0xff]  ;;  %v3182_v3 = vld [vmem:[%s3719_s24 + $0x10] sm:$0xff]  ;;  %v3193_v5 = vld [vmem:[%s3719_s24 + $0x8] sm:$0xff]  ;;  %451 = vmatpush.msrb.mxu0 %v3208_v11  ;;  %545 = vmatpush.msrb.mxu2 %v3204_v9 }
  0x4d   :  { %410 = vmatpush.msra.mxu3 %v3177_v1  ;;  %v266_v4 = vld [vmem:[%s3720_s1] sm:$0xff]  ;;  %v267_v12 = vld [vmem:[%s3720_s1 + $0x8] sm:$0xff]  ;;  %525 = vmatpush.msrb.mxu1 %v3177_v1 }
  0x4e   :  { %2374 = vmatmul.msk.f32.vlgmr.msra.gmra.mxu0 %vm273_vm1, %v266_v4  ;;  %v3199_v7 = vld [vmem:[%s3719_s24] sm:$0xff]  ;;  %2377 = vmatmul.msk.f32.vlgmr.msra.gmra.mxu1 %vm273_vm1, %v266_v4 }
  0x4f   :  { %411 = vmatpush.msra.mxu3 %v3182_v3  ;;  %2380 = vmatmul.msk.f32.vlgmr.msra.gmra.mxu2 %vm273_vm1, %v266_v4  ;;  %v2479_v19 = vld [vmem:[%s3721_s8] ss:$0 sm:$0xff] }
  0x50   :  { %452 = vmatpush.msrb.mxu0 %v3215_v13  ;;  %526 = vmatpush.msrb.mxu1 %v3182_v3 }
  0x51   :  { %412 = vmatpush.msra.mxu3 %v3193_v5  ;;  %546 = vmatpush.msrb.mxu2 %v3217_v14 }
  0x52   :  { %453 = vmatpush.msrb.mxu0 %v3221_v15  ;;  %527 = vmatpush.msrb.mxu1 %v3193_v5 }
  0x53   :  { %413 = vmatpush.msra.mxu3 %v3199_v7  ;;  %547 = vmatpush.msrb.mxu2 %v3229_v17 }
  0x54   :  { %414 = vmatmul.f32.vlgmr.msra.gmra.mxu3 %v2990_v16  ;;  %639 = vmatpush.msra.mxu0 %v3177_v1 }
  0x55   :  { %430 = vmatpush.msrb.mxu3 %v3204_v9  ;;  %528 = vmatpush.msrb.mxu1 %v3199_v7 }
  0x56   :  { %2375 = vmatmul.msk.f32.gmra.mxu0 %vm273_vm1, %v267_v12  ;;  %2378 = vmatmul.msk.f32.gmra.mxu1 %vm273_vm1, %v267_v12 }
  0x57   :  { %431 = vmatpush.msrb.mxu3 %v3217_v14  ;;  %2381 = vmatmul.msk.f32.gmra.mxu2 %vm273_vm1, %v267_v12 }
  0x58   :  { %548 = vmatpush.msrb.mxu2 %v3235_v18  ;;  %659 = vmatpush.msra.mxu1 %v3204_v9 }
  0x59   :  { %432 = vmatpush.msrb.mxu3 %v3229_v17  ;;  %640 = vmatpush.msra.mxu0 %v3182_v3 }
  0x5a   :  { %679 = vmatpush.msra.mxu2 %v3202_v8  ;;  %660 = vmatpush.msra.mxu1 %v3217_v14 }
  0x5b   :  { %433 = vmatpush.msrb.mxu3 %v3235_v18  ;;  %641 = vmatpush.msra.mxu0 %v3193_v5 }
  0x5c   :  { %434 = vmatmul.f32.vlgmr.msrb.gmra.mxu3 %v2990_v16  ;;  %680 = vmatpush.msra.mxu2 %v3208_v11 }
  0x5d   :  { %565 = vmatpush.msra.mxu3 %v3202_v8  ;;  %661 = vmatpush.msra.mxu1 %v3229_v17 }
  0x5e   :  { %454 = vmatmul.f32.vlgmr.msrb.gmra.mxu0 %v2990_v16  ;;  %681 = vmatpush.msra.mxu2 %v3215_v13 }
  0x5f   :  { %566 = vmatpush.msra.mxu3 %v3208_v11  ;;  %642 = vmatpush.msra.mxu0 %v3199_v7 }
  0x60   :  { %662 = vmatpush.msra.mxu1 %v3235_v18  ;;  %682 = vmatpush.msra.mxu2 %v3221_v15 }
  0x61   :  { %567 = vmatpush.msra.mxu3 %v3215_v13  ;;  %773 = vmatpush.msrb.mxu0 %v3204_v9 }
  0x63   :  { %568 = vmatpush.msra.mxu3 %v3221_v15  ;;  %774 = vmatpush.msrb.mxu0 %v3217_v14 }
  0x65   :  { %753 = vmatpush.msrb.mxu3 %v3177_v1  ;;  %775 = vmatpush.msrb.mxu0 %v3229_v17 }
  0x67   :  { %754 = vmatpush.msrb.mxu3 %v3182_v3  ;;  %776 = vmatpush.msrb.mxu0 %v3235_v18 }
  0x69   :  { %755 = vmatpush.msrb.mxu3 %v3193_v5 }
  0x6b   :  { %756 = vmatpush.msrb.mxu3 %v3199_v7 }
  0xcb   :  { %v301_v21 = vpop.f32.mrf.mxu0  ;;  %v335_v23 = vpop.f32.mrf.mxu1 }
  0xcc   :  { %v302_v22 = vadd.f32 %v2479_v19, %v301_v21  ;;  %v336_v24 = vadd.f32 %v2480_v20, %v335_v23 }
  0xce   :  { %308 = vst.msk [vmem:[#allocation2] sm:$0xff] %vm307_vm2, %v302_v22 }
  0xcf   :  { %341 = vst.msk [vmem:[#allocation3] sm:$0xff] %vm307_vm2, %v336_v24 }
  0xd2   :  { %v368_v29 = vpop.f32.mrf.mxu2 }
  0xd3   :  { %v304_v26 = vpop.f32.mrf.mxu0  ;;  %v369_v30 = vadd.f32 %v2481_v25, %v368_v29  ;;  %v338_v40 = vpop.f32.mrf.mxu1 }
  0xd4   :  { %v305_v27 = vadd.f32 %v2479_v19, %v304_v26  ;;  %v339_v42 = vadd.f32 %v2480_v20, %v338_v40 }
  0xd5   :  { %v392_v28 = vld [vmem:[#allocation2] sm:$0x3]  ;;  %374 = vst.msk [vmem:[#allocation4] sm:$0xff] %vm307_vm2, %v369_v30  ;;  %v507_v26 = vld [vmem:[#allocation2 + $0x2] sm:$0x3] }
  0xd6   :  { %309 = vst.msk [vmem:[#allocation2 + $0x8] sm:$0xff] %vm307_vm2, %v305_v27  ;;  %v393_v34 = vld [vmem:[#allocation3] sm:$0x3]  ;;  %v508_v30 = vld [vmem:[#allocation3 + $0x2] sm:$0x3] }
  0xd7   :  { %v415_v31 = vpop.f32.mrf.mxu3  ;;  %342 = vst.msk [vmem:[#allocation3 + $0x8] sm:$0xff] %vm307_vm2, %v339_v42 }
  0xd8   :  { %v458_v32 = vadd.f32 %v415_v31, %v392_v28 }
  0xda   :  { %v2382_v33 = vmul.f32 -1.442695, %v458_v32  ;;  %v371_v41 = vpop.f32.mrf.mxu2 }
  0xdb   :  { %v372_v43 = vadd.f32 %v2481_v25, %v371_v41  ;;  %v455_v50 = vpop.f32.mrf.mxu0 }
  0xdc   :  { %2488 = vpow2.f32 %v2382_v33  ;;  %v456_v54 = vadd.f32 %v3281_v48, %v455_v50  ;;  %v394_v60 = vld [vmem:[#allocation4] sm:$0x3] }
  0xdd   :  { %375 = vst.msk [vmem:[#allocation4 + $0x8] sm:$0xff] %vm307_vm2, %v372_v43 }
  0xdf   :  { %v435_v35 = vpop.f32.mrf.mxu3 }
  0xe0   :  { %v478_v36 = vadd.f32 %v435_v35, %v393_v34 }
  0xe2   :  { %v2489_v37 = vpop.eup %2488  ;;  %v2383_v38 = vmul.f32 -1.442695, %v478_v36 }
  0xe3   :  { %v462_v39 = vadd.f32 1.0, %v2489_v37 }
  0xe4   :  { %2490 = vpow2.f32 %v2383_v38 }
  0xe5   :  { %2492 = vrcp.f32 %v462_v39  ;;  %v474_v51 = vand.u32 2147483648, %v462_v39  ;;  %v472_v53 = vand.u32 2147483647, %v462_v39  ;;  %vm468_vm4 = vweird.f32 %v462_v39 }
  0xe7   :  { %v475_v57 = vor.u32 1.1754944e-38, %v474_v51  ;;  %vm473_vm6 = vcmp.eq.f32.partialorder %v472_v53, 8.507059e+37 }
  0xea   :  { %v2491_v44 = vpop.eup %2490 }
  0xeb   :  { %v2493_v45 = vpop.eup %2492  ;;  %v482_v46 = vadd.f32 1.0, %v2491_v44 }
  0xec   :  { %v464_v47 = vmul.f32 %v2493_v45, %v462_v39  ;;  %vm469_vm3 = vweird.f32 %v2493_v45 }
  0xed   :  { %2494 = vrcp.f32 %v482_v46  ;;  %vm470_vm5 = vmor %vm468_vm4, %vm469_vm3  ;;  %v494_v0 = vand.u32 2147483648, %v482_v46  ;;  %v492_v4 = vand.u32 2147483647, %v482_v46  ;;  %vm488_vm8 = vweird.f32 %v482_v46 }
  0xee   :  { %v465_v49 = vsub.f32 1.0, %v464_v47 }
  0xef   :  { %v495_v12 = vor.u32 1.1754944e-38, %v494_v0  ;;  %vm493_vm10 = vcmp.eq.f32.partialorder %v492_v4, 8.507059e+37 }
  0xf0   :  { %v466_v52 = vmul.f32 %v2493_v45, %v465_v49 }
  0xf2   :  { %v467_v55 = vadd.f32 %v2493_v45, %v466_v52 }
  0xf3   :  { %v2495_v56 = vpop.eup %2494 }
  0xf4   :  { %v484_v58 = vmul.f32 %v2495_v56, %v482_v46  ;;  %v471_v59 = vsel %vm470_vm5, %v2493_v45, %v467_v55  ;;  %vm489_vm7 = vweird.f32 %v2495_v56 }
  0xf5   :  { %v476_v61 = vsel %vm473_vm6, %v475_v57, %v471_v59  ;;  %vm490_vm9 = vmor %vm488_vm8, %vm489_vm7 }
  0xf6   :  { %v485_v62 = vsub.f32 1.0, %v484_v58  ;;  %v498_v63 = vmul.f32 %v476_v61, %v456_v54  ;;  %v509_v58 = vld [vmem:[#allocation4 + $0x2] sm:$0x3] }
  0xf8   :  { %v486_v2 = vmul.f32 %v2495_v56, %v485_v62  ;;  %v499_v6 = vadd.f32 %v498_v63, %v394_v60 }
  0xfa   :  { %v487_v10 = vadd.f32 %v2495_v56, %v486_v2  ;;  %2496 = vtanh.f32 %v499_v6 }
  0xfc   :  { %v491_v19 = vsel %vm490_vm9, %v2495_v56, %v487_v10 }
  0xfd   :  { %v496_v20 = vsel %vm493_vm10, %v495_v12, %v491_v19  ;;  %v621_v12 = vld [vmem:[#allocation2 + $0x4] sm:$0x3] }
  0xfe   :  { %v501_v21 = vsub.f32 1.0, %v496_v20  ;;  %v503_v24 = vmul.f32 0.0, %v496_v20  ;;  %v622_v20 = vld [vmem:[#allocation3 + $0x4] sm:$0x3] }
 0x100   :  { %v2497_v22 = vpop.eup %2496 }
 0x101   :  { %v502_v23 = vmul.f32 %v2497_v22, %v501_v21 }
 0x103   :  { %v3284_v25 = vadd.f32 %v503_v24, %v502_v23 }
 0x105   :  { %506 = vst.msk [vmem:[#allocation5] sm:$0x3] %vm505_vm11, %v3284_v25  ;;  %2384 = vmatmul.msk.f32.vlgmr.msrb.gmra.mxu1 %vm307_vm2, %v3284_v25  ;;  %2385 = vmatmul.msk.f32.vlgmr.msrb.gmra.mxu2 %vm307_vm2, %v3284_v25 }
 0x106   :  { %2386 = vmatmul.msk.f32.vlgmr.msra.gmra.mxu3 %vm307_vm2, %v3284_v25  ;;  %793 = vmatpush.msrb.mxu1 %v3202_v8 }
 0x107   :  { %867 = vmatpush.msrb.mxu2 %v3177_v1  ;;  %887 = vmatpush.msra.mxu3 %v3204_v9 }
 0x108   :  { %794 = vmatpush.msrb.mxu1 %v3208_v11 }
 0x109   :  { %868 = vmatpush.msrb.mxu2 %v3182_v3  ;;  %888 = vmatpush.msra.mxu3 %v3217_v14 }
 0x10a   :  { %795 = vmatpush.msrb.mxu1 %v3215_v13 }
 0x10b   :  { %869 = vmatpush.msrb.mxu2 %v3193_v5  ;;  %889 = vmatpush.msra.mxu3 %v3229_v17 }
 0x10c   :  { %796 = vmatpush.msrb.mxu1 %v3221_v15 }
 0x10d   :  { %870 = vmatpush.msrb.mxu2 %v3199_v7  ;;  %890 = vmatpush.msra.mxu3 %v3235_v18 }
 0x182   :  { %v530_v27 = vpop.f32.mrf.mxu1 }
 0x183   :  { %v573_v28 = vadd.f32 %v530_v27, %v507_v26 }
 0x185   :  { %v2387_v29 = vmul.f32 -1.442695, %v573_v28 }
 0x187   :  { %2498 = vpow2.f32 %v2387_v29 }
 0x188   :  { %v550_v31 = vpop.f32.mrf.mxu2 }
 0x189   :  { %v593_v32 = vadd.f32 %v550_v31, %v508_v30  ;;  %v570_v45 = vpop.f32.mrf.mxu3 }
 0x18a   :  { %v571_v51 = vadd.f32 %v3281_v48, %v570_v45 }
 0x18b   :  { %v2388_v33 = vmul.f32 -1.442695, %v593_v32 }
 0x18d   :  { %v2499_v34 = vpop.eup %2498  ;;  %2500 = vpow2.f32 %v2388_v33 }
 0x18e   :  { %v577_v35 = vadd.f32 1.0, %v2499_v34 }
 0x190   :  { %2502 = vrcp.f32 %v577_v35  ;;  %v589_v41 = vand.u32 2147483648, %v577_v35  ;;  %v587_v43 = vand.u32 2147483647, %v577_v35  ;;  %vm583_vm13 = vweird.f32 %v577_v35 }
 0x192   :  { %v590_v49 = vor.u32 1.1754944e-38, %v589_v41  ;;  %vm588_vm15 = vcmp.eq.f32.partialorder %v587_v43, 8.507059e+37 }
 0x193   :  { %v2501_v36 = vpop.eup %2500 }
 0x194   :  { %v597_v37 = vadd.f32 1.0, %v2501_v36 }
 0x196   :  { %v2503_v38 = vpop.eup %2502  ;;  %2504 = vrcp.f32 %v597_v37  ;;  %v609_v55 = vand.u32 2147483648, %v597_v37  ;;  %v607_v57 = vand.u32 2147483647, %v597_v37  ;;  %vm603_vm1 = vweird.f32 %v597_v37 }
 0x197   :  { %v579_v39 = vmul.f32 %v2503_v38, %v577_v35  ;;  %vm584_vm12 = vweird.f32 %v2503_v38 }
 0x198   :  { %vm585_vm14 = vmor %vm583_vm13, %vm584_vm12  ;;  %v610_v61 = vor.u32 1.1754944e-38, %v609_v55  ;;  %vm608_vm4 = vcmp.eq.f32.partialorder %v607_v57, 8.507059e+37 }
 0x199   :  { %v580_v40 = vsub.f32 1.0, %v579_v39 }
 0x19b   :  { %v581_v42 = vmul.f32 %v2503_v38, %v580_v40 }
 0x19c   :  { %v2505_v44 = vpop.eup %2504 }
 0x19d   :  { %v599_v46 = vmul.f32 %v2505_v44, %v597_v37  ;;  %v582_v47 = vadd.f32 %v2503_v38, %v581_v42  ;;  %vm604_vm0 = vweird.f32 %v2505_v44 }
 0x19e   :  { %vm605_vm3 = vmor %vm603_vm1, %vm604_vm0 }
 0x19f   :  { %v600_v50 = vsub.f32 1.0, %v599_v46  ;;  %v586_v52 = vsel %vm585_vm14, %v2503_v38, %v582_v47 }
 0x1a0   :  { %v591_v53 = vsel %vm588_vm15, %v590_v49, %v586_v52 }
 0x1a1   :  { %v601_v54 = vmul.f32 %v2505_v44, %v600_v50  ;;  %v613_v56 = vmul.f32 %v591_v53, %v571_v51  ;;  %v623_v51 = vld [vmem:[#allocation4 + $0x4] sm:$0x3] }
 0x1a3   :  { %v602_v59 = vadd.f32 %v2505_v44, %v601_v54  ;;  %v614_v60 = vadd.f32 %v613_v56, %v509_v58 }
 0x1a5   :  { %v606_v62 = vsel %vm605_vm3, %v2505_v44, %v602_v59  ;;  %2506 = vtanh.f32 %v614_v60 }
 0x1a6   :  { %v611_v63 = vsel %vm608_vm4, %v610_v61, %v606_v62  ;;  %v736_v61 = vld [vmem:[#allocation3 + $0x6] sm:$0x3] }
 0x1a7   :  { %v616_v0 = vsub.f32 1.0, %v611_v63  ;;  %v618_v6 = vmul.f32 %v611_v63, %v3284_v25 }
 0x1ab   :  { %v2507_v2 = vpop.eup %2506 }
 0x1ac   :  { %v617_v4 = vmul.f32 %v2507_v2, %v616_v0  ;;  %v735_v2 = vld [vmem:[#allocation2 + $0x6] sm:$0x3] }
 0x1ae   :  { %v3308_v10 = vadd.f32 %v618_v6, %v617_v4 }
 0x1b0   :  { %620 = vst.msk [vmem:[#allocation5 + $0x2] sm:$0x3] %vm505_vm11, %v3308_v10  ;;  %2389 = vmatmul.msk.f32.vlgmr.msra.gmra.mxu0 %vm307_vm2, %v3308_v10  ;;  %2390 = vmatmul.msk.f32.vlgmr.msra.gmra.mxu1 %vm307_vm2, %v3308_v10 }
 0x1b1   :  { %2391 = vmatmul.msk.f32.vlgmr.msra.gmra.mxu2 %vm307_vm2, %v3308_v10  ;;  %907 = vmatpush.msra.mxu0 %v3202_v8 }
 0x1b2   :  { %981 = vmatpush.msra.mxu1 %v3177_v1  ;;  %1001 = vmatpush.msra.mxu2 %v3204_v9 }
 0x1b3   :  { %908 = vmatpush.msra.mxu0 %v3208_v11 }
 0x1b4   :  { %982 = vmatpush.msra.mxu1 %v3182_v3  ;;  %1002 = vmatpush.msra.mxu2 %v3217_v14 }
 0x1b5   :  { %909 = vmatpush.msra.mxu0 %v3215_v13 }
 0x1b6   :  { %983 = vmatpush.msra.mxu1 %v3193_v5  ;;  %1003 = vmatpush.msra.mxu2 %v3229_v17 }
 0x1b7   :  { %910 = vmatpush.msra.mxu0 %v3221_v15 }
 0x1b8   :  { %984 = vmatpush.msra.mxu1 %v3199_v7  ;;  %1004 = vmatpush.msra.mxu2 %v3235_v18 }
 0x22d   :  { %v644_v19 = vpop.f32.mrf.mxu0  ;;  %v664_v21 = vpop.f32.mrf.mxu1 }
 0x22e   :  { %v687_v22 = vadd.f32 %v644_v19, %v621_v12  ;;  %v707_v23 = vadd.f32 %v664_v21, %v622_v20 }
 0x230   :  { %v2392_v24 = vmul.f32 -1.442695, %v687_v22  ;;  %v2393_v25 = vmul.f32 -1.442695, %v707_v23 }
 0x232   :  { %2508 = vpow2.f32 %v2392_v24 }
 0x233   :  { %2510 = vpow2.f32 %v2393_v25 }
 0x234   :  { %v684_v40 = vpop.f32.mrf.mxu2 }
 0x235   :  { %v685_v43 = vadd.f32 %v3281_v48, %v684_v40 }
 0x238   :  { %v2509_v26 = vpop.eup %2508 }
 0x239   :  { %v2511_v27 = vpop.eup %2510  ;;  %v691_v28 = vadd.f32 1.0, %v2509_v26 }
 0x23a   :  { %v711_v29 = vadd.f32 1.0, %v2511_v27 }
 0x23b   :  { %2512 = vrcp.f32 %v691_v28  ;;  %v703_v36 = vand.u32 2147483648, %v691_v28  ;;  %v701_v38 = vand.u32 2147483647, %v691_v28  ;;  %vm697_vm6 = vweird.f32 %v691_v28 }
 0x23c   :  { %2514 = vrcp.f32 %v711_v29  ;;  %v723_v47 = vand.u32 2147483648, %v711_v29  ;;  %vm717_vm10 = vweird.f32 %v711_v29  ;;  %v721_v50 = vand.u32 2147483647, %v711_v29 }
 0x23d   :  { %v704_v42 = vor.u32 1.1754944e-38, %v703_v36  ;;  %vm702_vm8 = vcmp.eq.f32.partialorder %v701_v38, 8.507059e+37 }
 0x23e   :  { %v724_v54 = vor.u32 1.1754944e-38, %v723_v47  ;;  %vm722_vm13 = vcmp.eq.f32.partialorder %v721_v50, 8.507059e+37 }
 0x241   :  { %v2513_v30 = vpop.eup %2512 }
 0x242   :  { %v2515_v31 = vpop.eup %2514  ;;  %v693_v32 = vmul.f32 %v2513_v30, %v691_v28  ;;  %vm698_vm5 = vweird.f32 %v2513_v30 }
 0x243   :  { %v713_v33 = vmul.f32 %v2515_v31, %v711_v29  ;;  %vm699_vm7 = vmor %vm697_vm6, %vm698_vm5  ;;  %vm718_vm9 = vweird.f32 %v2515_v31 }
 0x244   :  { %v694_v34 = vsub.f32 1.0, %v693_v32  ;;  %vm719_vm12 = vmor %vm717_vm10, %vm718_vm9 }
 0x245   :  { %v714_v35 = vsub.f32 1.0, %v713_v33 }
 0x246   :  { %v695_v37 = vmul.f32 %v2513_v30, %v694_v34 }
 0x247   :  { %v715_v39 = vmul.f32 %v2515_v31, %v714_v35 }
 0x248   :  { %v696_v41 = vadd.f32 %v2513_v30, %v695_v37 }
 0x249   :  { %v716_v45 = vadd.f32 %v2515_v31, %v715_v39 }
 0x24a   :  { %v700_v44 = vsel %vm699_vm7, %v2513_v30, %v696_v41 }
 0x24b   :  { %v705_v46 = vsel %vm702_vm8, %v704_v42, %v700_v44  ;;  %v720_v53 = vsel %vm719_vm12, %v2515_v31, %v716_v45  ;;  %v737_v42 = vld [vmem:[#allocation4 + $0x6] sm:$0x3] }
 0x24c   :  { %v727_v49 = vmul.f32 %v705_v46, %v685_v43  ;;  %v725_v55 = vsel %vm722_vm13, %v724_v54, %v720_v53  ;;  %v850_v53 = vld [vmem:[#allocation3 + $0x8] sm:$0x3] }
 0x24d   :  { %v730_v56 = vsub.f32 1.0, %v725_v55  ;;  %v732_v59 = vmul.f32 %v725_v55, %v3308_v10 }
 0x24e   :  { %v728_v52 = vadd.f32 %v727_v49, %v623_v51 }
 0x250   :  { %2516 = vtanh.f32 %v728_v52 }
 0x256   :  { %v2517_v57 = vpop.eup %2516 }
 0x257   :  { %v731_v58 = vmul.f32 %v2517_v57, %v730_v56 }
 0x259   :  { %v3332_v60 = vadd.f32 %v732_v59, %v731_v58 }
 0x25b   :  { %734 = vst.msk [vmem:[#allocation5 + $0x4] sm:$0x3] %vm505_vm11, %v3332_v60  ;;  %2394 = vmatmul.msk.f32.vlgmr.msrb.gmra.mxu3 %vm307_vm2, %v3332_v60  ;;  %2395 = vmatmul.msk.f32.vlgmr.msrb.gmra.mxu0 %vm307_vm2, %v3332_v60 }
 0x25c   :  { %2396 = vmatmul.msk.f32.vlgmr.msrb.gmra.mxu1 %vm307_vm2, %v3332_v60  ;;  %1021 = vmatpush.msrb.mxu3 %v3202_v8 }
 0x25d   :  { %1095 = vmatpush.msrb.mxu0 %v3177_v1  ;;  %1115 = vmatpush.msrb.mxu1 %v3204_v9 }
 0x25e   :  { %1022 = vmatpush.msrb.mxu3 %v3208_v11 }
 0x25f   :  { %1096 = vmatpush.msrb.mxu0 %v3182_v3  ;;  %1116 = vmatpush.msrb.mxu1 %v3217_v14 }
 0x260   :  { %1023 = vmatpush.msrb.mxu3 %v3215_v13 }
 0x261   :  { %1097 = vmatpush.msrb.mxu0 %v3193_v5  ;;  %1117 = vmatpush.msrb.mxu1 %v3229_v17 }
 0x262   :  { %1024 = vmatpush.msrb.mxu3 %v3221_v15 }
 0x263   :  { %1098 = vmatpush.msrb.mxu0 %v3199_v7  ;;  %1118 = vmatpush.msrb.mxu1 %v3235_v18 }
 0x2d8   :  { %v778_v62 = vpop.f32.mrf.mxu0 }
 0x2d9   :  { %v821_v63 = vadd.f32 %v778_v62, %v736_v61  ;;  %v798_v32 = vpop.f32.mrf.mxu1 }
 0x2da   :  { %v799_v35 = vadd.f32 %v3281_v48, %v798_v32 }
 0x2db   :  { %v2398_v0 = vmul.f32 -1.442695, %v821_v63 }
 0x2dd   :  { %2518 = vpow2.f32 %v2398_v0 }
 0x2de   :  { %v758_v4 = vpop.f32.mrf.mxu3 }
 0x2df   :  { %v801_v6 = vadd.f32 %v758_v4, %v735_v2 }
 0x2e1   :  { %v2397_v10 = vmul.f32 -1.442695, %v801_v6 }
 0x2e3   :  { %v2519_v12 = vpop.eup %2518  ;;  %2520 = vpow2.f32 %v2397_v10 }
 0x2e4   :  { %v825_v19 = vadd.f32 1.0, %v2519_v12 }
 0x2e6   :  { %2522 = vrcp.f32 %v825_v19  ;;  %v837_v39 = vand.u32 2147483648, %v825_v19  ;;  %vm831_vm4 = vweird.f32 %v825_v19  ;;  %v835_v41 = vand.u32 2147483647, %v825_v19 }
 0x2e8   :  { %v838_v45 = vor.u32 1.1754944e-38, %v837_v39  ;;  %vm836_vm6 = vcmp.eq.f32.partialorder %v835_v41, 8.507059e+37 }
 0x2e9   :  { %v2521_v20 = vpop.eup %2520 }
 0x2ea   :  { %v805_v21 = vadd.f32 1.0, %v2521_v20 }
 0x2ec   :  { %2524 = vrcp.f32 %v805_v21  ;;  %v2523_v22 = vpop.eup %2522  ;;  %v817_v28 = vand.u32 2147483648, %v805_v21  ;;  %v815_v30 = vand.u32 2147483647, %v805_v21  ;;  %vm811_vm15 = vweird.f32 %v805_v21 }
 0x2ed   :  { %v827_v23 = vmul.f32 %v2523_v22, %v825_v19  ;;  %vm832_vm3 = vweird.f32 %v2523_v22 }
 0x2ee   :  { %v818_v34 = vor.u32 1.1754944e-38, %v817_v28  ;;  %vm816_vm1 = vcmp.eq.f32.partialorder %v815_v30, 8.507059e+37  ;;  %vm833_vm5 = vmor %vm831_vm4, %vm832_vm3 }
 0x2ef   :  { %v828_v26 = vsub.f32 1.0, %v827_v23 }
 0x2f1   :  { %v829_v31 = vmul.f32 %v2523_v22, %v828_v26  ;;  %v851_v26 = vld [vmem:[#allocation4 + $0x8] sm:$0x3] }
 0x2f2   :  { %v2525_v24 = vpop.eup %2524 }
 0x2f3   :  { %v807_v25 = vmul.f32 %v2525_v24, %v805_v21  ;;  %vm812_vm14 = vweird.f32 %v2525_v24  ;;  %v830_v37 = vadd.f32 %v2523_v22, %v829_v31 }
 0x2f4   :  { %vm813_vm0 = vmor %vm811_vm15, %vm812_vm14 }
 0x2f5   :  { %v808_v27 = vsub.f32 1.0, %v807_v25  ;;  %v834_v44 = vsel %vm833_vm5, %v2523_v22, %v830_v37 }
 0x2f6   :  { %v839_v46 = vsel %vm836_vm6, %v838_v45, %v834_v44 }
 0x2f7   :  { %v809_v29 = vmul.f32 %v2525_v24, %v808_v27  ;;  %v844_v47 = vsub.f32 1.0, %v839_v46  ;;  %v846_v51 = vmul.f32 %v839_v46, %v3332_v60  ;;  %v1309_v46 = vld [vmem:[#allocation20 + $0x10] sm:$0xff] }
 0x2f9   :  { %v810_v33 = vadd.f32 %v2525_v24, %v809_v29 }
 0x2fb   :  { %v814_v36 = vsel %vm813_vm0, %v2525_v24, %v810_v33 }
 0x2fc   :  { %v819_v38 = vsel %vm816_vm1, %v818_v34, %v814_v36  ;;  %v963_v36 = vld [vmem:[#allocation2 + $0xa] sm:$0x3] }
 0x2fd   :  { %v841_v40 = vmul.f32 %v819_v38, %v799_v35 }
 0x2ff   :  { %v842_v43 = vadd.f32 %v841_v40, %v737_v42  ;;  %v964_v40 = vld [vmem:[#allocation3 + $0xa] sm:$0x3] }
 0x301   :  { %2526 = vtanh.f32 %v842_v43 }
 0x307   :  { %v2527_v49 = vpop.eup %2526 }
 0x308   :  { %v845_v50 = vmul.f32 %v2527_v49, %v844_v47 }
 0x30a   :  { %v3356_v52 = vadd.f32 %v846_v51, %v845_v50 }
 0x30c   :  { %848 = vst.msk [vmem:[#allocation5 + $0x6] sm:$0x3] %vm505_vm11, %v3356_v52  ;;  %2399 = vmatmul.msk.f32.vlgmr.msrb.gmra.mxu2 %vm307_vm2, %v3356_v52  ;;  %2400 = vmatmul.msk.f32.vlgmr.msra.gmra.mxu3 %vm307_vm2, %v3356_v52 }
 0x30d   :  { %2401 = vmatmul.msk.f32.vlgmr.msra.gmra.mxu0 %vm307_vm2, %v3356_v52  ;;  %1135 = vmatpush.msrb.mxu2 %v3202_v8 }
 0x30e   :  { %1209 = vmatpush.msra.mxu3 %v3177_v1  ;;  %1229 = vmatpush.msra.mxu0 %v3204_v9  ;;  %v849_v1 = vld [vmem:[#allocation2 + $0x8] sm:$0x3] }
 0x30f   :  { %1136 = vmatpush.msrb.mxu2 %v3208_v11 }
 0x310   :  { %1210 = vmatpush.msra.mxu3 %v3182_v3  ;;  %1230 = vmatpush.msra.mxu0 %v3217_v14 }
 0x311   :  { %1137 = vmatpush.msrb.mxu2 %v3215_v13 }
 0x312   :  { %1211 = vmatpush.msra.mxu3 %v3193_v5  ;;  %1231 = vmatpush.msra.mxu0 %v3229_v17 }
 0x313   :  { %1138 = vmatpush.msrb.mxu2 %v3221_v15 }
 0x314   :  { %1212 = vmatpush.msra.mxu3 %v3199_v7  ;;  %1232 = vmatpush.msra.mxu0 %v3235_v18 }
 0x38a   :  { %v912_v4 = vpop.f32.mrf.mxu0 }
 0x38b   :  { %v913_v19 = vadd.f32 %v3281_v48, %v912_v4 }
 0x38f   :  { %v872_v9 = vpop.f32.mrf.mxu2  ;;  %v892_v54 = vpop.f32.mrf.mxu3 }
 0x390   :  { %v915_v55 = vadd.f32 %v872_v9, %v849_v1  ;;  %v935_v3 = vadd.f32 %v892_v54, %v850_v53 }
 0x392   :  { %v2402_v56 = vmul.f32 -1.442695, %v915_v55  ;;  %v2403_v14 = vmul.f32 -1.442695, %v935_v3 }
 0x394   :  { %2528 = vpow2.f32 %v2402_v56 }
 0x395   :  { %2530 = vpow2.f32 %v2403_v14 }
 0x39a   :  { %v2529_v57 = vpop.eup %2528 }
 0x39b   :  { %v2531_v5 = vpop.eup %2530  ;;  %v919_v58 = vadd.f32 1.0, %v2529_v57 }
 0x39c   :  { %v939_v17 = vadd.f32 1.0, %v2531_v5 }
 0x39d   :  { %2532 = vrcp.f32 %v919_v58  ;;  %v931_v62 = vand.u32 2147483648, %v919_v58  ;;  %v929_v2 = vand.u32 2147483647, %v919_v58  ;;  %vm925_vm8 = vweird.f32 %v919_v58 }
 0x39e   :  { %2534 = vrcp.f32 %v939_v17  ;;  %v951_v24 = vand.u32 2147483648, %v939_v17  ;;  %vm945_vm13 = vweird.f32 %v939_v17  ;;  %v949_v25 = vand.u32 2147483647, %v939_v17 }
 0x39f   :  { %v932_v12 = vor.u32 1.1754944e-38, %v931_v62  ;;  %vm930_vm10 = vcmp.eq.f32.partialorder %v929_v2, 8.507059e+37 }
 0x3a0   :  { %v952_v29 = vor.u32 1.1754944e-38, %v951_v24  ;;  %vm950_vm15 = vcmp.eq.f32.partialorder %v949_v25, 8.507059e+37 }
 0x3a3   :  { %v2533_v59 = vpop.eup %2532 }
 0x3a4   :  { %v2535_v7 = vpop.eup %2534  ;;  %v921_v60 = vmul.f32 %v2533_v59, %v919_v58  ;;  %vm926_vm7 = vweird.f32 %v2533_v59 }
 0x3a5   :  { %v941_v18 = vmul.f32 %v2535_v7, %v939_v17  ;;  %vm927_vm9 = vmor %vm925_vm8, %vm926_vm7  ;;  %vm946_vm12 = vweird.f32 %v2535_v7 }
 0x3a6   :  { %v922_v61 = vsub.f32 1.0, %v921_v60  ;;  %vm947_vm14 = vmor %vm945_vm13, %vm946_vm12 }
 0x3a7   :  { %v942_v63 = vsub.f32 1.0, %v941_v18  ;;  %v965_v18 = vld [vmem:[#allocation4 + $0xa] sm:$0x3] }
 0x3a8   :  { %v923_v0 = vmul.f32 %v2533_v59, %v922_v61 }
 0x3a9   :  { %v943_v6 = vmul.f32 %v2535_v7, %v942_v63 }
 0x3aa   :  { %v924_v10 = vadd.f32 %v2533_v59, %v923_v0 }
 0x3ab   :  { %v944_v22 = vadd.f32 %v2535_v7, %v943_v6 }
 0x3ac   :  { %v928_v20 = vsel %vm927_vm9, %v2533_v59, %v924_v10 }
 0x3ad   :  { %v933_v21 = vsel %vm930_vm10, %v932_v12, %v928_v20  ;;  %v948_v28 = vsel %vm947_vm14, %v2535_v7, %v944_v22  ;;  %v3406_v20 = vld [vmem:[#allocation5] sm:$0xff] }
 0x3ae   :  { %v955_v23 = vmul.f32 %v933_v21, %v913_v19  ;;  %v953_v30 = vsel %vm950_vm15, %v952_v29, %v948_v28  ;;  %v1077_v21 = vld [vmem:[#allocation2 + $0xc] sm:$0x3] }
 0x3af   :  { %v958_v31 = vsub.f32 1.0, %v953_v30  ;;  %v960_v34 = vmul.f32 %v953_v30, %v3356_v52 }
 0x3b0   :  { %v956_v27 = vadd.f32 %v955_v23, %v851_v26  ;;  %v1078_v23 = vld [vmem:[#allocation3 + $0xc] sm:$0x3] }
 0x3b2   :  { %2536 = vtanh.f32 %v956_v27 }
 0x3b8   :  { %v2537_v32 = vpop.eup %2536 }
 0x3b9   :  { %v959_v33 = vmul.f32 %v2537_v32, %v958_v31 }
 0x3bb   :  { %v3380_v35 = vadd.f32 %v960_v34, %v959_v33  ;;  %v3413_v33 = vld [vmem:[%s3697_s17] ss:$0 sm:$0xff] }
 0x3bd   :  { %962 = vst.msk [vmem:[#allocation5 + $0x8] sm:$0x3] %vm505_vm11, %v3380_v35  ;;  %2404 = vmatmul.msk.f32.vlgmr.msra.gmra.mxu1 %vm307_vm2, %v3380_v35  ;;  %2405 = vmatmul.msk.f32.vlgmr.msra.gmra.mxu2 %vm307_vm2, %v3380_v35 }
 0x3be   :  { %2406 = vmatmul.msk.f32.vlgmr.msrb.gmra.mxu3 %vm307_vm2, %v3380_v35  ;;  %1249 = vmatpush.msra.mxu1 %v3202_v8  ;;  %v1310_v8 = vld [vmem:[#allocation20 + $0x18] sm:$0xff] }
 0x3bf   :  { %1333 = vmatpush.msra.mxu2 %v1310_v8  ;;  %v1346_v8 = vld [vmem:[%s3692_s12] sm:$0xff] }
 0x3c0   :  { %1250 = vmatpush.msra.mxu1 %v3208_v11 }
 0x3c1   :  { %1334 = vmatpush.msra.mxu2 %v1309_v46  ;;  %v1379_v46 = vld [vmem:[#allocation21] sm:$0xff] }
 0x3c2   :  { %1251 = vmatpush.msra.mxu1 %v3215_v13  ;;  %v1308_v13 = vld [vmem:[#allocation20 + $0x8] sm:$0xff] }
 0x3c3   :  { %1335 = vmatpush.msra.mxu2 %v1308_v13  ;;  %v3437_v13 = vld [vmem:[#allocation23] sm:$0xff] }
 0x3c4   :  { %1252 = vmatpush.msra.mxu1 %v3221_v15  ;;  %v1307_v15 = vld [vmem:[#allocation20] sm:$0xff] }
 0x3c5   :  { %1336 = vmatpush.msra.mxu2 %v1307_v15 }
 0x43a   :  { %v986_v37 = vpop.f32.mrf.mxu1 }
 0x43b   :  { %v1029_v38 = vadd.f32 %v986_v37, %v963_v36  ;;  %v1349_v36 = vld [vmem:[%s3692_s12 + $0x18] sm:$0xff]  ;;  %v1382_v37 = vld [vmem:[#allocation21 + $0x18] sm:$0xff] }
 0x43c   :  { %1366 = vmatpush.msrb.mxu3 %v1349_v36 }
 0x43d   :  { %v2407_v39 = vmul.f32 -1.442695, %v1029_v38  ;;  %v3418_v38 = vld [vmem:[#allocation23 + $0x18] sm:$0xff] }
 0x43f   :  { %2538 = vpow2.f32 %v2407_v39 }
 0x440   :  { %v1006_v41 = vpop.f32.mrf.mxu2 }
 0x441   :  { %v1049_v42 = vadd.f32 %v1006_v41, %v964_v40  ;;  %v1026_v54 = vpop.f32.mrf.mxu3  ;;  %v1348_v40 = vld [vmem:[%s3692_s12 + $0x10] sm:$0xff]  ;;  %v1381_v41 = vld [vmem:[#allocation21 + $0x10] sm:$0xff] }
 0x442   :  { %v1027_v57 = vadd.f32 %v3281_v48, %v1026_v54  ;;  %1367 = vmatpush.msrb.mxu3 %v1348_v40  ;;  %v3502_v40 = vld [vmem:[#allocation26 + $0x10] sm:$0xff] }
 0x443   :  { %v2408_v43 = vmul.f32 -1.442695, %v1049_v42  ;;  %v3424_v42 = vld [vmem:[#allocation23 + $0x10] sm:$0xff] }
 0x445   :  { %v2539_v44 = vpop.eup %2538  ;;  %2540 = vpow2.f32 %v2408_v43  ;;  %v1347_v43 = vld [vmem:[%s3692_s12 + $0x8] sm:$0xff] }
 0x446   :  { %v1033_v45 = vadd.f32 1.0, %v2539_v44  ;;  %v1380_v44 = vld [vmem:[#allocation21 + $0x8] sm:$0xff]  ;;  %1368 = vmatpush.msrb.mxu3 %v1347_v43 }
 0x448   :  { %2542 = vrcp.f32 %v1033_v45  ;;  %v1045_v52 = vand.u32 2147483648, %v1033_v45  ;;  %v1043_v9 = vand.u32 2147483647, %v1033_v45  ;;  %vm1039_vm1 = vweird.f32 %v1033_v45  ;;  %1369 = vmatpush.msrb.mxu3 %v1346_v8 }
 0x44a   :  { %v1046_v56 = vor.u32 1.1754944e-38, %v1045_v52  ;;  %vm1044_vm4 = vcmp.eq.f32.partialorder %v1043_v9, 8.507059e+37 }
 0x44b   :  { %v2541_v11 = vpop.eup %2540 }
 0x44c   :  { %v1053_v47 = vadd.f32 1.0, %v2541_v11 }
 0x44e   :  { %v2543_v49 = vpop.eup %2542  ;;  %2544 = vrcp.f32 %v1053_v47  ;;  %v1065_v59 = vand.u32 2147483648, %v1053_v47  ;;  %v1063_v60 = vand.u32 2147483647, %v1053_v47  ;;  %vm1059_vm6 = vweird.f32 %v1053_v47 }
 0x44f   :  { %v1035_v50 = vmul.f32 %v2543_v49, %v1033_v45  ;;  %vm1040_vm0 = vweird.f32 %v2543_v49  ;;  %v3431_v45 = vld [vmem:[#allocation23 + $0x8] sm:$0xff] }
 0x450   :  { %vm1041_vm3 = vmor %vm1039_vm1, %vm1040_vm0  ;;  %v1066_v63 = vor.u32 1.1754944e-38, %v1065_v59  ;;  %vm1064_vm8 = vcmp.eq.f32.partialorder %v1063_v60, 8.507059e+37  ;;  %v1079_v59 = vld [vmem:[#allocation4 + $0xc] sm:$0x3] }
 0x451   :  { %v1036_v51 = vsub.f32 1.0, %v1035_v50 }
 0x453   :  { %v1037_v1 = vmul.f32 %v2543_v49, %v1036_v51 }
 0x454   :  { %v2545_v53 = vpop.eup %2544 }
 0x455   :  { %v1055_v55 = vmul.f32 %v2545_v53, %v1053_v47  ;;  %v1038_v3 = vadd.f32 %v2543_v49, %v1037_v1  ;;  %vm1060_vm5 = vweird.f32 %v2545_v53 }
 0x456   :  { %vm1061_vm7 = vmor %vm1059_vm6, %vm1060_vm5 }
 0x457   :  { %v1056_v14 = vsub.f32 1.0, %v1055_v55  ;;  %v1042_v5 = vsel %vm1041_vm3, %v2543_v49, %v1038_v3 }
 0x458   :  { %v1047_v58 = vsel %vm1044_vm4, %v1046_v56, %v1042_v5 }
 0x459   :  { %v1057_v17 = vmul.f32 %v2545_v53, %v1056_v14  ;;  %v1069_v7 = vmul.f32 %v1047_v58, %v1027_v57 }
 0x45b   :  { %v1058_v61 = vadd.f32 %v2545_v53, %v1057_v17  ;;  %v1070_v62 = vadd.f32 %v1069_v7, %v965_v18 }
 0x45d   :  { %v1062_v0 = vsel %vm1061_vm7, %v2545_v53, %v1058_v61  ;;  %2546 = vtanh.f32 %v1070_v62 }
 0x45e   :  { %v1067_v2 = vsel %vm1064_vm8, %v1066_v63, %v1062_v0 }
 0x45f   :  { %v1072_v4 = vsub.f32 1.0, %v1067_v2  ;;  %v1074_v12 = vmul.f32 %v1067_v2, %v3380_v35 }
 0x463   :  { %v2547_v6 = vpop.eup %2546 }
 0x464   :  { %v1073_v10 = vmul.f32 %v2547_v6, %v1072_v4  ;;  %v3445_v4 = vld [vmem:[#allocation24 + $0x18] sm:$0xff]  ;;  %v3455_v6 = vld [vmem:[#allocation24 + $0x10] sm:$0xff] }
 0x466   :  { %v3396_v19 = vadd.f32 %v1074_v12, %v1073_v10  ;;  %v3460_v10 = vld [vmem:[#allocation24 + $0x8] sm:$0xff]  ;;  %v3468_v12 = vld [vmem:[#allocation24] sm:$0xff] }
 0x468   :  { %1076 = vst.msk [vmem:[#allocation5 + $0xa] sm:$0x3] %vm505_vm11, %v3396_v19  ;;  %2409 = vmatmul.msk.f32.vlgmr.msrb.gmra.mxu0 %vm307_vm2, %v3396_v19  ;;  %2410 = vmatmul.msk.f32.vlgmr.msrb.gmra.mxu1 %vm307_vm2, %v3396_v19 }
 0x469   :  { %2411 = vmatmul.msk.f32.vlgmr.msrb.gmra.mxu2 %vm307_vm2, %v3396_v19  ;;  %1399 = vmatpush.msrb.mxu0 %v1382_v37 }
 0x46a   :  { %1443 = vmatpush.msrb.mxu1 %v3418_v38 }
 0x46b   :  { %1400 = vmatpush.msrb.mxu0 %v1381_v41 }
 0x46c   :  { %1444 = vmatpush.msrb.mxu1 %v3424_v42 }
 0x46d   :  { %1401 = vmatpush.msrb.mxu0 %v1380_v44 }
 0x46e   :  { %1445 = vmatpush.msrb.mxu1 %v3431_v45 }
 0x46f   :  { %1402 = vmatpush.msrb.mxu0 %v1379_v46 }
 0x470   :  { %1446 = vmatpush.msrb.mxu1 %v3437_v13 }
 0x471   :  { %2419 = vmatmul.msk.f32.vlgmr.msra.gmra.mxu2 %vm307_vm2, %v3406_v20 }
 0x4e5   :  { %v1100_v22 = vpop.f32.mrf.mxu0  ;;  %v1120_v24 = vpop.f32.mrf.mxu1 }
 0x4e6   :  { %v1143_v25 = vadd.f32 %v1100_v22, %v1077_v21  ;;  %v1163_v26 = vadd.f32 %v1120_v24, %v1078_v23  ;;  %v3486_v23 = vld [vmem:[%s3699_s19] ss:$0 sm:$0xff]  ;;  %v1191_v24 = vld [vmem:[#allocation2 + $0xe] sm:$0x3] }
 0x4e8   :  { %v2412_v27 = vmul.f32 -1.442695, %v1143_v25  ;;  %v2413_v28 = vmul.f32 -1.442695, %v1163_v26 }
 0x4ea   :  { %2548 = vpow2.f32 %v2412_v27 }
 0x4eb   :  { %2550 = vpow2.f32 %v2413_v28 }
 0x4ec   :  { %v1140_v29 = vpop.f32.mrf.mxu2 }
 0x4ed   :  { %v1141_v3 = vadd.f32 %v3281_v48, %v1140_v29 }
 0x4f0   :  { %v2549_v30 = vpop.eup %2548 }
 0x4f1   :  { %v2551_v31 = vpop.eup %2550  ;;  %v1147_v32 = vadd.f32 1.0, %v2549_v30 }
 0x4f2   :  { %v1167_v34 = vadd.f32 1.0, %v2551_v31  ;;  %v3493_v31 = vld [vmem:[%s3698_s18] ss:$0 sm:$0xff] }
 0x4f3   :  { %2552 = vrcp.f32 %v1147_v32  ;;  %v1159_v52 = vand.u32 2147483648, %v1147_v32  ;;  %v1157_v9 = vand.u32 2147483647, %v1147_v32  ;;  %vm1153_vm10 = vweird.f32 %v1147_v32 }
 0x4f4   :  { %2554 = vrcp.f32 %v1167_v34  ;;  %v1338_v35 = vpop.f32.mrf.mxu2  ;;  %v1179_v5 = vand.u32 2147483648, %v1167_v34  ;;  %vm1173_vm15 = vweird.f32 %v1167_v34  ;;  %v1177_v17 = vand.u32 2147483647, %v1167_v34 }
 0x4f5   :  { %v1339_v39 = vadd.f32 %v3413_v33, %v1338_v35  ;;  %v1160_v55 = vor.u32 1.1754944e-38, %v1159_v52  ;;  %vm1158_vm13 = vcmp.eq.f32.partialorder %v1157_v9, 8.507059e+37 }
 0x4f6   :  { %v1180_v18 = vor.u32 1.1754944e-38, %v1179_v5  ;;  %vm1178_vm1 = vcmp.eq.f32.partialorder %v1177_v17, 8.507059e+37  ;;  %v1193_v17 = vld [vmem:[#allocation4 + $0xe] sm:$0x3] }
 0x4f7   :  { %1344 = vst.msk [vmem:[#allocation2] sm:$0xff] %vm307_vm2, %v1339_v39  ;;  %v3500_v39 = vld [vmem:[#allocation26 + $0x18] sm:$0xff] }
 0x4f8   :  { %1483 = vmatpush.msrb.mxu2 %v3500_v39 }
 0x4f9   :  { %v2553_v11 = vpop.eup %2552 }
 0x4fa   :  { %v2555_v47 = vpop.eup %2554  ;;  %v1149_v15 = vmul.f32 %v2553_v11, %v1147_v32  ;;  %vm1154_vm9 = vweird.f32 %v2553_v11  ;;  %1484 = vmatpush.msrb.mxu2 %v3502_v40 }
 0x4fb   :  { %v1169_v49 = vmul.f32 %v2555_v47, %v1167_v34  ;;  %vm1155_vm12 = vmor %vm1153_vm10, %vm1154_vm9  ;;  %vm1174_vm14 = vweird.f32 %v2555_v47 }
 0x4fc   :  { %v1150_v50 = vsub.f32 1.0, %v1149_v15  ;;  %vm1175_vm0 = vmor %vm1173_vm15, %vm1174_vm14  ;;  %v3513_v15 = vld [vmem:[#allocation26] sm:$0xff] }
 0x4fd   :  { %v1170_v51 = vsub.f32 1.0, %v1169_v49 }
 0x4fe   :  { %v1151_v1 = vmul.f32 %v2553_v11, %v1150_v50 }
 0x4ff   :  { %v1171_v53 = vmul.f32 %v2555_v47, %v1170_v51 }
 0x500   :  { %v1152_v54 = vadd.f32 %v2553_v11, %v1151_v1 }
 0x501   :  { %v1172_v14 = vadd.f32 %v2555_v47, %v1171_v53 }
 0x502   :  { %v1156_v56 = vsel %vm1155_vm12, %v2553_v11, %v1152_v54  ;;  %v2648_v54 = vld [vmem:[#allocation18] ss:$0 sm:$0xff] }
 0x503   :  { %v1161_v57 = vsel %vm1158_vm13, %v1160_v55, %v1156_v56  ;;  %v1176_v60 = vsel %vm1175_vm0, %v2555_v47, %v1172_v14  ;;  %v3511_v47 = vld [vmem:[#allocation26 + $0x8] sm:$0xff] }
 0x504   :  { %v1183_v58 = vmul.f32 %v1161_v57, %v1141_v3  ;;  %v1181_v61 = vsel %vm1178_vm1, %v1180_v18, %v1176_v60  ;;  %1485 = vmatpush.msrb.mxu2 %v3511_v47 }
 0x505   :  { %v1186_v62 = vsub.f32 1.0, %v1181_v61  ;;  %v1188_v0 = vmul.f32 %v1181_v61, %v3396_v19  ;;  %v1192_v19 = vld [vmem:[#allocation3 + $0xe] sm:$0x3] }
 0x506   :  { %v1184_v7 = vadd.f32 %v1183_v58, %v1079_v59  ;;  %1486 = vmatpush.msrb.mxu2 %v3513_v15 }
 0x508   :  { %2556 = vtanh.f32 %v1184_v7  ;;  %1669 = vmatpush.msra.mxu2 %v3418_v38 }
 0x50a   :  { %1670 = vmatpush.msra.mxu2 %v3424_v42 }
 0x50c   :  { %1671 = vmatpush.msra.mxu2 %v3431_v45 }
 0x50e   :  { %v2557_v63 = vpop.eup %2556  ;;  %1672 = vmatpush.msra.mxu2 %v3437_v13 }
 0x50f   :  { %v1187_v48 = vmul.f32 %v2557_v63, %v1186_v62 }
 0x511   :  { %v3443_v2 = vadd.f32 %v1188_v0, %v1187_v48 }
 0x513   :  { %1190 = vst.msk [vmem:[#allocation5 + $0xc] sm:$0x3] %vm505_vm11, %v3443_v2  ;;  %2414 = vmatmul.msk.f32.vlgmr.msra.gmra.mxu3 %vm307_vm2, %v3443_v2  ;;  %2415 = vmatmul.msk.f32.vlgmr.msra.gmra.mxu0 %vm307_vm2, %v3443_v2 }
 0x514   :  { %2416 = vmatmul.msk.f32.vlgmr.msra.gmra.mxu1 %vm307_vm2, %v3443_v2  ;;  %1556 = vmatpush.msra.mxu3 %v3418_v38 }
 0x515   :  { %1463 = vmatpush.msra.mxu1 %v3445_v4  ;;  %1576 = vmatpush.msra.mxu0 %v3445_v4 }
 0x516   :  { %1557 = vmatpush.msra.mxu3 %v3424_v42 }
 0x517   :  { %1464 = vmatpush.msra.mxu1 %v3455_v6  ;;  %1577 = vmatpush.msra.mxu0 %v3455_v6 }
 0x518   :  { %1558 = vmatpush.msra.mxu3 %v3431_v45 }
 0x519   :  { %1465 = vmatpush.msra.mxu1 %v3460_v10  ;;  %1578 = vmatpush.msra.mxu0 %v3460_v10 }
 0x51a   :  { %1559 = vmatpush.msra.mxu3 %v3437_v13 }
 0x51b   :  { %2421 = vmatmul.msk.f32.vlgmr.msrb.gmra.mxu3 %vm307_vm2, %v3406_v20  ;;  %2423 = vmatmul.msk.f32.vlgmr.msrb.gmra.mxu0 %vm307_vm2, %v3406_v20 }
 0x51c   :  { %1447 = vmatmul.f32.vlgmr.msrb.gmra.mxu1 %v2990_v16  ;;  %1579 = vmatpush.msra.mxu0 %v3468_v12 }
 0x51d   :  { %1466 = vmatpush.msra.mxu1 %v3468_v12  ;;  %1689 = vmatpush.msrb.mxu3 %v3445_v4 }
 0x51e   :  { %1709 = vmatpush.msrb.mxu0 %v3500_v39 }
 0x51f   :  { %1690 = vmatpush.msrb.mxu3 %v3455_v6  ;;  %1596 = vmatpush.msrb.mxu1 %v3500_v39 }
 0x520   :  { %1710 = vmatpush.msrb.mxu0 %v3502_v40 }
 0x521   :  { %1691 = vmatpush.msrb.mxu3 %v3460_v10  ;;  %1597 = vmatpush.msrb.mxu1 %v3502_v40 }
 0x522   :  { %1711 = vmatpush.msrb.mxu0 %v3511_v47 }
 0x523   :  { %1692 = vmatpush.msrb.mxu3 %v3468_v12  ;;  %1598 = vmatpush.msrb.mxu1 %v3511_v47 }
 0x524   :  { %1467 = vmatmul.f32.vlgmr.msra.gmra.mxu1 %v2990_v16  ;;  %1712 = vmatpush.msrb.mxu0 %v3513_v15 }
 0x525   :  { %1599 = vmatpush.msrb.mxu1 %v3513_v15 }
 0x527   :  { %1782 = vmatpush.msra.mxu1 %v3418_v38 }
 0x529   :  { %1783 = vmatpush.msra.mxu1 %v3424_v42 }
 0x52b   :  { %1784 = vmatpush.msra.mxu1 %v3431_v45 }
 0x52d   :  { %1785 = vmatpush.msra.mxu1 %v3437_v13 }
 0x590   :  { %v1234_v21 = vpop.f32.mrf.mxu0 }
 0x591   :  { %v1277_v22 = vadd.f32 %v1234_v21, %v1192_v19  ;;  %v1254_v1 = vpop.f32.mrf.mxu1  ;;  %v1428_v21 = vld [vmem:[#allocation2] sm:$0x3] }
 0x592   :  { %v1255_v55 = vadd.f32 %v2648_v54, %v1254_v1 }
 0x593   :  { %v2418_v20 = vmul.f32 -1.442695, %v1277_v22 }
 0x595   :  { %2558 = vpow2.f32 %v2418_v20 }
 0x596   :  { %v1214_v25 = vpop.f32.mrf.mxu3 }
 0x597   :  { %v1257_v26 = vadd.f32 %v1214_v25, %v1191_v24 }
 0x598   :  { %v1404_v27 = vpop.f32.mrf.mxu0 }
 0x599   :  { %v2417_v28 = vmul.f32 -1.442695, %v1257_v26  ;;  %v1405_v29 = vadd.f32 %v3486_v23, %v1404_v27 }
 0x59b   :  { %v2559_v30 = vpop.eup %2558  ;;  %2560 = vpow2.f32 %v2417_v28  ;;  %1410 = vst.msk [vmem:[#allocation4] sm:$0xff] %vm307_vm2, %v1405_v29 }
 0x59c   :  { %v3495_v32 = vadd.f32 1.0, %v2559_v30 }
 0x59e   :  { %v1371_v34 = vpop.f32.mrf.mxu3  ;;  %2562 = vrcp.f32 %v3495_v32  ;;  %v1293_v57 = vand.u32 2147483648, %v3495_v32  ;;  %vm1287_vm8 = vweird.f32 %v3495_v32  ;;  %v1291_v58 = vand.u32 2147483647, %v3495_v32 }
 0x59f   :  { %v1372_v35 = vadd.f32 %v3493_v31, %v1371_v34 }
 0x5a0   :  { %v1294_v60 = vor.u32 1.1754944e-38, %v1293_v57  ;;  %vm1292_vm10 = vcmp.eq.f32.partialorder %v1291_v58, 8.507059e+37 }
 0x5a1   :  { %v2561_v36 = vpop.eup %2560  ;;  %1377 = vst.msk [vmem:[#allocation3] sm:$0xff] %vm307_vm2, %v1372_v35 }
 0x5a2   :  { %v1261_v37 = vadd.f32 1.0, %v2561_v36 }
 0x5a4   :  { %2564 = vrcp.f32 %v1261_v37  ;;  %v2563_v41 = vpop.eup %2562  ;;  %v1273_v49 = vand.u32 2147483648, %v1261_v37  ;;  %v1271_v51 = vand.u32 2147483647, %v1261_v37  ;;  %vm1267_vm4 = vweird.f32 %v1261_v37 }
 0x5a5   :  { %v1283_v43 = vmul.f32 %v2563_v41, %v3495_v32  ;;  %vm1288_vm7 = vweird.f32 %v2563_v41 }
 0x5a6   :  { %v1274_v53 = vor.u32 1.1754944e-38, %v1273_v49  ;;  %vm1272_vm6 = vcmp.eq.f32.partialorder %v1271_v51, 8.507059e+37  ;;  %vm1289_vm9 = vmor %vm1287_vm8, %vm1288_vm7 }
 0x5a7   :  { %v1284_v46 = vsub.f32 1.0, %v1283_v43 }
 0x5a8   :  { %v1429_v24 = vld [vmem:[#allocation3] sm:$0x3] }
 0x5a9   :  { %v1285_v52 = vmul.f32 %v2563_v41, %v1284_v46 }
 0x5aa   :  { %v2565_v44 = vpop.eup %2564 }
 0x5ab   :  { %v1263_v8 = vmul.f32 %v2565_v44, %v1261_v37  ;;  %vm1268_vm3 = vweird.f32 %v2565_v44  ;;  %v1286_v56 = vadd.f32 %v2563_v41, %v1285_v52 }
 0x5ac   :  { %vm1269_vm5 = vmor %vm1267_vm4, %vm1268_vm3 }
 0x5ad   :  { %v1264_v11 = vsub.f32 1.0, %v1263_v8  ;;  %v1290_v7 = vsel %vm1289_vm9, %v2563_v41, %v1286_v56 }
 0x5ae   :  { %v1295_v18 = vsel %vm1292_vm10, %v1294_v60, %v1290_v7 }
 0x5af   :  { %v1265_v50 = vmul.f32 %v2565_v44, %v1264_v11  ;;  %v1300_v61 = vsub.f32 1.0, %v1295_v18  ;;  %v1302_v63 = vmul.f32 %v1295_v18, %v3443_v2  ;;  %v1448_v2 = vpop.f32.mrf.mxu1 }
 0x5b0   :  { %v1491_v22 = vadd.f32 %v1448_v2, %v1428_v21  ;;  %v1538_v21 = vld [vmem:[#allocation2 + $0x2] sm:$0x3] }
 0x5b1   :  { %v1266_v9 = vadd.f32 %v2565_v44, %v1265_v50 }
 0x5b2   :  { %v2425_v20 = vmul.f32 -1.442695, %v1491_v22 }
 0x5b3   :  { %v1270_v3 = vsel %vm1269_vm5, %v2565_v44, %v1266_v9 }
 0x5b4   :  { %v1275_v14 = vsel %vm1272_vm6, %v1274_v53, %v1270_v3 }
 0x5b5   :  { %v1297_v5 = vmul.f32 %v1275_v14, %v1255_v55 }
 0x5b7   :  { %v1298_v59 = vadd.f32 %v1297_v5, %v1193_v17  ;;  %v1468_v25 = vpop.f32.mrf.mxu1  ;;  %v1430_v5 = vld [vmem:[#allocation4] sm:$0x3] }
 0x5b8   :  { %v1511_v26 = vadd.f32 %v1468_v25, %v1429_v24 }
 0x5b9   :  { %2566 = vtanh.f32 %v1298_v59 }
 0x5ba   :  { %2568 = vpow2.f32 %v2425_v20  ;;  %v2426_v27 = vmul.f32 -1.442695, %v1511_v26 }
 0x5bc   :  { %2570 = vpow2.f32 %v2426_v27 }
 0x5bf   :  { %v2567_v62 = vpop.eup %2566 }
 0x5c0   :  { %v1301_v48 = vmul.f32 %v2567_v62, %v1300_v61  ;;  %v2569_v28 = vpop.eup %2568 }
 0x5c2   :  { %v1303_v0 = vadd.f32 %v1302_v63, %v1301_v48  ;;  %v2571_v29 = vpop.eup %2570  ;;  %v1539_v48 = vld [vmem:[#allocation3 + $0x2] sm:$0x3] }
 0x5c3   :  { %v1515_v30 = vadd.f32 1.0, %v2571_v29 }
 0x5c4   :  { %1304 = vst.msk [vmem:[#allocation5 + $0xe] sm:$0x3] %vm505_vm11, %v1303_v0 }
 0x5c5   :  { %v1527_v56 = vand.u32 2147483648, %v1515_v30  ;;  %vm1521_vm0 = vweird.f32 %v1515_v30  ;;  %v1525_v57 = vand.u32 2147483647, %v1515_v30 }
 0x5c7   :  { %v1528_v59 = vor.u32 1.1754944e-38, %v1527_v56  ;;  %vm1526_vm3 = vcmp.eq.f32.partialorder %v1525_v57, 8.507059e+37 }
 0x5cb   :  { %v1306_v19 = vld [vmem:[#allocation5 + $0x8] sm:$0xff] }
 0x5cc   :  { %2420 = vmatmul.msk.f32.gmra.mxu2 %vm307_vm2, %v1306_v19  ;;  %2422 = vmatmul.msk.f32.gmra.mxu3 %vm307_vm2, %v1306_v19 }
 0x5cd   :  { %2424 = vmatmul.msk.f32.gmra.mxu0 %vm307_vm2, %v1306_v19 }
 0x5d4   :  { %1487 = vmatmul.f32.vlgmr.msrb.gmra.mxu2 %v2990_v16  ;;  %v1495_v16 = vadd.f32 1.0, %v2569_v28 }
 0x5d5   :  { %1802 = vmatpush.msrb.mxu2 %v3445_v4 }
 0x5d6   :  { %2572 = vrcp.f32 %v1495_v16  ;;  %v1507_v52 = vand.u32 2147483648, %v1495_v16  ;;  %vm1501_vm12 = vweird.f32 %v1495_v16  ;;  %v1505_v1 = vand.u32 2147483647, %v1495_v16 }
 0x5d7   :  { %1803 = vmatpush.msrb.mxu2 %v3455_v6  ;;  %2574 = vrcp.f32 %v1515_v30 }
 0x5d8   :  { %vm1506_vm14 = vcmp.eq.f32.partialorder %v1505_v1, 8.507059e+37 }
 0x5d9   :  { %1804 = vmatpush.msrb.mxu2 %v3460_v10 }
 0x5db   :  { %1805 = vmatpush.msrb.mxu2 %v3468_v12 }
 0x5dc   :  { %v2573_v32 = vpop.eup %2572 }
 0x5dd   :  { %v1497_v34 = vmul.f32 %v2573_v32, %v1495_v16  ;;  %v2575_v35 = vpop.eup %2574  ;;  %vm1502_vm11 = vweird.f32 %v2573_v32 }
 0x5de   :  { %v1517_v43 = vmul.f32 %v2575_v35, %v1515_v30  ;;  %vm1503_vm13 = vmor %vm1501_vm12, %vm1502_vm11  ;;  %vm1522_vm15 = vweird.f32 %v2575_v35 }
 0x5df   :  { %v1498_v37 = vsub.f32 1.0, %v1497_v34  ;;  %vm1523_vm1 = vmor %vm1521_vm0, %vm1522_vm15 }
 0x5e0   :  { %v1518_v50 = vsub.f32 1.0, %v1517_v43 }
 0x5e1   :  { %v1499_v44 = vmul.f32 %v2573_v32, %v1498_v37 }
 0x5e2   :  { %v1519_v9 = vmul.f32 %v2575_v35, %v1518_v50 }
 0x5e3   :  { %v1500_v51 = vadd.f32 %v2573_v32, %v1499_v44 }
 0x5e4   :  { %v1520_v55 = vadd.f32 %v2575_v35, %v1519_v9 }
 0x5e6   :  { %v1524_v17 = vsel %vm1523_vm1, %v2575_v35, %v1520_v55 }
 0x5e7   :  { %v1529_v7 = vsel %vm1526_vm3, %v1528_v59, %v1524_v17  ;;  %v1652_v59 = vld [vmem:[#allocation3 + $0x4] sm:$0x3] }
 0x5e8   :  { %v1534_v60 = vsub.f32 1.0, %v1529_v7  ;;  %v1536_v62 = vmul.f32 0.0, %v1529_v7 }
 0x64a   :  { %v1407_v36 = vpop.f32.mrf.mxu0 }
 0x64b   :  { %v1408_v41 = vadd.f32 %v3486_v23, %v1407_v36  ;;  %v3551_v23 = vld [vmem:[%s3700_s20] ss:$0 sm:$0xff] }
 0x64d   :  { %1411 = vst.msk [vmem:[#allocation4 + $0x8] sm:$0xff] %vm307_vm2, %v1408_v41 }
 0x64f   :  { %v1341_v8 = vpop.f32.mrf.mxu2  ;;  %v1374_v46 = vpop.f32.mrf.mxu3 }
 0x650   :  { %v1342_v11 = vadd.f32 %v3413_v33, %v1341_v8  ;;  %v1375_v49 = vadd.f32 %v3493_v31, %v1374_v46  ;;  %v1504_v33 = vsel %vm1503_vm13, %v2573_v32, %v1500_v51  ;;  %v1508_v31 = vor.u32 1.1754944e-38, %v1507_v52 }
 0x652   :  { %1345 = vst.msk [vmem:[#allocation2 + $0x8] sm:$0xff] %vm307_vm2, %v1342_v11  ;;  %v1509_v3 = vsel %vm1506_vm14, %v1508_v31, %v1504_v33  ;;  %v1540_v33 = vld [vmem:[#allocation4 + $0x2] sm:$0x3] }
 0x653   :  { %1378 = vst.msk [vmem:[#allocation3 + $0x8] sm:$0xff] %vm307_vm2, %v1375_v49 }
 0x657   :  { %v1488_v53 = vpop.f32.mrf.mxu2 }
 0x658   :  { %v1489_v54 = vadd.f32 %v3551_v23, %v1488_v53 }
 0x65a   :  { %v1531_v14 = vmul.f32 %v1509_v3, %v1489_v54 }
 0x65c   :  { %v1532_v58 = vadd.f32 %v1531_v14, %v1430_v5 }
 0x65e   :  { %2576 = vtanh.f32 %v1532_v58  ;;  %v1651_v58 = vld [vmem:[#allocation2 + $0x4] sm:$0x3] }
 0x664   :  { %v2577_v18 = vpop.eup %2576 }
 0x665   :  { %v1535_v61 = vmul.f32 %v2577_v18, %v1534_v60 }
 0x667   :  { %v3554_v63 = vadd.f32 %v1536_v62, %v1535_v61 }
 0x669   :  { %2427 = vmatmul.msk.f32.vlgmr.msra.gmra.mxu3 %vm307_vm2, %v3554_v63  ;;  %2428 = vmatmul.msk.f32.vlgmr.msra.gmra.mxu0 %vm307_vm2, %v3554_v63 }
 0x66a   :  { %2429 = vmatmul.msk.f32.vlgmr.msrb.gmra.mxu1 %vm307_vm2, %v3554_v63  ;;  %1822 = vmatpush.msra.mxu3 %v3500_v39 }
 0x66b   :  { %1895 = vmatpush.msra.mxu0 %v3418_v38  ;;  %1915 = vmatpush.msrb.mxu1 %v3445_v4 }
 0x66c   :  { %1823 = vmatpush.msra.mxu3 %v3502_v40 }
 0x66d   :  { %1896 = vmatpush.msra.mxu0 %v3424_v42  ;;  %1916 = vmatpush.msrb.mxu1 %v3455_v6 }
 0x66e   :  { %1824 = vmatpush.msra.mxu3 %v3511_v47 }
 0x66f   :  { %1897 = vmatpush.msra.mxu0 %v3431_v45  ;;  %1917 = vmatpush.msrb.mxu1 %v3460_v10 }
 0x670   :  { %1825 = vmatpush.msra.mxu3 %v3513_v15 }
 0x671   :  { %1898 = vmatpush.msra.mxu0 %v3437_v13  ;;  %1918 = vmatpush.msrb.mxu1 %v3468_v12 }
 0x6e6   :  { %v1581_v0 = vpop.f32.mrf.mxu0 }
 0x6e7   :  { %v1624_v19 = vadd.f32 %v1581_v0, %v1539_v48  ;;  %v1601_v44 = vpop.f32.mrf.mxu1 }
 0x6e8   :  { %v1602_v11 = vadd.f32 %v3551_v23, %v1601_v44 }
 0x6e9   :  { %v2431_v2 = vmul.f32 -1.442695, %v1624_v19 }
 0x6eb   :  { %2578 = vpow2.f32 %v2431_v2 }
 0x6ec   :  { %v1561_v22 = vpop.f32.mrf.mxu3 }
 0x6ed   :  { %v1604_v20 = vadd.f32 %v1561_v22, %v1538_v21 }
 0x6ef   :  { %v2430_v24 = vmul.f32 -1.442695, %v1604_v20 }
 0x6f1   :  { %v2579_v25 = vpop.eup %2578  ;;  %2580 = vpow2.f32 %v2430_v24 }
 0x6f2   :  { %v1628_v26 = vadd.f32 1.0, %v2579_v25 }
 0x6f4   :  { %2582 = vrcp.f32 %v1628_v26  ;;  %v1640_v52 = vand.u32 2147483648, %v1628_v26  ;;  %vm1634_vm9 = vweird.f32 %v1628_v26  ;;  %v1638_v9 = vand.u32 2147483647, %v1628_v26 }
 0x6f6   :  { %v1641_v54 = vor.u32 1.1754944e-38, %v1640_v52  ;;  %vm1639_vm11 = vcmp.eq.f32.partialorder %v1638_v9, 8.507059e+37 }
 0x6f7   :  { %v2581_v27 = vpop.eup %2580 }
 0x6f8   :  { %v1608_v28 = vadd.f32 1.0, %v2581_v27 }
 0x6fa   :  { %2584 = vrcp.f32 %v1608_v28  ;;  %v2583_v16 = vpop.eup %2582  ;;  %v1620_v36 = vand.u32 2147483648, %v1608_v28  ;;  %v1618_v41 = vand.u32 2147483647, %v1608_v28  ;;  %vm1614_vm5 = vweird.f32 %v1608_v28 }
 0x6fb   :  { %v1630_v29 = vmul.f32 %v2583_v16, %v1628_v26  ;;  %vm1635_vm8 = vweird.f32 %v2583_v16 }
 0x6fc   :  { %v1621_v46 = vor.u32 1.1754944e-38, %v1620_v36  ;;  %vm1619_vm7 = vcmp.eq.f32.partialorder %v1618_v41, 8.507059e+37  ;;  %vm1636_vm10 = vmor %vm1634_vm9, %vm1635_vm8 }
 0x6fd   :  { %v1631_v34 = vsub.f32 1.0, %v1630_v29 }
 0x6ff   :  { %v1632_v43 = vmul.f32 %v2583_v16, %v1631_v34 }
 0x700   :  { %v2585_v30 = vpop.eup %2584 }
 0x701   :  { %v1610_v32 = vmul.f32 %v2585_v30, %v1608_v28  ;;  %vm1615_vm4 = vweird.f32 %v2585_v30  ;;  %v1633_v50 = vadd.f32 %v2583_v16, %v1632_v43 }
 0x702   :  { %vm1616_vm6 = vmor %vm1614_vm5, %vm1615_vm4 }
 0x703   :  { %v1611_v35 = vsub.f32 1.0, %v1610_v32  ;;  %v1637_v31 = vsel %vm1636_vm10, %v2583_v16, %v1633_v50 }
 0x704   :  { %v1642_v55 = vsel %vm1639_vm11, %v1641_v54, %v1637_v31 }
 0x705   :  { %v1612_v37 = vmul.f32 %v2585_v30, %v1611_v35  ;;  %v1647_v3 = vsub.f32 1.0, %v1642_v55  ;;  %v1649_v57 = vmul.f32 %v1642_v55, %v3554_v63 }
 0x707   :  { %v1613_v8 = vadd.f32 %v2585_v30, %v1612_v37 }
 0x709   :  { %v1617_v49 = vsel %vm1616_vm6, %v2585_v30, %v1613_v8  ;;  %v1653_v8 = vld [vmem:[#allocation4 + $0x4] sm:$0x3] }
 0x70a   :  { %v1622_v51 = vsel %vm1619_vm7, %v1621_v46, %v1617_v49 }
 0x70b   :  { %v1644_v1 = vmul.f32 %v1622_v51, %v1602_v11 }
 0x70d   :  { %v1645_v53 = vadd.f32 %v1644_v1, %v1540_v33 }
 0x70f   :  { %2586 = vtanh.f32 %v1645_v53  ;;  %v1764_v53 = vld [vmem:[#allocation2 + $0x6] sm:$0x3] }
 0x715   :  { %v2587_v56 = vpop.eup %2586 }
 0x716   :  { %v1648_v14 = vmul.f32 %v2587_v56, %v1647_v3  ;;  %v1765_v3 = vld [vmem:[#allocation3 + $0x6] sm:$0x3] }
 0x718   :  { %v3576_v5 = vadd.f32 %v1649_v57, %v1648_v14 }
 0x71a   :  { %2432 = vmatmul.msk.f32.vlgmr.msra.gmra.mxu2 %vm307_vm2, %v3576_v5  ;;  %2433 = vmatmul.msk.f32.vlgmr.msrb.gmra.mxu3 %vm307_vm2, %v3576_v5 }
 0x71b   :  { %2434 = vmatmul.msk.f32.vlgmr.msrb.gmra.mxu0 %vm307_vm2, %v3576_v5  ;;  %1935 = vmatpush.msra.mxu2 %v3500_v39 }
 0x71c   :  { %2008 = vmatpush.msrb.mxu3 %v3418_v38  ;;  %2028 = vmatpush.msrb.mxu0 %v3445_v4 }
 0x71d   :  { %1936 = vmatpush.msra.mxu2 %v3502_v40 }
 0x71e   :  { %2009 = vmatpush.msrb.mxu3 %v3424_v42  ;;  %2029 = vmatpush.msrb.mxu0 %v3455_v6 }
 0x71f   :  { %1937 = vmatpush.msra.mxu2 %v3511_v47 }
 0x720   :  { %2010 = vmatpush.msrb.mxu3 %v3431_v45  ;;  %2030 = vmatpush.msrb.mxu0 %v3460_v10 }
 0x721   :  { %1938 = vmatpush.msra.mxu2 %v3513_v15 }
 0x722   :  { %2011 = vmatpush.msrb.mxu3 %v3437_v13  ;;  %2031 = vmatpush.msrb.mxu0 %v3468_v12 }
 0x798   :  { %v1714_v16 = vpop.f32.mrf.mxu0 }
 0x799   :  { %v1715_v34 = vadd.f32 %v3551_v23, %v1714_v16 }
 0x79d   :  { %v1674_v17 = vpop.f32.mrf.mxu2  ;;  %v1694_v7 = vpop.f32.mrf.mxu3 }
 0x79e   :  { %v1717_v60 = vadd.f32 %v1674_v17, %v1651_v58  ;;  %v1737_v18 = vadd.f32 %v1694_v7, %v1652_v59 }
 0x7a0   :  { %v2435_v61 = vmul.f32 -1.442695, %v1717_v60  ;;  %v2436_v62 = vmul.f32 -1.442695, %v1737_v18 }
 0x7a2   :  { %2588 = vpow2.f32 %v2435_v61 }
 0x7a3   :  { %2590 = vpow2.f32 %v2436_v62 }
 0x7a8   :  { %v2589_v63 = vpop.eup %2588 }
 0x7a9   :  { %v2591_v48 = vpop.eup %2590  ;;  %v1721_v0 = vadd.f32 1.0, %v2589_v63 }
 0x7aa   :  { %v1741_v19 = vadd.f32 1.0, %v2591_v48 }
 0x7ab   :  { %2592 = vrcp.f32 %v1721_v0  ;;  %v1733_v25 = vand.u32 2147483648, %v1721_v0  ;;  %v1731_v28 = vand.u32 2147483647, %v1721_v0  ;;  %vm1727_vm13 = vweird.f32 %v1721_v0 }
 0x7ac   :  { %2594 = vrcp.f32 %v1741_v19  ;;  %v1753_v43 = vand.u32 2147483648, %v1741_v19  ;;  %vm1747_vm1 = vweird.f32 %v1741_v19  ;;  %v1751_v44 = vand.u32 2147483647, %v1741_v19 }
 0x7ad   :  { %v1734_v32 = vor.u32 1.1754944e-38, %v1733_v25  ;;  %vm1732_vm15 = vcmp.eq.f32.partialorder %v1731_v28, 8.507059e+37 }
 0x7ae   :  { %v1754_v49 = vor.u32 1.1754944e-38, %v1753_v43  ;;  %vm1752_vm4 = vcmp.eq.f32.partialorder %v1751_v44, 8.507059e+37 }
 0x7b1   :  { %v2593_v2 = vpop.eup %2592 }
 0x7b2   :  { %v2595_v21 = vpop.eup %2594  ;;  %v1723_v22 = vmul.f32 %v2593_v2, %v1721_v0  ;;  %vm1728_vm12 = vweird.f32 %v2593_v2 }
 0x7b3   :  { %v1743_v20 = vmul.f32 %v2595_v21, %v1741_v19  ;;  %vm1729_vm14 = vmor %vm1727_vm13, %vm1728_vm12  ;;  %vm1748_vm0 = vweird.f32 %v2595_v21 }
 0x7b4   :  { %v1724_v24 = vsub.f32 1.0, %v1723_v22  ;;  %vm1749_vm3 = vmor %vm1747_vm1, %vm1748_vm0 }
 0x7b5   :  { %v1744_v26 = vsub.f32 1.0, %v1743_v20 }
 0x7b6   :  { %v1725_v27 = vmul.f32 %v2593_v2, %v1724_v24 }
 0x7b7   :  { %v1745_v29 = vmul.f32 %v2595_v21, %v1744_v26 }
 0x7b8   :  { %v1726_v30 = vadd.f32 %v2593_v2, %v1725_v27 }
 0x7b9   :  { %v1746_v37 = vadd.f32 %v2595_v21, %v1745_v29  ;;  %v1766_v29 = vld [vmem:[#allocation4 + $0x6] sm:$0x3] }
 0x7ba   :  { %v1730_v35 = vsel %vm1729_vm14, %v2593_v2, %v1726_v30 }
 0x7bb   :  { %v1735_v36 = vsel %vm1732_vm15, %v1734_v32, %v1730_v35  ;;  %v1750_v11 = vsel %vm1749_vm3, %v2595_v21, %v1746_v37 }
 0x7bc   :  { %v1757_v41 = vmul.f32 %v1735_v36, %v1715_v34  ;;  %v1755_v50 = vsel %vm1752_vm4, %v1754_v49, %v1750_v11 }
 0x7bd   :  { %v1760_v51 = vsub.f32 1.0, %v1755_v50  ;;  %v1762_v9 = vmul.f32 %v1755_v50, %v3576_v5 }
 0x7be   :  { %v1758_v46 = vadd.f32 %v1757_v41, %v1653_v8 }
 0x7c0   :  { %2596 = vtanh.f32 %v1758_v46  ;;  %v1878_v46 = vld [vmem:[#allocation3 + $0x8] sm:$0x3] }
 0x7c6   :  { %v2597_v52 = vpop.eup %2596 }
 0x7c7   :  { %v1761_v1 = vmul.f32 %v2597_v52, %v1760_v51 }
 0x7c9   :  { %v3598_v33 = vadd.f32 %v1762_v9, %v1761_v1 }
 0x7cb   :  { %2437 = vmatmul.msk.f32.vlgmr.msra.gmra.mxu1 %vm307_vm2, %v3598_v33  ;;  %2438 = vmatmul.msk.f32.vlgmr.msrb.gmra.mxu2 %vm307_vm2, %v3598_v33 }
 0x7cc   :  { %2439 = vmatmul.msk.f32.vlgmr.msra.gmra.mxu3 %vm307_vm2, %v3598_v33  ;;  %2048 = vmatpush.msra.mxu1 %v3500_v39 }
 0x7cd   :  { %2121 = vmatpush.msrb.mxu2 %v3418_v38  ;;  %2141 = vmatpush.msra.mxu3 %v3445_v4 }
 0x7ce   :  { %2049 = vmatpush.msra.mxu1 %v3502_v40 }
 0x7cf   :  { %2122 = vmatpush.msrb.mxu2 %v3424_v42  ;;  %2142 = vmatpush.msra.mxu3 %v3455_v6 }
 0x7d0   :  { %2050 = vmatpush.msra.mxu1 %v3511_v47 }
 0x7d1   :  { %2123 = vmatpush.msrb.mxu2 %v3431_v45  ;;  %2143 = vmatpush.msra.mxu3 %v3460_v10 }
 0x7d2   :  { %2051 = vmatpush.msra.mxu1 %v3513_v15 }
 0x7d3   :  { %2124 = vmatpush.msrb.mxu2 %v3437_v13  ;;  %2144 = vmatpush.msra.mxu3 %v3468_v12 }
 0x848   :  { %v1787_v31 = vpop.f32.mrf.mxu1 }
 0x849   :  { %v1830_v54 = vadd.f32 %v1787_v31, %v1764_v53 }
 0x84b   :  { %v2440_v55 = vmul.f32 -1.442695, %v1830_v54 }
 0x84d   :  { %2598 = vpow2.f32 %v2440_v55 }
 0x84e   :  { %v1807_v56 = vpop.f32.mrf.mxu2 }
 0x84f   :  { %v1850_v14 = vadd.f32 %v1807_v56, %v1765_v3  ;;  %v1827_v0 = vpop.f32.mrf.mxu3 }
 0x850   :  { %v1828_v20 = vadd.f32 %v3551_v23, %v1827_v0 }
 0x851   :  { %v2441_v57 = vmul.f32 -1.442695, %v1850_v14 }
 0x853   :  { %v2599_v5 = vpop.eup %2598  ;;  %2600 = vpow2.f32 %v2441_v57 }
 0x854   :  { %v1834_v58 = vadd.f32 1.0, %v2599_v5 }
 0x856   :  { %2602 = vrcp.f32 %v1834_v58  ;;  %v1846_v61 = vand.u32 2147483648, %v1834_v58  ;;  %v1844_v63 = vand.u32 2147483647, %v1834_v58  ;;  %vm1840_vm6 = vweird.f32 %v1834_v58 }
 0x858   :  { %v1847_v21 = vor.u32 1.1754944e-38, %v1846_v61  ;;  %vm1845_vm8 = vcmp.eq.f32.partialorder %v1844_v63, 8.507059e+37  ;;  %v1879_v61 = vld [vmem:[#allocation4 + $0x8] sm:$0x3] }
 0x859   :  { %v2601_v17 = vpop.eup %2600 }
 0x85a   :  { %v1854_v59 = vadd.f32 1.0, %v2601_v17 }
 0x85c   :  { %v2603_v7 = vpop.eup %2602  ;;  %2604 = vrcp.f32 %v1854_v59  ;;  %v1866_v27 = vand.u32 2147483648, %v1854_v59  ;;  %v1864_v16 = vand.u32 2147483647, %v1854_v59  ;;  %vm1860_vm10 = vweird.f32 %v1854_v59 }
 0x85d   :  { %v1836_v60 = vmul.f32 %v2603_v7, %v1834_v58  ;;  %vm1841_vm5 = vweird.f32 %v2603_v7 }
 0x85e   :  { %vm1842_vm7 = vmor %vm1840_vm6, %vm1841_vm5  ;;  %v1867_v34 = vor.u32 1.1754944e-38, %v1866_v27  ;;  %vm1865_vm12 = vcmp.eq.f32.partialorder %v1864_v16, 8.507059e+37 }
 0x85f   :  { %v1837_v18 = vsub.f32 1.0, %v1836_v60 }
 0x861   :  { %v1838_v62 = vmul.f32 %v2603_v7, %v1837_v18 }
 0x862   :  { %v2605_v48 = vpop.eup %2604 }
 0x863   :  { %v1856_v19 = vmul.f32 %v2605_v48, %v1854_v59  ;;  %v1839_v2 = vadd.f32 %v2603_v7, %v1838_v62  ;;  %vm1861_vm9 = vweird.f32 %v2605_v48 }
 0x864   :  { %vm1862_vm11 = vmor %vm1860_vm10, %vm1861_vm9 }
 0x865   :  { %v1857_v22 = vsub.f32 1.0, %v1856_v19  ;;  %v1843_v24 = vsel %vm1842_vm7, %v2603_v7, %v1839_v2 }
 0x866   :  { %v1848_v25 = vsel %vm1845_vm8, %v1847_v21, %v1843_v24  ;;  %v1991_v24 = vld [vmem:[#allocation3 + $0xa] sm:$0x3] }
 0x867   :  { %v1858_v26 = vmul.f32 %v2605_v48, %v1857_v22  ;;  %v1870_v28 = vmul.f32 %v1848_v25, %v1828_v20 }
 0x869   :  { %v1859_v30 = vadd.f32 %v2605_v48, %v1858_v26  ;;  %v1871_v32 = vadd.f32 %v1870_v28, %v1766_v29  ;;  %v1990_v28 = vld [vmem:[#allocation2 + $0xa] sm:$0x3] }
 0x86b   :  { %v1863_v35 = vsel %vm1862_vm11, %v2605_v48, %v1859_v30  ;;  %2606 = vtanh.f32 %v1871_v32 }
 0x86c   :  { %v1868_v36 = vsel %vm1865_vm12, %v1867_v34, %v1863_v35 }
 0x86d   :  { %v1873_v37 = vsub.f32 1.0, %v1868_v36  ;;  %v1875_v44 = vmul.f32 %v1868_v36, %v3598_v33 }
 0x871   :  { %v2607_v41 = vpop.eup %2606 }
 0x872   :  { %v1874_v43 = vmul.f32 %v2607_v41, %v1873_v37 }
 0x874   :  { %v3620_v8 = vadd.f32 %v1875_v44, %v1874_v43 }
 0x876   :  { %2442 = vmatmul.msk.f32.vlgmr.msra.gmra.mxu0 %vm307_vm2, %v3620_v8  ;;  %2443 = vmatmul.msk.f32.vlgmr.msrb.gmra.mxu1 %vm307_vm2, %v3620_v8 }
 0x877   :  { %2444 = vmatmul.msk.f32.vlgmr.msra.gmra.mxu2 %vm307_vm2, %v3620_v8  ;;  %2161 = vmatpush.msra.mxu0 %v3500_v39 }
 0x878   :  { %2234 = vmatpush.msrb.mxu1 %v3418_v38  ;;  %2254 = vmatpush.msra.mxu2 %v3445_v4  ;;  %v1877_v38 = vld [vmem:[#allocation2 + $0x8] sm:$0x3] }
 0x879   :  { %2162 = vmatpush.msra.mxu0 %v3502_v40 }
 0x87a   :  { %2235 = vmatpush.msrb.mxu1 %v3424_v42  ;;  %2255 = vmatpush.msra.mxu2 %v3455_v6 }
 0x87b   :  { %2163 = vmatpush.msra.mxu0 %v3511_v47 }
 0x87c   :  { %2236 = vmatpush.msrb.mxu1 %v3431_v45  ;;  %2256 = vmatpush.msra.mxu2 %v3460_v10 }
 0x87d   :  { %2164 = vmatpush.msra.mxu0 %v3513_v15 }
 0x87e   :  { %2237 = vmatpush.msrb.mxu1 %v3437_v13  ;;  %2257 = vmatpush.msra.mxu2 %v3468_v12 }
 0x8f3   :  { %v1900_v4 = vpop.f32.mrf.mxu0  ;;  %v1920_v11 = vpop.f32.mrf.mxu1 }
 0x8f4   :  { %v1943_v49 = vadd.f32 %v1900_v4, %v1877_v38  ;;  %v1963_v42 = vadd.f32 %v1920_v11, %v1878_v46 }
 0x8f6   :  { %v2445_v50 = vmul.f32 -1.442695, %v1943_v49  ;;  %v2446_v6 = vmul.f32 -1.442695, %v1963_v42 }
 0x8f8   :  { %2608 = vpow2.f32 %v2445_v50 }
 0x8f9   :  { %2610 = vpow2.f32 %v2446_v6 }
 0x8fa   :  { %v1940_v56 = vpop.f32.mrf.mxu2 }
 0x8fb   :  { %v1941_v5 = vadd.f32 %v3551_v23, %v1940_v56 }
 0x8fe   :  { %v2609_v51 = vpop.eup %2608 }
 0x8ff   :  { %v2611_v45 = vpop.eup %2610  ;;  %v1947_v52 = vadd.f32 1.0, %v2609_v51 }
 0x900   :  { %v1967_v10 = vadd.f32 1.0, %v2611_v45 }
 0x901   :  { %2612 = vrcp.f32 %v1947_v52  ;;  %v1959_v31 = vand.u32 2147483648, %v1947_v52  ;;  %v1957_v55 = vand.u32 2147483647, %v1947_v52  ;;  %vm1953_vm14 = vweird.f32 %v1947_v52 }
 0x902   :  { %2614 = vrcp.f32 %v1967_v10  ;;  %v1979_v7 = vand.u32 2147483648, %v1967_v10  ;;  %vm1973_vm3 = vweird.f32 %v1967_v10  ;;  %v1977_v18 = vand.u32 2147483647, %v1967_v10 }
 0x903   :  { %v1960_v57 = vor.u32 1.1754944e-38, %v1959_v31  ;;  %vm1958_vm0 = vcmp.eq.f32.partialorder %v1957_v55, 8.507059e+37 }
 0x904   :  { %v1980_v48 = vor.u32 1.1754944e-38, %v1979_v7  ;;  %vm1978_vm5 = vcmp.eq.f32.partialorder %v1977_v18, 8.507059e+37 }
 0x907   :  { %v2613_v1 = vpop.eup %2612 }
 0x908   :  { %v2615_v13 = vpop.eup %2614  ;;  %v1949_v9 = vmul.f32 %v2613_v1, %v1947_v52  ;;  %vm1954_vm13 = vweird.f32 %v2613_v1 }
 0x909   :  { %v1969_v12 = vmul.f32 %v2615_v13, %v1967_v10  ;;  %vm1955_vm15 = vmor %vm1953_vm14, %vm1954_vm13  ;;  %vm1974_vm1 = vweird.f32 %v2615_v13  ;;  %v1992_v10 = vld [vmem:[#allocation4 + $0xa] sm:$0x3] }
 0x90a   :  { %v1950_v33 = vsub.f32 1.0, %v1949_v9  ;;  %vm1975_vm4 = vmor %vm1973_vm3, %vm1974_vm1 }
 0x90b   :  { %v1970_v53 = vsub.f32 1.0, %v1969_v12 }
 0x90c   :  { %v1951_v54 = vmul.f32 %v2613_v1, %v1950_v33 }
 0x90d   :  { %v1971_v3 = vmul.f32 %v2615_v13, %v1970_v53 }
 0x90e   :  { %v1952_v14 = vadd.f32 %v2613_v1, %v1951_v54 }
 0x90f   :  { %v1972_v17 = vadd.f32 %v2615_v13, %v1971_v3  ;;  %v2103_v3 = vld [vmem:[#allocation2 + $0xc] sm:$0x3] }
 0x910   :  { %v1956_v58 = vsel %vm1955_vm15, %v2613_v1, %v1952_v14  ;;  %v2104_v14 = vld [vmem:[#allocation3 + $0xc] sm:$0x3] }
 0x911   :  { %v1961_v59 = vsel %vm1958_vm0, %v1960_v57, %v1956_v58  ;;  %v1976_v63 = vsel %vm1975_vm4, %v2615_v13, %v1972_v17 }
 0x912   :  { %v1983_v60 = vmul.f32 %v1961_v59, %v1941_v5  ;;  %v1981_v0 = vsel %vm1978_vm5, %v1980_v48, %v1976_v63 }
 0x913   :  { %v1986_v19 = vsub.f32 1.0, %v1981_v0  ;;  %v1988_v22 = vmul.f32 %v1981_v0, %v3620_v8 }
 0x914   :  { %v1984_v62 = vadd.f32 %v1983_v60, %v1879_v61 }
 0x916   :  { %2616 = vtanh.f32 %v1984_v62 }
 0x91c   :  { %v2617_v2 = vpop.eup %2616 }
 0x91d   :  { %v1987_v21 = vmul.f32 %v2617_v2, %v1986_v19 }
 0x91f   :  { %v1989_v20 = vadd.f32 %v1988_v22, %v1987_v21 }
 0x921   :  { %2447 = vmatmul.msk.f32.vlgmr.msrb.gmra.mxu3 %vm307_vm2, %v1989_v20  ;;  %2448 = vmatmul.msk.f32.vlgmr.msrb.gmra.mxu0 %vm307_vm2, %v1989_v20 }
 0x922   :  { %2449 = vmatmul.msk.f32.vlgmr.msra.gmra.mxu1 %vm307_vm2, %v1989_v20  ;;  %2274 = vmatpush.msrb.mxu3 %v3500_v39 }
 0x924   :  { %2275 = vmatpush.msrb.mxu3 %v3502_v40 }
 0x926   :  { %2276 = vmatpush.msrb.mxu3 %v3511_v47 }
 0x928   :  { %2277 = vmatpush.msrb.mxu3 %v3513_v15 }
 0x99e   :  { %v2033_v25 = vpop.f32.mrf.mxu0 }
 0x99f   :  { %v2076_v26 = vadd.f32 %v2033_v25, %v1991_v24  ;;  %v2053_v4 = vpop.f32.mrf.mxu1 }
 0x9a0   :  { %v2054_v49 = vadd.f32 %v3551_v23, %v2053_v4 }
 0x9a1   :  { %v2451_v27 = vmul.f32 -1.442695, %v2076_v26 }
 0x9a3   :  { %2618 = vpow2.f32 %v2451_v27 }
 0x9a4   :  { %v2013_v16 = vpop.f32.mrf.mxu3 }
 0x9a5   :  { %v2056_v29 = vadd.f32 %v2013_v16, %v1990_v28 }
 0x9a7   :  { %v2450_v30 = vmul.f32 -1.442695, %v2056_v29 }
 0x9a9   :  { %v2619_v32 = vpop.eup %2618  ;;  %2620 = vpow2.f32 %v2450_v30 }
 0x9aa   :  { %v2080_v34 = vadd.f32 1.0, %v2619_v32 }
 0x9ac   :  { %2622 = vrcp.f32 %v2080_v34  ;;  %v2092_v51 = vand.u32 2147483648, %v2080_v34  ;;  %vm2086_vm11 = vweird.f32 %v2080_v34  ;;  %v2090_v52 = vand.u32 2147483647, %v2080_v34 }
 0x9ae   :  { %v2093_v9 = vor.u32 1.1754944e-38, %v2092_v51  ;;  %vm2091_vm13 = vcmp.eq.f32.partialorder %v2090_v52, 8.507059e+37  ;;  %v2332_v51 = vld [vmem:[%s3701_s21 + $0x18] sm:$0xff] }
 0x9af   :  { %v2621_v39 = vpop.eup %2620  ;;  %2352 = vmatpush.msrb.mxu0 %v2332_v51 }
 0x9b0   :  { %v2060_v35 = vadd.f32 1.0, %v2621_v39 }
 0x9b2   :  { %2624 = vrcp.f32 %v2060_v35  ;;  %v2623_v40 = vpop.eup %2622  ;;  %v2072_v43 = vand.u32 2147483648, %v2060_v35  ;;  %v2070_v8 = vand.u32 2147483647, %v2060_v35  ;;  %vm2066_vm7 = vweird.f32 %v2060_v35 }
 0x9b3   :  { %v2082_v47 = vmul.f32 %v2623_v40, %v2080_v34  ;;  %vm2087_vm10 = vweird.f32 %v2623_v40 }
 0x9b4   :  { %v2073_v11 = vor.u32 1.1754944e-38, %v2072_v43  ;;  %vm2071_vm9 = vcmp.eq.f32.partialorder %v2070_v8, 8.507059e+37  ;;  %vm2088_vm12 = vmor %vm2086_vm11, %vm2087_vm10 }
 0x9b5   :  { %v2083_v37 = vsub.f32 1.0, %v2082_v47 }
 0x9b7   :  { %v2084_v38 = vmul.f32 %v2623_v40, %v2083_v37 }
 0x9b8   :  { %v2625_v36 = vpop.eup %2624 }
 0x9b9   :  { %v2062_v15 = vmul.f32 %v2625_v36, %v2060_v35  ;;  %vm2067_vm6 = vweird.f32 %v2625_v36  ;;  %v2085_v50 = vadd.f32 %v2623_v40, %v2084_v38  ;;  %v2105_v35 = vld [vmem:[#allocation4 + $0xc] sm:$0x3]  ;;  %v2216_v38 = vld [vmem:[#allocation2 + $0xe] sm:$0x3] }
 0x9ba   :  { %vm2068_vm8 = vmor %vm2066_vm7, %vm2067_vm6 }
 0x9bb   :  { %v2063_v41 = vsub.f32 1.0, %v2062_v15  ;;  %v2089_v13 = vsel %vm2088_vm12, %v2623_v40, %v2085_v50 }
 0x9bc   :  { %v2094_v12 = vsel %vm2091_vm13, %v2093_v9, %v2089_v13  ;;  %v2329_v13 = vld [vmem:[%s3701_s21] sm:$0xff] }
 0x9bd   :  { %v2064_v44 = vmul.f32 %v2625_v36, %v2063_v41  ;;  %v2099_v33 = vsub.f32 1.0, %v2094_v12  ;;  %v2101_v54 = vmul.f32 %v2094_v12, %v1989_v20 }
 0x9bf   :  { %v2065_v46 = vadd.f32 %v2625_v36, %v2064_v44 }
 0x9c1   :  { %v2069_v42 = vsel %vm2068_vm8, %v2625_v36, %v2065_v46 }
 0x9c2   :  { %v2074_v6 = vsel %vm2071_vm9, %v2073_v11, %v2069_v42 }
 0x9c3   :  { %v2096_v45 = vmul.f32 %v2074_v6, %v2054_v49  ;;  %v2217_v49 = vld [vmem:[#allocation3 + $0xe] sm:$0x3] }
 0x9c5   :  { %v2097_v1 = vadd.f32 %v2096_v45, %v1992_v10  ;;  %v2331_v45 = vld [vmem:[%s3701_s21 + $0x10] sm:$0xff]  ;;  %v2330_v10 = vld [vmem:[%s3701_s21 + $0x8] sm:$0xff] }
 0x9c6   :  { %2353 = vmatpush.msrb.mxu0 %v2331_v45 }
 0x9c7   :  { %2626 = vtanh.f32 %v2097_v1 }
 0x9c8   :  { %2354 = vmatpush.msrb.mxu0 %v2330_v10 }
 0x9ca   :  { %2355 = vmatpush.msrb.mxu0 %v2329_v13 }
 0x9cd   :  { %v2627_v53 = vpop.eup %2626 }
 0x9ce   :  { %v2100_v31 = vmul.f32 %v2627_v53, %v2099_v33 }
 0x9d0   :  { %v2102_v55 = vadd.f32 %v2101_v54, %v2100_v31 }
 0x9d2   :  { %2452 = vmatmul.msk.f32.vlgmr.msrb.gmra.mxu2 %vm307_vm2, %v2102_v55  ;;  %2453 = vmatmul.msk.f32.vlgmr.msra.gmra.mxu3 %vm307_vm2, %v2102_v55 }
 0x9d3   :  { %2454 = vmatmul.msk.f32.vlgmr.msra.gmra.mxu0 %vm307_vm2, %v2102_v55 }
 0xa50   :  { %v2166_v24 = vpop.f32.mrf.mxu0 }
 0xa51   :  { %v2167_v28 = vadd.f32 %v3551_v23, %v2166_v24 }
 0xa55   :  { %v2126_v56 = vpop.f32.mrf.mxu2  ;;  %v2146_v57 = vpop.f32.mrf.mxu3 }
 0xa56   :  { %v2169_v5 = vadd.f32 %v2126_v56, %v2103_v3  ;;  %v2189_v58 = vadd.f32 %v2146_v57, %v2104_v14 }
 0xa58   :  { %v2455_v17 = vmul.f32 -1.442695, %v2169_v5  ;;  %v2456_v59 = vmul.f32 -1.442695, %v2189_v58 }
 0xa5a   :  { %2628 = vpow2.f32 %v2455_v17 }
 0xa5b   :  { %2630 = vpow2.f32 %v2456_v59 }
 0xa60   :  { %v2629_v7 = vpop.eup %2628 }
 0xa61   :  { %v2631_v60 = vpop.eup %2630  ;;  %v2173_v18 = vadd.f32 1.0, %v2629_v7 }
 0xa62   :  { %v2193_v61 = vadd.f32 1.0, %v2631_v60 }
 0xa63   :  { %2632 = vrcp.f32 %v2173_v18  ;;  %v2185_v2 = vand.u32 2147483648, %v2173_v18  ;;  %v2183_v20 = vand.u32 2147483647, %v2173_v18  ;;  %vm2179_vm15 = vweird.f32 %v2173_v18 }
 0xa64   :  { %2634 = vrcp.f32 %v2193_v61  ;;  %v2205_v34 = vand.u32 2147483648, %v2193_v61  ;;  %vm2199_vm4 = vweird.f32 %v2193_v61  ;;  %v2203_v39 = vand.u32 2147483647, %v2193_v61 }
 0xa65   :  { %v2186_v27 = vor.u32 1.1754944e-38, %v2185_v2  ;;  %vm2184_vm1 = vcmp.eq.f32.partialorder %v2183_v20, 8.507059e+37 }
 0xa66   :  { %v2206_v36 = vor.u32 1.1754944e-38, %v2205_v34  ;;  %vm2204_vm6 = vcmp.eq.f32.partialorder %v2203_v39, 8.507059e+37 }
 0xa69   :  { %v2633_v62 = vpop.eup %2632 }
 0xa6a   :  { %v2635_v63 = vpop.eup %2634  ;;  %v2175_v48 = vmul.f32 %v2633_v62, %v2173_v18  ;;  %vm2180_vm14 = vweird.f32 %v2633_v62 }
 0xa6b   :  { %v2195_v0 = vmul.f32 %v2635_v63, %v2193_v61  ;;  %vm2181_vm0 = vmor %vm2179_vm15, %vm2180_vm14  ;;  %vm2200_vm3 = vweird.f32 %v2635_v63  ;;  %vm2360_vm15 = vcmask 1024  }
 0xa6c   :  { %v2176_v19 = vsub.f32 1.0, %v2175_v48  ;;  %vm2201_vm5 = vmor %vm2199_vm4, %vm2200_vm3  ;;  %v2218_v48 = vld [vmem:[#allocation4 + $0xe] sm:$0x3] }
 0xa6d   :  { %v2196_v21 = vsub.f32 1.0, %v2195_v0 }
 0xa6e   :  { %v2177_v22 = vmul.f32 %v2633_v62, %v2176_v19 }
 0xa6f   :  { %v2197_v25 = vmul.f32 %v2635_v63, %v2196_v21 }
 0xa70   :  { %v2178_v26 = vadd.f32 %v2633_v62, %v2177_v22 }
 0xa71   :  { %v2198_v30 = vadd.f32 %v2635_v63, %v2197_v25 }
 0xa72   :  { %v2182_v16 = vsel %vm2181_vm0, %v2633_v62, %v2178_v26 }
 0xa73   :  { %v2187_v29 = vsel %vm2184_vm1, %v2186_v27, %v2182_v16  ;;  %v2202_v47 = vsel %vm2201_vm5, %v2635_v63, %v2198_v30  ;;  %v2487_v27 = vld [vmem:[#allocation6] ss:$0 sm:$0xff] }
 0xa74   :  { %v2209_v32 = vmul.f32 %v2187_v29, %v2167_v28  ;;  %v2207_v15 = vsel %vm2204_vm6, %v2206_v36, %v2202_v47 }
 0xa75   :  { %v2212_v37 = vsub.f32 1.0, %v2207_v15  ;;  %v2214_v44 = vmul.f32 %v2207_v15, %v2102_v55 }
 0xa76   :  { %v2210_v40 = vadd.f32 %v2209_v32, %v2105_v35 }
 0xa78   :  { %2636 = vtanh.f32 %v2210_v40 }
 0xa7e   :  { %v2637_v41 = vpop.eup %2636 }
 0xa7f   :  { %v2213_v43 = vmul.f32 %v2637_v41, %v2212_v37 }
 0xa81   :  { %v3654_v8 = vadd.f32 %v2214_v44, %v2213_v43 }
 0xa83   :  { %2457 = vmatmul.msk.f32.vlgmr.msrb.gmra.mxu1 %vm307_vm2, %v3654_v8  ;;  %2458 = vmatmul.msk.f32.vlgmr.msra.gmra.mxu2 %vm307_vm2, %v3654_v8 }
 0xa84   :  { %2459 = vmatmul.msk.f32.vlgmr.msrb.gmra.mxu3 %vm307_vm2, %v3654_v8 }
 0xb00   :  { %v2239_v4 = vpop.f32.mrf.mxu1 }
 0xb01   :  { %v2282_v46 = vadd.f32 %v2239_v4, %v2216_v38 }
 0xb03   :  { %v2460_v11 = vmul.f32 -1.442695, %v2282_v46 }
 0xb05   :  { %2638 = vpow2.f32 %v2460_v11 }
 0xb06   :  { %v2259_v42 = vpop.f32.mrf.mxu2 }
 0xb07   :  { %v2302_v50 = vadd.f32 %v2259_v42, %v2217_v49  ;;  %v2279_v14 = vpop.f32.mrf.mxu3 }
 0xb08   :  { %v2280_v59 = vadd.f32 %v3551_v23, %v2279_v14 }
 0xb09   :  { %v2461_v6 = vmul.f32 -1.442695, %v2302_v50 }
 0xb0b   :  { %v2639_v52 = vpop.eup %2638  ;;  %2640 = vpow2.f32 %v2461_v6 }
 0xb0c   :  { %v2286_v1 = vadd.f32 1.0, %v2639_v52 }
 0xb0e   :  { %2642 = vrcp.f32 %v2286_v1  ;;  %v2298_v54 = vand.u32 2147483648, %v2286_v1  ;;  %v2296_v3 = vand.u32 2147483647, %v2286_v1  ;;  %vm2292_vm8 = vweird.f32 %v2286_v1 }
 0xb10   :  { %v2299_v58 = vor.u32 1.1754944e-38, %v2298_v54  ;;  %vm2297_vm10 = vcmp.eq.f32.partialorder %v2296_v3, 8.507059e+37 }
 0xb11   :  { %v2641_v9 = vpop.eup %2640 }
 0xb12   :  { %v2306_v12 = vadd.f32 1.0, %v2641_v9 }
 0xb14   :  { %v2643_v33 = vpop.eup %2642  ;;  %2644 = vrcp.f32 %v2306_v12  ;;  %v2318_v61 = vand.u32 2147483648, %v2306_v12  ;;  %v2316_v63 = vand.u32 2147483647, %v2306_v12  ;;  %vm2312_vm12 = vweird.f32 %v2306_v12 }
 0xb15   :  { %v2288_v53 = vmul.f32 %v2643_v33, %v2286_v1  ;;  %vm2293_vm7 = vweird.f32 %v2643_v33 }
 0xb16   :  { %vm2294_vm9 = vmor %vm2292_vm8, %vm2293_vm7  ;;  %v2319_v2 = vor.u32 1.1754944e-38, %v2318_v61  ;;  %vm2317_vm14 = vcmp.eq.f32.partialorder %v2316_v63, 8.507059e+37 }
 0xb17   :  { %v2289_v31 = vsub.f32 1.0, %v2288_v53 }
 0xb19   :  { %v2290_v55 = vmul.f32 %v2643_v33, %v2289_v31 }
 0xb1a   :  { %v2645_v56 = vpop.eup %2644 }
 0xb1b   :  { %v2308_v57 = vmul.f32 %v2645_v56, %v2306_v12  ;;  %v2291_v5 = vadd.f32 %v2643_v33, %v2290_v55  ;;  %vm2313_vm11 = vweird.f32 %v2645_v56 }
 0xb1c   :  { %vm2314_vm13 = vmor %vm2312_vm12, %vm2313_vm11 }
 0xb1d   :  { %v2309_v17 = vsub.f32 1.0, %v2308_v57  ;;  %v2295_v7 = vsel %vm2294_vm9, %v2643_v33, %v2291_v5 }
 0xb1e   :  { %v2300_v60 = vsel %vm2297_vm10, %v2299_v58, %v2295_v7 }
 0xb1f   :  { %v2310_v18 = vmul.f32 %v2645_v56, %v2309_v17  ;;  %v2322_v62 = vmul.f32 %v2300_v60, %v2280_v59 }
 0xb21   :  { %v2311_v0 = vadd.f32 %v2645_v56, %v2310_v18  ;;  %v2323_v19 = vadd.f32 %v2322_v62, %v2218_v48 }
 0xb23   :  { %v2315_v21 = vsel %vm2314_vm13, %v2645_v56, %v2311_v0  ;;  %2646 = vtanh.f32 %v2323_v19 }
 0xb24   :  { %v2320_v22 = vsel %vm2317_vm14, %v2319_v2, %v2315_v21 }
 0xb25   :  { %v2325_v20 = vsub.f32 1.0, %v2320_v22  ;;  %v2327_v25 = vmul.f32 %v2320_v22, %v3654_v8 }
 0xb29   :  { %v2647_v23 = vpop.eup %2646 }
 0xb2a   :  { %v2326_v24 = vmul.f32 %v2647_v23, %v2325_v20 }
 0xb2c   :  { %v2328_v26 = vadd.f32 %v2327_v25, %v2326_v24 }
 0xb2e   :  { %2462 = vmatmul.msk.f32.vlgmr.msrb.gmra.mxu0 %vm307_vm2, %v2328_v26 }
 0xbab   :  { %v2357_v28 = vpop.f32.mrf.mxu0 }
 0xbac   :  { %v2358_v16 = vadd.f32 %v2487_v27, %v2357_v28 }
 0xbae   :  { %2361 = vst.msk [vmem:[%s3703_s23] sm:$0x3] %vm2360_vm15, %v2358_v16 }
 0xbaf   :  { %2366 = vsyncpa [#allocation8], 1 }
 0xbb0   :  { %2367 = vsyncpa [#allocation10], 1 }
 0xbb1   :  { %2368 = vsyncpa [#allocation13], 1 }
 0xbb2   :  { %2369 = vsyncpa [#allocation16], 1 }
 0xbb3   :  { %2370 = vsyncpa [#allocation19], 1 }
 0xbb4   :  { %2371 = vsyncpa [#allocation22], 1 }
 0xbb5   :  { %2372 = vsyncpa [#allocation25], 1 }

</bundles_post_ra>
